<compile_context>
chip_gen: v5e
topology: v5e:2x2
jax: 0.10.0
libtpu: 0.0.40
codegen_flags: <defaults>
</compile_context>

<pallas_src>
import functools

import jax
import jax.numpy as jnp
from jax.experimental import pallas as pl
from jax.experimental.pallas import tpu as pltpu

DEG = 57.29577951308232  # 180 / pi


# ----------------------------------------------------------------------------
# Fused kernel: grid_sample(rot) -> separable grid_sample(trans)
#               -> ChannelPool(max) + freq accumulation
# ----------------------------------------------------------------------------
def _make_graph_mapper_kernel(M, C, TR):
    H = W = M
    CW = C * W          # lane-dense width (= 128 for M = 64, C = 2)
    n_tiles = H // TR
    f32 = jnp.float32
    bf16 = jnp.bfloat16

    def kernel(params_ref, av_ref, maps_ref, expl_ref, freq_ref,
               map_out_ref, exp_out_ref, freq_out_ref, rot_ref):
        # params_ref (SMEM f32[14]): theta_rot[0:6], theta_trans[6:12],
        #                            b_selected_f[12], sim_score[13]
        b_sel = params_ref[12]
        sim = params_ref[13]

        @pl.when(b_sel != 0.0)
        def _active():
            # -------- phase 1: rotation resample -> lane-dense scratch -------
            # Matches F.affine_grid + F.grid_sample, align_corners=False,
            # padding_mode='zeros' (OOB corner ids never match an in-range
            # iota, so their weight is exactly 0).
            a11 = params_ref[0]
            a12 = params_ref[1]
            a13 = params_ref[2]
            a21 = params_ref[3]
            a22 = params_ref[4]
            a23 = params_ref[5]

            def rot_body(t, carry):
                ii = (jax.lax.broadcasted_iota(jnp.int32, (TR, W), 0)
                      + t * TR).astype(f32)
                jj = jax.lax.broadcasted_iota(jnp.int32, (TR, W), 1).astype(f32)
                xn = (2.0 * jj + 1.0) / W - 1.0          # output normalized coords
                yn = (2.0 * ii + 1.0) / H - 1.0
                gx = a11 * xn + a12 * yn + a13
                gy = a21 * xn + a22 * yn + a23
                ix = ((gx + 1.0) * W - 1.0) * 0.5        # input pixel coords
                iy = ((gy + 1.0) * H - 1.0) * 0.5
                x0f = jnp.floor(ix)
                y0f = jnp.floor(iy)
                wx1 = ix - x0f
                wx0 = 1.0 - wx1
                wy1 = iy - y0f
                wy0 = 1.0 - wy1
                x0 = x0f.astype(jnp.int32)
                y0 = y0f.astype(jnp.int32)

                # x one-hot (MXU LHS).  f32 build + bf16 cast (safe on v5e).
                q = jax.lax.broadcasted_iota(jnp.int32, (1, 1, W), 2)
                wx = ((q == x0[..., None]).astype(f32) * wx0[..., None]
                      + (q == (x0 + 1)[..., None]).astype(f32) * wx1[..., None])
                wx2 = wx.reshape(TR * W, W).astype(bf16)

                # ONE matmul for BOTH channels: (TR*W, W) @ (W, C*H) -> (TR*W, C*H).
                # RHS was pre-transposed in the wrapper -> plain A@B, no relayout.
                acc = jnp.dot(wx2, av_ref[...], preferred_element_type=f32)
                acc = acc.reshape(TR, W, CW)

                # Lane-dense y one-hot: built directly at (TR, W, C*H) so the
                # multiply runs on full 128-lane vregs (one pass, not two).
                p = jax.lax.broadcasted_iota(jnp.int32, (1, 1, CW), 2)
                p = jnp.where(p >= H, p - H, p)          # same weights per channel
                wy2 = ((p == y0[..., None]).astype(f32) * wy0[..., None]
                       + (p == (y0 + 1)[..., None]).astype(f32) * wy1[..., None])
                prod = wy2 * acc
                v0 = jnp.sum(prod[..., :H], axis=-1)     # channel 0  (TR, W)
                v1 = jnp.sum(prod[..., H:], axis=-1)     # channel 1  (TR, W)

                # One lane-dense (TR, C*W) store per tile.
                r = pl.multiple_of(t * TR, TR)
                rot_ref[pl.ds(r, TR), :] = jnp.concatenate([v0, v1], axis=-1)
                return carry

            # TODO(synk): sweep row_tile (TR) / unroll on real HW; TR=4 without
            # unroll picked to keep acc+one-hot live set inside the vreg file.
            jax.lax.fori_loop(0, n_tiles, rot_body, 0)

            # -------- phase 2: separable translation (axis-aligned theta) ----
            # theta_trans = [[1, 0, tx], [0, 1, ty]]  =>  ix depends only on j,
            # iy only on i  =>  translated = Wy @ rotated @ Wx^T.
            tx = params_ref[8]
            ty = params_ref[11]

            # Wy (H, H): output rows on sublanes, input rows on lanes.
            i_out = jax.lax.broadcasted_iota(jnp.int32, (H, 1), 0).astype(f32)
            yn2 = (2.0 * i_out + 1.0) / H - 1.0
            iy2 = ((yn2 + ty + 1.0) * H - 1.0) * 0.5
            y0f2 = jnp.floor(iy2)
            wy1b = iy2 - y0f2
            wy0b = 1.0 - wy1b
            y0b = y0f2.astype(jnp.int32)
            p_in = jax.lax.broadcasted_iota(jnp.int32, (1, H), 1)
            wy_m = ((p_in == y0b).astype(f32) * wy0b
                    + (p_in == (y0b + 1)).astype(f32) * wy1b)          # (H, H)

            # Block-diagonal Wx^T (C*W, C*W): rows = input cols (per channel),
            # cols = output cols (per channel); both channels share the block.
            s = jax.lax.broadcasted_iota(jnp.int32, (1, CW), 1)
            j_out = jnp.where(s >= W, s - W, s).astype(f32)
            xn2 = (2.0 * j_out + 1.0) / W - 1.0
            ix2 = ((xn2 + tx + 1.0) * W - 1.0) * 0.5
            x0f2 = jnp.floor(ix2)
            wx1b = ix2 - x0f2
            wx0b = 1.0 - wx1b
            x0b = x0f2.astype(jnp.int32)
            r_in = jax.lax.broadcasted_iota(jnp.int32, (CW, 1), 0)
            q_in = jnp.where(r_in >= W, r_in - W, r_in)
            same_c = (r_in >= W) == (s >= W)
            wxT = jnp.where(same_c,
                            (q_in == x0b).astype(f32) * wx0b
                            + (q_in == (x0b + 1)).astype(f32) * wx1b,
                            0.0)                                       # (CW, CW)

            rot_bf = rot_ref[...].astype(bf16)                         # (H, C*W)
            tmp = jnp.dot(wy_m.astype(bf16), rot_bf,
                          preferred_element_type=f32)                  # (H, C*W)
            trans = jnp.dot(tmp.astype(bf16), wxT.astype(bf16),
                            preferred_element_type=f32)                # (H, C*W)
            t0 = trans[:, :W]                                          # channel 0
            t1 = trans[:, W:]                                          # channel 1

            # ChannelPool(1) over cat([maps, translated[:, :1]], 1) == max
            map_out_ref[...] = jnp.maximum(maps_ref[...], t0)
            exp_out_ref[...] = jnp.maximum(expl_ref[...], t1)
            # freq_map[:, :2] += translated   (or thresholded * sim_score)
            add0 = jnp.where(sim == 0.0, t0, (t0 > 0.5).astype(f32) * sim)
            add1 = jnp.where(sim == 0.0, t1, (t1 > 0.5).astype(f32) * sim)
            freq_out_ref[0, :, :] = freq_ref[0, :, :] + add0
            freq_out_ref[1, :, :] = freq_ref[1, :, :] + add1

        @pl.when(b_sel == 0.0)
        def _passthrough():
            # b_selected == 0  =>  translated == 0: map/exp = max(x, 0),
            # freq unchanged.  Skips the whole resample pipeline.
            map_out_ref[...] = jnp.maximum(maps_ref[...], 0.0)
            exp_out_ref[...] = jnp.maximum(expl_ref[...], 0.0)
            freq_out_ref[...] = freq_ref[...]

    return kernel


@functools.lru_cache(maxsize=None)
def _fused_mapper_call(M, F_, TR):
    """Build the single fused pallas_call for an (M x M) map with F_ freq channels."""
    C = 2
    assert M % TR == 0 and F_ >= 2
    kernel = _make_graph_mapper_kernel(M, C, TR)
    return pl.pallas_call(
        kernel,
        out_shape=(
            jax.ShapeDtypeStruct((M, M), jnp.float32),       # map_pred
            jax.ShapeDtypeStruct((M, M), jnp.float32),       # exp_pred
            jax.ShapeDtypeStruct((F_, M, M), jnp.float32),   # freq_map (aliased)
        ),
        grid=(1,),
        in_specs=[
            pl.BlockSpec(memory_space=pltpu.MemorySpace.SMEM),   # params f32[14]
            pl.BlockSpec((M, C * M), lambda i: (0, 0)),          # agent_view^T (W, C*H) bf16
            pl.BlockSpec((M, M), lambda i: (0, 0)),              # maps
            pl.BlockSpec((M, M), lambda i: (0, 0)),              # explored
            pl.BlockSpec((2, M, M), lambda i: (0, 0, 0)),        # freq channels 0:2
        ],
        out_specs=(
            pl.BlockSpec((M, M), lambda i: (0, 0)),
            pl.BlockSpec((M, M), lambda i: (0, 0)),
            # Only channels 0:2 are mapped/written; channels 2: are preserved
            # in HBM because the output buffer is aliased with the freq input.
            pl.BlockSpec((2, M, M), lambda i: (0, 0, 0)),
        ),
        scratch_shapes=[pltpu.VMEM((M, C * M), jnp.float32)],    # rotated, lane-dense
        input_output_aliases={4: 2},                             # freq in -> freq out
        compiler_params=pltpu.CompilerParams(
            dimension_semantics=("arbitrary",)),
    )


# ----------------------------------------------------------------------------
# Graph_Mapper forward
# ----------------------------------------------------------------------------
class GraphMapperPallas:
    def __init__(self, map_resolution=5, map_size_cm=320, vision_range=32,
                 row_tile=4):
        self.resolution = map_resolution
        self.map_size_cm = map_size_cm
        self.vision_range = vision_range
        self.num_scenes = 1
        self.map_size = map_size_cm // map_resolution   # H == W of the map
        self.row_tile = row_tile

    def __call__(self, gt_proj, gt_exp, poses, maps, explored, current_poses,
                 b_selected_f, freq_map, sim_score=0.0):
        vr = self.vision_range
        M = self.map_size
        F_ = freq_map.shape[1]

        # pred / agent_view placement (tiny static-slice glue, kept in JAX)
        pred = jnp.stack([gt_proj[0], gt_exp[0]]).astype(jnp.float32)   # (2,vr,vr)
        half = self.map_size_cm // (self.resolution * 2)
        x1 = half - vr // 2
        y1 = half
        agent_view = jnp.zeros((2, M, M), jnp.float32)
        agent_view = agent_view.at[:, y1:y1 + vr, x1:x1 + vr].set(pred)
        # Pre-transpose once to (W, C*H) bf16 so the in-kernel rotation matmul
        # is a plain A@B against a lane-dense RHS (no per-tile relayout).
        av_t = jnp.transpose(agent_view, (2, 0, 1)).reshape(M, 2 * M).astype(jnp.bfloat16)

        # get_new_pose_batch: a handful of scalar trig ops on a (1,3) pose
        # TODO(synk): pose integration stays in plain JAX (no vector hot path).
        rad = current_poses[:, 2] / DEG
        ny = current_poses[:, 1] + poses[:, 0] * jnp.sin(rad) + poses[:, 1] * jnp.cos(rad)
        nx = current_poses[:, 0] + poses[:, 0] * jnp.cos(rad) - poses[:, 1] * jnp.sin(rad)
        no = current_poses[:, 2] + poses[:, 2] * DEG
        no = jnp.fmod(no - 180.0, 360.0) + 180.0
        no = jnp.fmod(no + 180.0, 360.0) - 180.0
        current_poses = jnp.stack([nx, ny, no], axis=1)

        # st_pose -> affine thetas (get_grid), packed into one SMEM params vec
        st_x = -(current_poses[:, 0] * 100.0 / self.resolution - half) / half
        st_y = -(current_poses[:, 1] * 100.0 / self.resolution - half) / half
        t = (90.0 - current_poses[:, 2])[0] * (jnp.pi / 180.0)
        ct = jnp.cos(t)
        st = jnp.sin(t)
        zero = jnp.zeros_like(ct)
        one = jnp.ones_like(ct)
        theta_rot = jnp.stack([ct, -st, zero, st, ct, zero])
        theta_trans = jnp.stack([one, zero, st_x[0], zero, one, st_y[0]])
        params = jnp.concatenate([
            theta_rot, theta_trans,
            jnp.stack([jnp.asarray(b_selected_f, jnp.float32),
                       jnp.asarray(sim_score, jnp.float32)])]).astype(jnp.float32)

        # One fused Pallas call: rotate -> (separable) translate -> max + freq.
        # (Callers wanting the freq update to be zero-copy end-to-end should
        # additionally donate freq_map at the jit level.)
        map_pred, exp_pred, freq_out = _fused_mapper_call(M, F_, self.row_tile)(
            params, av_t, maps[0], explored[0], freq_map[0])

        return (map_pred[None], exp_pred[None], current_poses, freq_out[None])


if __name__ == "__main__":
    key = jax.random.PRNGKey(0)
    k1, k2, k3, k4 = jax.random.split(key, 4)

    mapper = GraphMapperPallas(map_resolution=5, map_size_cm=320, vision_range=32)
    VR, M, FC = 32, 64, 4

    gt_proj = jax.random.uniform(k1, (1, VR, VR), jnp.float32)
    gt_exp = jax.random.uniform(k2, (1, VR, VR), jnp.float32)
    poses = jnp.array([[0.05, 0.02, 0.01]], jnp.float32)        # rel pose change
    maps = jax.random.uniform(k3, (1, M, M), jnp.float32)
    explored = jax.random.uniform(k4, (1, M, M), jnp.float32)
    current_poses = jnp.array([[1.6, 1.6, 30.0]], jnp.float32)  # x, y (m), theta (deg)
    freq_map = jnp.zeros((1, FC, M, M), jnp.float32)

    fwd = jax.jit(mapper.__call__)
    map_pred, exp_pred, cur_poses, freq_out = fwd(
        gt_proj, gt_exp, poses, maps, explored, current_poses,
        jnp.float32(1.0), freq_map, jnp.float32(0.0))
    jax.block_until_ready((map_pred, exp_pred, cur_poses, freq_out))

    assert map_pred.shape == (1, M, M)
    assert exp_pred.shape == (1, M, M)
    assert cur_poses.shape == (1, 3)
    assert freq_out.shape == (1, FC, M, M)
    # channel-max can only grow the map; untouched freq channels stay zero
    assert bool(jnp.all(map_pred >= maps))
    assert bool(jnp.all(freq_out[:, 2:] == 0.0))
    print("KERNEL_OK")
</pallas_src>

<mosaic_0001>
module attributes {stable_mosaic.version = 11 : i64} {
  func.func @kernel(%arg0: i32, %arg1: memref<14xf32, #tpu.memory_space<smem>>, %arg2: memref<64x128xbf16, #tpu.memory_space<vmem>>, %arg3: memref<64x64xf32, #tpu.memory_space<vmem>>, %arg4: memref<64x64xf32, #tpu.memory_space<vmem>>, %arg5: memref<2x64x64xf32, #tpu.memory_space<vmem>>, %arg6: memref<64x64xf32, #tpu.memory_space<vmem>>, %arg7: memref<64x64xf32, #tpu.memory_space<vmem>>, %arg8: memref<2x64x64xf32, #tpu.memory_space<vmem>>, %arg9: memref<64x128xf32, #tpu.memory_space<vmem>>) attributes {dimension_semantics = [#tpu.dimension_semantics<arbitrary>], iteration_bounds = array<i64: 1>, scalar_prefetch = 0 : i64, scratch_operands = 1 : i64, tpu.core_type = #tpu.core_type<tc>, window_params = [{transform_indices = @transform_0, window_bounds = array<i64: 14>}, {pipeline_mode = #tpu.pipeline_mode<synchronous>, transform_indices = @transform_1, window_bounds = array<i64: 64, 128>}, {pipeline_mode = #tpu.pipeline_mode<synchronous>, transform_indices = @transform_2, window_bounds = array<i64: 64, 64>}, {pipeline_mode = #tpu.pipeline_mode<synchronous>, transform_indices = @transform_3, window_bounds = array<i64: 64, 64>}, {transform_indices = @transform_4, window_bounds = array<i64: 2, 64, 64>}, {pipeline_mode = #tpu.pipeline_mode<synchronous>, transform_indices = @transform_5, window_bounds = array<i64: 64, 64>}, {pipeline_mode = #tpu.pipeline_mode<synchronous>, transform_indices = @transform_6, window_bounds = array<i64: 64, 64>}, {transform_indices = @transform_7, window_bounds = array<i64: 2, 64, 64>}]} {
    %c12 = arith.constant 12 : index
    %0 = memref.load %arg1[%c12] : memref<14xf32, #tpu.memory_space<smem>>
    %c13 = arith.constant 13 : index
    %1 = memref.load %arg1[%c13] : memref<14xf32, #tpu.memory_space<smem>>
    %cst = arith.constant 0.000000e+00 : f32
    %2 = arith.cmpf one, %0, %cst : f32
    %3 = arith.extui %2 : i1 to i32
    %c0_i32 = arith.constant 0 : i32
    %4 = arith.cmpi ne, %3, %c0_i32 : i32
    scf.if %4 {
      %c0 = arith.constant 0 : index
      %8 = memref.load %arg1[%c0] : memref<14xf32, #tpu.memory_space<smem>>
      %c1 = arith.constant 1 : index
      %9 = memref.load %arg1[%c1] : memref<14xf32, #tpu.memory_space<smem>>
      %c2 = arith.constant 2 : index
      %10 = memref.load %arg1[%c2] : memref<14xf32, #tpu.memory_space<smem>>
      %c3 = arith.constant 3 : index
      %11 = memref.load %arg1[%c3] : memref<14xf32, #tpu.memory_space<smem>>
      %c4 = arith.constant 4 : index
      %12 = memref.load %arg1[%c4] : memref<14xf32, #tpu.memory_space<smem>>
      %c5 = arith.constant 5 : index
      %13 = memref.load %arg1[%c5] : memref<14xf32, #tpu.memory_space<smem>>
      %c0_i32_2 = arith.constant 0 : i32
      %c16_i32 = arith.constant 16 : i32
      %14 = arith.addi %c0_i32_2, %c16_i32 : i32
      %c1_i32 = arith.constant 1 : i32
      scf.for %arg10 = %c0_i32_2 to %14 step %c1_i32  : i32 {
        %168 = tpu.iota {dimensions = array<i32: 0>} : vector<4x64xi32>
        %c4_i32 = arith.constant 4 : i32
        %169 = arith.muli %arg10, %c4_i32 : i32
        %170 = vector.broadcast %169 : i32 to vector<4x64xi32>
        %171 = arith.addi %168, %170 : vector<4x64xi32>
        %172 = arith.sitofp %171 : vector<4x64xi32> to vector<4x64xf32>
        %173 = tpu.iota {dimensions = array<i32: 1>} : vector<4x64xi32>
        %174 = arith.sitofp %173 : vector<4x64xi32> to vector<4x64xf32>
        %cst_59 = arith.constant 2.000000e+00 : f32
        %175 = vector.broadcast %cst_59 : f32 to vector<4x64xf32>
        %176 = arith.mulf %175, %174 : vector<4x64xf32>
        %cst_60 = arith.constant 1.000000e+00 : f32
        %177 = vector.broadcast %cst_60 : f32 to vector<4x64xf32>
        %178 = arith.addf %176, %177 : vector<4x64xf32>
        %cst_61 = arith.constant 6.400000e+01 : f32
        %179 = vector.broadcast %cst_61 : f32 to vector<4x64xf32>
        %180 = arith.divf %178, %179 : vector<4x64xf32>
        %cst_62 = arith.constant 1.000000e+00 : f32
        %181 = vector.broadcast %cst_62 : f32 to vector<4x64xf32>
        %182 = arith.subf %180, %181 : vector<4x64xf32>
        %cst_63 = arith.constant 2.000000e+00 : f32
        %183 = vector.broadcast %cst_63 : f32 to vector<4x64xf32>
        %184 = arith.mulf %183, %172 : vector<4x64xf32>
        %cst_64 = arith.constant 1.000000e+00 : f32
        %185 = vector.broadcast %cst_64 : f32 to vector<4x64xf32>
        %186 = arith.addf %184, %185 : vector<4x64xf32>
        %cst_65 = arith.constant 6.400000e+01 : f32
        %187 = vector.broadcast %cst_65 : f32 to vector<4x64xf32>
        %188 = arith.divf %186, %187 : vector<4x64xf32>
        %cst_66 = arith.constant 1.000000e+00 : f32
        %189 = vector.broadcast %cst_66 : f32 to vector<4x64xf32>
        %190 = arith.subf %188, %189 : vector<4x64xf32>
        %191 = vector.broadcast %8 : f32 to vector<4x64xf32>
        %192 = arith.mulf %191, %182 : vector<4x64xf32>
        %193 = vector.broadcast %9 : f32 to vector<4x64xf32>
        %194 = arith.mulf %193, %190 : vector<4x64xf32>
        %195 = arith.addf %192, %194 : vector<4x64xf32>
        %196 = vector.broadcast %10 : f32 to vector<4x64xf32>
        %197 = arith.addf %195, %196 : vector<4x64xf32>
        %198 = vector.broadcast %11 : f32 to vector<4x64xf32>
        %199 = arith.mulf %198, %182 : vector<4x64xf32>
        %200 = vector.broadcast %12 : f32 to vector<4x64xf32>
        %201 = arith.mulf %200, %190 : vector<4x64xf32>
        %202 = arith.addf %199, %201 : vector<4x64xf32>
        %203 = vector.broadcast %13 : f32 to vector<4x64xf32>
        %204 = arith.addf %202, %203 : vector<4x64xf32>
        %cst_67 = arith.constant 1.000000e+00 : f32
        %205 = vector.broadcast %cst_67 : f32 to vector<4x64xf32>
        %206 = arith.addf %197, %205 : vector<4x64xf32>
        %cst_68 = arith.constant 6.400000e+01 : f32
        %207 = vector.broadcast %cst_68 : f32 to vector<4x64xf32>
        %208 = arith.mulf %206, %207 : vector<4x64xf32>
        %cst_69 = arith.constant 1.000000e+00 : f32
        %209 = vector.broadcast %cst_69 : f32 to vector<4x64xf32>
        %210 = arith.subf %208, %209 : vector<4x64xf32>
        %cst_70 = arith.constant 5.000000e-01 : f32
        %211 = vector.broadcast %cst_70 : f32 to vector<4x64xf32>
        %212 = arith.mulf %210, %211 : vector<4x64xf32>
        %cst_71 = arith.constant 1.000000e+00 : f32
        %213 = vector.broadcast %cst_71 : f32 to vector<4x64xf32>
        %214 = arith.addf %204, %213 : vector<4x64xf32>
        %cst_72 = arith.constant 6.400000e+01 : f32
        %215 = vector.broadcast %cst_72 : f32 to vector<4x64xf32>
        %216 = arith.mulf %214, %215 : vector<4x64xf32>
        %cst_73 = arith.constant 1.000000e+00 : f32
        %217 = vector.broadcast %cst_73 : f32 to vector<4x64xf32>
        %218 = arith.subf %216, %217 : vector<4x64xf32>
        %cst_74 = arith.constant 5.000000e-01 : f32
        %219 = vector.broadcast %cst_74 : f32 to vector<4x64xf32>
        %220 = arith.mulf %218, %219 : vector<4x64xf32>
        %221 = math.floor %212 : vector<4x64xf32>
        %222 = math.floor %220 : vector<4x64xf32>
        %223 = arith.subf %212, %221 : vector<4x64xf32>
        %cst_75 = arith.constant 1.000000e+00 : f32
        %224 = vector.broadcast %cst_75 : f32 to vector<4x64xf32>
        %225 = arith.subf %224, %223 : vector<4x64xf32>
        %226 = arith.subf %220, %222 : vector<4x64xf32>
        %cst_76 = arith.constant 1.000000e+00 : f32
        %227 = vector.broadcast %cst_76 : f32 to vector<4x64xf32>
        %228 = arith.subf %227, %226 : vector<4x64xf32>
        %229 = arith.fptosi %221 : vector<4x64xf32> to vector<4x64xi32>
        %230 = arith.fptosi %222 : vector<4x64xf32> to vector<4x64xi32>
        %231 = tpu.iota {dimensions = array<i32: 2>} : vector<1x1x64xi32>
        %232 = vector.shape_cast %229 : vector<4x64xi32> to vector<4x64x1xi32>
        %233 = vector.broadcast %231 : vector<1x1x64xi32> to vector<4x64x64xi32>
        %234 = vector.broadcast %232 : vector<4x64x1xi32> to vector<4x64x64xi32>
        %235 = arith.cmpi eq, %233, %234 : vector<4x64x64xi32>
        %236 = arith.extui %235 : vector<4x64x64xi1> to vector<4x64x64xi32>
        %237 = arith.sitofp %236 : vector<4x64x64xi32> to vector<4x64x64xf32>
        %238 = vector.shape_cast %225 : vector<4x64xf32> to vector<4x64x1xf32>
        %239 = vector.broadcast %238 : vector<4x64x1xf32> to vector<4x64x64xf32>
        %240 = arith.mulf %237, %239 : vector<4x64x64xf32>
        %c1_i32_77 = arith.constant 1 : i32
        %241 = vector.broadcast %c1_i32_77 : i32 to vector<4x64xi32>
        %242 = arith.addi %229, %241 : vector<4x64xi32>
        %243 = vector.shape_cast %242 : vector<4x64xi32> to vector<4x64x1xi32>
        %244 = vector.broadcast %231 : vector<1x1x64xi32> to vector<4x64x64xi32>
        %245 = vector.broadcast %243 : vector<4x64x1xi32> to vector<4x64x64xi32>
        %246 = arith.cmpi eq, %244, %245 : vector<4x64x64xi32>
        %247 = arith.extui %246 : vector<4x64x64xi1> to vector<4x64x64xi32>
        %248 = arith.sitofp %247 : vector<4x64x64xi32> to vector<4x64x64xf32>
        %249 = vector.shape_cast %223 : vector<4x64xf32> to vector<4x64x1xf32>
        %250 = vector.broadcast %249 : vector<4x64x1xf32> to vector<4x64x64xf32>
        %251 = arith.mulf %248, %250 : vector<4x64x64xf32>
        %252 = arith.addf %240, %251 : vector<4x64x64xf32>
        %253 = vector.shape_cast %252 : vector<4x64x64xf32> to vector<256x64xf32>
        %254 = arith.truncf %253 : vector<256x64xf32> to vector<256x64xbf16>
        %c0_78 = arith.constant 0 : index
        %c0_79 = arith.constant 0 : index
        %255 = vector.load %arg2[%c0_78, %c0_79] : memref<64x128xbf16, #tpu.memory_space<vmem>>, vector<64x128xbf16>
        %cst_80 = arith.constant dense<0.000000e+00> : vector<256x128xf32>
        %256 = tpu.matmul %254, %255, %cst_80 {dimension_numbers = #tpu.dot_dimension_numbers<[1], [0], [0], [1], [0, 0, 1, 1], [], []>} : vector<256x64xbf16>, vector<64x128xbf16>, vector<256x128xf32> -> vector<256x128xf32>
        %257 = vector.shape_cast %256 : vector<256x128xf32> to vector<4x64x128xf32>
        %258 = tpu.iota {dimensions = array<i32: 2>} : vector<1x1x128xi32>
        %c64_i32_81 = arith.constant 64 : i32
        %259 = vector.broadcast %c64_i32_81 : i32 to vector<1x1x128xi32>
        %260 = arith.cmpi sge, %258, %259 : vector<1x1x128xi32>
        %c64_i32_82 = arith.constant 64 : i32
        %261 = vector.broadcast %c64_i32_82 : i32 to vector<1x1x128xi32>
        %262 = arith.subi %258, %261 : vector<1x1x128xi32>
        %263 = arith.select %260, %262, %258 : vector<1x1x128xi1>, vector<1x1x128xi32>
        %264 = vector.shape_cast %230 : vector<4x64xi32> to vector<4x64x1xi32>
        %265 = vector.broadcast %263 : vector<1x1x128xi32> to vector<4x64x128xi32>
        %266 = vector.broadcast %264 : vector<4x64x1xi32> to vector<4x64x128xi32>
        %267 = arith.cmpi eq, %265, %266 : vector<4x64x128xi32>
        %268 = arith.extui %267 : vector<4x64x128xi1> to vector<4x64x128xi32>
        %269 = arith.sitofp %268 : vector<4x64x128xi32> to vector<4x64x128xf32>
        %270 = vector.shape_cast %228 : vector<4x64xf32> to vector<4x64x1xf32>
        %271 = vector.broadcast %270 : vector<4x64x1xf32> to vector<4x64x128xf32>
        %272 = arith.mulf %269, %271 : vector<4x64x128xf32>
        %c1_i32_83 = arith.constant 1 : i32
        %273 = vector.broadcast %c1_i32_83 : i32 to vector<4x64xi32>
        %274 = arith.addi %230, %273 : vector<4x64xi32>
        %275 = vector.shape_cast %274 : vector<4x64xi32> to vector<4x64x1xi32>
        %276 = vector.broadcast %263 : vector<1x1x128xi32> to vector<4x64x128xi32>
        %277 = vector.broadcast %275 : vector<4x64x1xi32> to vector<4x64x128xi32>
        %278 = arith.cmpi eq, %276, %277 : vector<4x64x128xi32>
        %279 = arith.extui %278 : vector<4x64x128xi1> to vector<4x64x128xi32>
        %280 = arith.sitofp %279 : vector<4x64x128xi32> to vector<4x64x128xf32>
        %281 = vector.shape_cast %226 : vector<4x64xf32> to vector<4x64x1xf32>
        %282 = vector.broadcast %281 : vector<4x64x1xf32> to vector<4x64x128xf32>
        %283 = arith.mulf %280, %282 : vector<4x64x128xf32>
        %284 = arith.addf %272, %283 : vector<4x64x128xf32>
        %285 = arith.mulf %284, %257 : vector<4x64x128xf32>
        %286 = vector.extract_strided_slice %285 {offsets = [0, 0, 0], sizes = [4, 64, 64], strides = [1, 1, 1]} : vector<4x64x128xf32> to vector<4x64x64xf32>
        %cst_84 = arith.constant dense<0.000000e+00> : vector<4x64xf32>
        %287 = vector.multi_reduction <add>, %286, %cst_84 [2] : vector<4x64x64xf32> to vector<4x64xf32>
        %288 = vector.extract_strided_slice %285 {offsets = [0, 0, 64], sizes = [4, 64, 64], strides = [1, 1, 1]} : vector<4x64x128xf32> to vector<4x64x64xf32>
        %cst_85 = arith.constant dense<0.000000e+00> : vector<4x64xf32>
        %289 = vector.multi_reduction <add>, %288, %cst_85 [2] : vector<4x64x64xf32> to vector<4x64xf32>
        %c4_i32_86 = arith.constant 4 : i32
        %290 = arith.muli %arg10, %c4_i32_86 : i32
        %291 = tpu.assume_multiple %290, 4 : i32
        %292 = tpu.concatenate %287, %289 in 1 : vector<4x64xf32>, vector<4x64xf32> -> vector<4x128xf32>
        %293 = arith.index_cast %291 : i32 to index
        %c0_87 = arith.constant 0 : index
        %294 = vector.load %arg9[%293, %c0_87] : memref<64x128xf32, #tpu.memory_space<vmem>>, vector<4x128xf32>
        tpu.vector_store %arg9[%293, %c0_87], %292 {strides = array<i32>} : memref<64x128xf32, #tpu.memory_space<vmem>>, vector<4x128xf32>,
      }
      %c16_i32_3 = arith.constant 16 : i32
      %c8 = arith.constant 8 : index
      %15 = memref.load %arg1[%c8] : memref<14xf32, #tpu.memory_space<smem>>
      %c11 = arith.constant 11 : index
      %16 = memref.load %arg1[%c11] : memref<14xf32, #tpu.memory_space<smem>>
      %17 = tpu.iota {dimensions = array<i32: 0>} : vector<64x1xi32>
      %18 = arith.sitofp %17 : vector<64x1xi32> to vector<64x1xf32>
      %cst_4 = arith.constant 2.000000e+00 : f32
      %19 = vector.broadcast %cst_4 : f32 to vector<64x1xf32>
      %20 = arith.mulf %19, %18 : vector<64x1xf32>
      %cst_5 = arith.constant 1.000000e+00 : f32
      %21 = vector.broadcast %cst_5 : f32 to vector<64x1xf32>
      %22 = arith.addf %20, %21 : vector<64x1xf32>
      %cst_6 = arith.constant 6.400000e+01 : f32
      %23 = vector.broadcast %cst_6 : f32 to vector<64x1xf32>
      %24 = arith.divf %22, %23 : vector<64x1xf32>
      %cst_7 = arith.constant 1.000000e+00 : f32
      %25 = vector.broadcast %cst_7 : f32 to vector<64x1xf32>
      %26 = arith.subf %24, %25 : vector<64x1xf32>
      %27 = vector.broadcast %16 : f32 to vector<64x1xf32>
      %28 = arith.addf %26, %27 : vector<64x1xf32>
      %cst_8 = arith.constant 1.000000e+00 : f32
      %29 = vector.broadcast %cst_8 : f32 to vector<64x1xf32>
      %30 = arith.addf %28, %29 : vector<64x1xf32>
      %cst_9 = arith.constant 6.400000e+01 : f32
      %31 = vector.broadcast %cst_9 : f32 to vector<64x1xf32>
      %32 = arith.mulf %30, %31 : vector<64x1xf32>
      %cst_10 = arith.constant 1.000000e+00 : f32
      %33 = vector.broadcast %cst_10 : f32 to vector<64x1xf32>
      %34 = arith.subf %32, %33 : vector<64x1xf32>
      %cst_11 = arith.constant 5.000000e-01 : f32
      %35 = vector.broadcast %cst_11 : f32 to vector<64x1xf32>
      %36 = arith.mulf %34, %35 : vector<64x1xf32>
      %37 = math.floor %36 : vector<64x1xf32>
      %38 = arith.subf %36, %37 : vector<64x1xf32>
      %cst_12 = arith.constant 1.000000e+00 : f32
      %39 = vector.broadcast %cst_12 : f32 to vector<64x1xf32>
      %40 = arith.subf %39, %38 : vector<64x1xf32>
      %41 = arith.fptosi %37 : vector<64x1xf32> to vector<64x1xi32>
      %42 = tpu.iota {dimensions = array<i32: 1>} : vector<1x64xi32>
      %43 = vector.broadcast %42 : vector<1x64xi32> to vector<64x64xi32>
      %44 = vector.broadcast %41 : vector<64x1xi32> to vector<64x64xi32>
      %45 = arith.cmpi eq, %43, %44 : vector<64x64xi32>
      %46 = arith.extui %45 : vector<64x64xi1> to vector<64x64xi32>
      %47 = arith.sitofp %46 : vector<64x64xi32> to vector<64x64xf32>
      %48 = vector.broadcast %40 : vector<64x1xf32> to vector<64x64xf32>
      %49 = arith.mulf %47, %48 : vector<64x64xf32>
      %c1_i32_13 = arith.constant 1 : i32
      %50 = vector.broadcast %c1_i32_13 : i32 to vector<64x1xi32>
      %51 = arith.addi %41, %50 : vector<64x1xi32>
      %52 = vector.broadcast %42 : vector<1x64xi32> to vector<64x64xi32>
      %53 = vector.broadcast %51 : vector<64x1xi32> to vector<64x64xi32>
      %54 = arith.cmpi eq, %52, %53 : vector<64x64xi32>
      %55 = arith.extui %54 : vector<64x64xi1> to vector<64x64xi32>
      %56 = arith.sitofp %55 : vector<64x64xi32> to vector<64x64xf32>
      %57 = vector.broadcast %38 : vector<64x1xf32> to vector<64x64xf32>
      %58 = arith.mulf %56, %57 : vector<64x64xf32>
      %59 = arith.addf %49, %58 : vector<64x64xf32>
      %60 = tpu.iota {dimensions = array<i32: 1>} : vector<1x128xi32>
      %c64_i32 = arith.constant 64 : i32
      %61 = vector.broadcast %c64_i32 : i32 to vector<1x128xi32>
      %62 = arith.cmpi sge, %60, %61 : vector<1x128xi32>
      %c64_i32_14 = arith.constant 64 : i32
      %63 = vector.broadcast %c64_i32_14 : i32 to vector<1x128xi32>
      %64 = arith.subi %60, %63 : vector<1x128xi32>
      %65 = arith.select %62, %64, %60 : vector<1x128xi1>, vector<1x128xi32>
      %66 = arith.sitofp %65 : vector<1x128xi32> to vector<1x128xf32>
      %cst_15 = arith.constant 2.000000e+00 : f32
      %67 = vector.broadcast %cst_15 : f32 to vector<1x128xf32>
      %68 = arith.mulf %67, %66 : vector<1x128xf32>
      %cst_16 = arith.constant 1.000000e+00 : f32
      %69 = vector.broadcast %cst_16 : f32 to vector<1x128xf32>
      %70 = arith.addf %68, %69 : vector<1x128xf32>
      %cst_17 = arith.constant 6.400000e+01 : f32
      %71 = vector.broadcast %cst_17 : f32 to vector<1x128xf32>
      %72 = arith.divf %70, %71 : vector<1x128xf32>
      %cst_18 = arith.constant 1.000000e+00 : f32
      %73 = vector.broadcast %cst_18 : f32 to vector<1x128xf32>
      %74 = arith.subf %72, %73 : vector<1x128xf32>
      %75 = vector.broadcast %15 : f32 to vector<1x128xf32>
      %76 = arith.addf %74, %75 : vector<1x128xf32>
      %cst_19 = arith.constant 1.000000e+00 : f32
      %77 = vector.broadcast %cst_19 : f32 to vector<1x128xf32>
      %78 = arith.addf %76, %77 : vector<1x128xf32>
      %cst_20 = arith.constant 6.400000e+01 : f32
      %79 = vector.broadcast %cst_20 : f32 to vector<1x128xf32>
      %80 = arith.mulf %78, %79 : vector<1x128xf32>
      %cst_21 = arith.constant 1.000000e+00 : f32
      %81 = vector.broadcast %cst_21 : f32 to vector<1x128xf32>
      %82 = arith.subf %80, %81 : vector<1x128xf32>
      %cst_22 = arith.constant 5.000000e-01 : f32
      %83 = vector.broadcast %cst_22 : f32 to vector<1x128xf32>
      %84 = arith.mulf %82, %83 : vector<1x128xf32>
      %85 = math.floor %84 : vector<1x128xf32>
      %86 = arith.subf %84, %85 : vector<1x128xf32>
      %cst_23 = arith.constant 1.000000e+00 : f32
      %87 = vector.broadcast %cst_23 : f32 to vector<1x128xf32>
      %88 = arith.subf %87, %86 : vector<1x128xf32>
      %89 = arith.fptosi %85 : vector<1x128xf32> to vector<1x128xi32>
      %90 = tpu.iota {dimensions = array<i32: 0>} : vector<128x1xi32>
      %c64_i32_24 = arith.constant 64 : i32
      %91 = vector.broadcast %c64_i32_24 : i32 to vector<128x1xi32>
      %92 = arith.cmpi sge, %90, %91 : vector<128x1xi32>
      %c64_i32_25 = arith.constant 64 : i32
      %93 = vector.broadcast %c64_i32_25 : i32 to vector<128x1xi32>
      %94 = arith.subi %90, %93 : vector<128x1xi32>
      %95 = arith.select %92, %94, %90 : vector<128x1xi1>, vector<128x1xi32>
      %c64_i32_26 = arith.constant 64 : i32
      %96 = vector.broadcast %c64_i32_26 : i32 to vector<128x1xi32>
      %97 = arith.cmpi sge, %90, %96 : vector<128x1xi32>
      %c64_i32_27 = arith.constant 64 : i32
      %98 = vector.broadcast %c64_i32_27 : i32 to vector<1x128xi32>
      %99 = arith.cmpi sge, %60, %98 : vector<1x128xi32>
      %100 = vector.broadcast %97 : vector<128x1xi1> to vector<128x128xi1>
      %101 = vector.broadcast %99 : vector<1x128xi1> to vector<128x128xi1>
      %102 = vector.broadcast %100 : vector<128x128xi1> to vector<128x128xi1>
      %103 = vector.broadcast %101 : vector<128x128xi1> to vector<128x128xi1>
      %104 = arith.xori %102, %103 : vector<128x128xi1>
      %cst_28 = arith.constant dense<true> : vector<128x128xi1>
      %105 = arith.xori %104, %cst_28 : vector<128x128xi1>
      %106 = vector.broadcast %95 : vector<128x1xi32> to vector<128x128xi32>
      %107 = vector.broadcast %89 : vector<1x128xi32> to vector<128x128xi32>
      %108 = arith.cmpi eq, %106, %107 : vector<128x128xi32>
      %109 = arith.extui %108 : vector<128x128xi1> to vector<128x128xi32>
      %110 = arith.sitofp %109 : vector<128x128xi32> to vector<128x128xf32>
      %111 = vector.broadcast %88 : vector<1x128xf32> to vector<128x128xf32>
      %112 = arith.mulf %110, %111 : vector<128x128xf32>
      %c1_i32_29 = arith.constant 1 : i32
      %113 = vector.broadcast %c1_i32_29 : i32 to vector<1x128xi32>
      %114 = arith.addi %89, %113 : vector<1x128xi32>
      %115 = vector.broadcast %95 : vector<128x1xi32> to vector<128x128xi32>
      %116 = vector.broadcast %114 : vector<1x128xi32> to vector<128x128xi32>
      %117 = arith.cmpi eq, %115, %116 : vector<128x128xi32>
      %118 = arith.extui %117 : vector<128x128xi1> to vector<128x128xi32>
      %119 = arith.sitofp %118 : vector<128x128xi32> to vector<128x128xf32>
      %120 = vector.broadcast %86 : vector<1x128xf32> to vector<128x128xf32>
      %121 = arith.mulf %119, %120 : vector<128x128xf32>
      %122 = arith.addf %112, %121 : vector<128x128xf32>
      %cst_30 = arith.constant 0.000000e+00 : f32
      %123 = vector.broadcast %cst_30 : f32 to vector<128x128xf32>
      %124 = arith.select %105, %122, %123 : vector<128x128xi1>, vector<128x128xf32>
      %c0_31 = arith.constant 0 : index
      %c0_32 = arith.constant 0 : index
      %125 = vector.load %arg9[%c0_31, %c0_32] : memref<64x128xf32, #tpu.memory_space<vmem>>, vector<64x128xf32>
      %126 = arith.truncf %125 : vector<64x128xf32> to vector<64x128xbf16>
      %127 = arith.truncf %59 : vector<64x64xf32> to vector<64x64xbf16>
      %cst_33 = arith.constant dense<0.000000e+00> : vector<64x128xf32>
      %128 = tpu.matmul %127, %126, %cst_33 {dimension_numbers = #tpu.dot_dimension_numbers<[1], [0], [0], [1], [0, 0, 1, 1], [], []>} : vector<64x64xbf16>, vector<64x128xbf16>, vector<64x128xf32> -> vector<64x128xf32>
      %129 = arith.truncf %128 : vector<64x128xf32> to vector<64x128xbf16>
      %130 = arith.truncf %124 : vector<128x128xf32> to vector<128x128xbf16>
      %cst_34 = arith.constant dense<0.000000e+00> : vector<64x128xf32>
      %131 = tpu.matmul %129, %130, %cst_34 {dimension_numbers = #tpu.dot_dimension_numbers<[1], [0], [0], [1], [0, 0, 1, 1], [], []>} : vector<64x128xbf16>, vector<128x128xbf16>, vector<64x128xf32> -> vector<64x128xf32>
      %132 = vector.extract_strided_slice %131 {offsets = [0, 0], sizes = [64, 64], strides = [1, 1]} : vector<64x128xf32> to vector<64x64xf32>
      %133 = vector.extract_strided_slice %131 {offsets = [0, 64], sizes = [64, 64], strides = [1, 1]} : vector<64x128xf32> to vector<64x64xf32>
      %c0_35 = arith.constant 0 : index
      %c0_36 = arith.constant 0 : index
      %134 = vector.load %arg3[%c0_35, %c0_36] : memref<64x64xf32, #tpu.memory_space<vmem>>, vector<64x64xf32>
      %135 = arith.maximumf %134, %132 : vector<64x64xf32>
      %c0_37 = arith.constant 0 : index
      %c0_38 = arith.constant 0 : index
      %136 = vector.load %arg6[%c0_37, %c0_38] : memref<64x64xf32, #tpu.memory_space<vmem>>, vector<64x64xf32>
      tpu.vector_store %arg6[%c0_37, %c0_38], %135 {strides = array<i32>} : memref<64x64xf32, #tpu.memory_space<vmem>>, vector<64x64xf32>,
      %c0_39 = arith.constant 0 : index
      %c0_40 = arith.constant 0 : index
      %137 = vector.load %arg4[%c0_39, %c0_40] : memref<64x64xf32, #tpu.memory_space<vmem>>, vector<64x64xf32>
      %138 = arith.maximumf %137, %133 : vector<64x64xf32>
      %c0_41 = arith.constant 0 : index
      %c0_42 = arith.constant 0 : index
      %139 = vector.load %arg7[%c0_41, %c0_42] : memref<64x64xf32, #tpu.memory_space<vmem>>, vector<64x64xf32>
      tpu.vector_store %arg7[%c0_41, %c0_42], %138 {strides = array<i32>} : memref<64x64xf32, #tpu.memory_space<vmem>>, vector<64x64xf32>,
      %cst_43 = arith.constant 0.000000e+00 : f32
      %140 = arith.cmpf oeq, %1, %cst_43 : f32
      %cst_44 = arith.constant 5.000000e-01 : f32
      %141 = vector.broadcast %cst_44 : f32 to vector<64x64xf32>
      %142 = arith.cmpf ogt, %132, %141 : vector<64x64xf32>
      %143 = arith.extui %142 : vector<64x64xi1> to vector<64x64xi32>
      %144 = arith.sitofp %143 : vector<64x64xi32> to vector<64x64xf32>
      %145 = vector.broadcast %1 : f32 to vector<64x64xf32>
      %146 = arith.mulf %144, %145 : vector<64x64xf32>
      %147 = arith.select %140, %132, %146 : vector<64x64xf32>
      %cst_45 = arith.constant 0.000000e+00 : f32
      %148 = arith.cmpf oeq, %1, %cst_45 : f32
      %cst_46 = arith.constant 5.000000e-01 : f32
      %149 = vector.broadcast %cst_46 : f32 to vector<64x64xf32>
      %150 = arith.cmpf ogt, %133, %149 : vector<64x64xf32>
      %151 = arith.extui %150 : vector<64x64xi1> to vector<64x64xi32>
      %152 = arith.sitofp %151 : vector<64x64xi32> to vector<64x64xf32>
      %153 = vector.broadcast %1 : f32 to vector<64x64xf32>
      %154 = arith.mulf %152, %153 : vector<64x64xf32>
      %155 = arith.select %148, %133, %154 : vector<64x64xf32>
      %c0_47 = arith.constant 0 : index
      %c0_48 = arith.constant 0 : index
      %c0_49 = arith.constant 0 : index
      %156 = vector.load %arg5[%c0_47, %c0_48, %c0_49] : memref<2x64x64xf32, #tpu.memory_space<vmem>>, vector<1x64x64xf32>
      %157 = vector.shape_cast %156 : vector<1x64x64xf32> to vector<64x64xf32>
      %158 = arith.addf %157, %147 : vector<64x64xf32>
      %c0_50 = arith.constant 0 : index
      %c0_51 = arith.constant 0 : index
      %c0_52 = arith.constant 0 : index
      %159 = vector.load %arg8[%c0_50, %c0_51, %c0_52] : memref<2x64x64xf32, #tpu.memory_space<vmem>>, vector<1x64x64xf32>
      %160 = vector.shape_cast %159 : vector<1x64x64xf32> to vector<64x64xf32>
      %161 = vector.shape_cast %158 : vector<64x64xf32> to vector<1x64x64xf32>
      tpu.vector_store %arg8[%c0_50, %c0_51, %c0_52], %161 {strides = array<i32>} : memref<2x64x64xf32, #tpu.memory_space<vmem>>, vector<1x64x64xf32>,
      %c1_53 = arith.constant 1 : index
      %c0_54 = arith.constant 0 : index
      %c0_55 = arith.constant 0 : index
      %162 = vector.load %arg5[%c1_53, %c0_54, %c0_55] : memref<2x64x64xf32, #tpu.memory_space<vmem>>, vector<1x64x64xf32>
      %163 = vector.shape_cast %162 : vector<1x64x64xf32> to vector<64x64xf32>
      %164 = arith.addf %163, %155 : vector<64x64xf32>
      %c1_56 = arith.constant 1 : index
      %c0_57 = arith.constant 0 : index
      %c0_58 = arith.constant 0 : index
      %165 = vector.load %arg8[%c1_56, %c0_57, %c0_58] : memref<2x64x64xf32, #tpu.memory_space<vmem>>, vector<1x64x64xf32>
      %166 = vector.shape_cast %165 : vector<1x64x64xf32> to vector<64x64xf32>
      %167 = vector.shape_cast %164 : vector<64x64xf32> to vector<1x64x64xf32>
      tpu.vector_store %arg8[%c1_56, %c0_57, %c0_58], %167 {strides = array<i32>} : memref<2x64x64xf32, #tpu.memory_space<vmem>>, vector<1x64x64xf32>,
    } else {
    }
    %cst_0 = arith.constant 0.000000e+00 : f32
    %5 = arith.cmpf oeq, %0, %cst_0 : f32
    %6 = arith.extui %5 : i1 to i32
    %c0_i32_1 = arith.constant 0 : i32
    %7 = arith.cmpi ne, %6, %c0_i32_1 : i32
    scf.if %7 {
      %c0 = arith.constant 0 : index
      %c0_2 = arith.constant 0 : index
      %8 = vector.load %arg3[%c0, %c0_2] : memref<64x64xf32, #tpu.memory_space<vmem>>, vector<64x64xf32>
      %cst_3 = arith.constant 0.000000e+00 : f32
      %9 = vector.broadcast %cst_3 : f32 to vector<64x64xf32>
      %10 = arith.maximumf %8, %9 : vector<64x64xf32>
      %c0_4 = arith.constant 0 : index
      %c0_5 = arith.constant 0 : index
      %11 = vector.load %arg6[%c0_4, %c0_5] : memref<64x64xf32, #tpu.memory_space<vmem>>, vector<64x64xf32>
      tpu.vector_store %arg6[%c0_4, %c0_5], %10 {strides = array<i32>} : memref<64x64xf32, #tpu.memory_space<vmem>>, vector<64x64xf32>,
      %c0_6 = arith.constant 0 : index
      %c0_7 = arith.constant 0 : index
      %12 = vector.load %arg4[%c0_6, %c0_7] : memref<64x64xf32, #tpu.memory_space<vmem>>, vector<64x64xf32>
      %cst_8 = arith.constant 0.000000e+00 : f32
      %13 = vector.broadcast %cst_8 : f32 to vector<64x64xf32>
      %14 = arith.maximumf %12, %13 : vector<64x64xf32>
      %c0_9 = arith.constant 0 : index
      %c0_10 = arith.constant 0 : index
      %15 = vector.load %arg7[%c0_9, %c0_10] : memref<64x64xf32, #tpu.memory_space<vmem>>, vector<64x64xf32>
      tpu.vector_store %arg7[%c0_9, %c0_10], %14 {strides = array<i32>} : memref<64x64xf32, #tpu.memory_space<vmem>>, vector<64x64xf32>,
      %c0_11 = arith.constant 0 : index
      %c0_12 = arith.constant 0 : index
      %c0_13 = arith.constant 0 : index
      %16 = vector.load %arg5[%c0_11, %c0_12, %c0_13] : memref<2x64x64xf32, #tpu.memory_space<vmem>>, vector<2x64x64xf32>
      %c0_14 = arith.constant 0 : index
      %c0_15 = arith.constant 0 : index
      %c0_16 = arith.constant 0 : index
      %17 = vector.load %arg8[%c0_14, %c0_15, %c0_16] : memref<2x64x64xf32, #tpu.memory_space<vmem>>, vector<2x64x64xf32>
      tpu.vector_store %arg8[%c0_14, %c0_15, %c0_16], %16 {strides = array<i32>} : memref<2x64x64xf32, #tpu.memory_space<vmem>>, vector<2x64x64xf32>,
    } else {
    }
    return
  }
  func.func @transform_0(%arg0: i32) -> i32 {
    %c0_i32 = arith.constant 0 : i32
    %c0_i32_0 = arith.constant 0 : i32
    return %c0_i32 : i32
  }
  func.func @transform_1(%arg0: i32) -> (i32, i32) {
    %c0_i32 = arith.constant 0 : i32
    %c0_i32_0 = arith.constant 0 : i32
    %c0_i32_1 = arith.constant 0 : i32
    return %c0_i32, %c0_i32_0 : i32, i32
  }
  func.func @transform_2(%arg0: i32) -> (i32, i32) {
    %c0_i32 = arith.constant 0 : i32
    %c0_i32_0 = arith.constant 0 : i32
    %c0_i32_1 = arith.constant 0 : i32
    return %c0_i32, %c0_i32_0 : i32, i32
  }
  func.func @transform_3(%arg0: i32) -> (i32, i32) {
    %c0_i32 = arith.constant 0 : i32
    %c0_i32_0 = arith.constant 0 : i32
    %c0_i32_1 = arith.constant 0 : i32
    return %c0_i32, %c0_i32_0 : i32, i32
  }
  func.func @transform_4(%arg0: i32) -> (i32, i32, i32) {
    %c0_i32 = arith.constant 0 : i32
    %c0_i32_0 = arith.constant 0 : i32
    %c0_i32_1 = arith.constant 0 : i32
    %c0_i32_2 = arith.constant 0 : i32
    return %c0_i32, %c0_i32_0, %c0_i32_1 : i32, i32, i32
  }
  func.func @transform_5(%arg0: i32) -> (i32, i32) {
    %c0_i32 = arith.constant 0 : i32
    %c0_i32_0 = arith.constant 0 : i32
    %c0_i32_1 = arith.constant 0 : i32
    return %c0_i32, %c0_i32_0 : i32, i32
  }
  func.func @transform_6(%arg0: i32) -> (i32, i32) {
    %c0_i32 = arith.constant 0 : i32
    %c0_i32_0 = arith.constant 0 : i32
    %c0_i32_1 = arith.constant 0 : i32
    return %c0_i32, %c0_i32_0 : i32, i32
  }
  func.func @transform_7(%arg0: i32) -> (i32, i32, i32) {
    %c0_i32 = arith.constant 0 : i32
    %c0_i32_0 = arith.constant 0 : i32
    %c0_i32_1 = arith.constant 0 : i32
    %c0_i32_2 = arith.constant 0 : i32
    return %c0_i32, %c0_i32_0, %c0_i32_1 : i32, i32, i32
  }
}

</mosaic_0001>

<bundles_post_ra>
// kernel: a_call__.1
= control target key start
LH: loop header
LB: loop body
LE: loop exit
PB: predicated region body
PF: predicated region fallthrough
CT: control target
= control target key end

     0   :  { %13 = vsyncpa [#allocation5], 0  ;;  %s7346_s0 = inlined_call_operand.vmem [shape: f32[14], index: 0, kind: input, shape index: {}]   ;;  %s7347_s1 = inlined_call_operand.vmem [shape: bf16[64,128], index: 1, kind: input, shape index: {}]   ;;  %s7348_s2 = inlined_call_operand.vmem [shape: f32[64,64], index: 2, kind: input, shape index: {}]   ;;  %s7349_s3 = inlined_call_operand.vmem [shape: f32[64,64], index: 3, kind: input, shape index: {}]   ;;  %s7350_s4 = inlined_call_operand.vmem [shape: f32[4,64,64], index: 4, kind: input, shape index: {}, may-alias: {4,7}]   ;;  %s7351_s5 = inlined_call_operand.hbm [shape: f32[64,64], index: 5, kind: output, shape index: {0}]   ;;  %s7352_s6 = inlined_call_operand.hbm [shape: f32[64,64], index: 6, kind: output, shape index: {1}]   ;;  %s7353_s7 = inlined_call_operand.vmem [shape: f32[4,64,64], index: 7, kind: output, shape index: {2}, may-alias: {4,7}]  }
   0x1   :  { %14 = vsyncpa [#allocation4], 0 }
   0x2   :  { %15 = vsyncpa [#allocation8], 0  ;;  %s21_s26 = sshll.u32 %s7346_s0, 4  ;;  %s4644_s27 = smov [#allocation3]   ;;  %s22_s26 = int_to_ptr.vmem [resolvable:$true] %s21_s26 }
   0x3   :  { %24 = dma.vmem_to_smem %s22_s26, 16, %s4644_s27, [#allocation5]  }
   0x4   :  { %4634 = dma.done.wait [#allocation5], 16  }
   0x5   :  { %4635 = vsyncadd [#allocation5], 4294967280 }
   0x6   :  { %37 = sfence }
   0x7   :  { %s4698_s28 = sld [smem:[#allocation3 + $0xc]] }
   0x8   :  { %s4700_s29 = sld [smem:[#allocation3 + $0xd]] }
   0xd   :  { %p41_p0 = scmp.ne.f32.partialorder %s4698_s28, 0.0 }
   0xf   :  { %44 = sbr.rel (!%p41_p0) target bundleno = 2635 (0xa4b), region = 29 }
  0x14   :  { %s4703_s30 = sld [smem:[#allocation3]]  ;;  %s4715_s12 = smov 0  }
  0x15   :  { %s4705_s8 = sld [smem:[#allocation3 + $0x1]] }
  0x16   :  { %s4707_s9 = sld [smem:[#allocation3 + $0x2]] }
  0x17   :  { %s4709_s0 = sld [smem:[#allocation3 + $0x3]] }
  0x18   :  { %s4711_s10 = sld [smem:[#allocation3 + $0x4]] }
  0x19   :  { %s4713_s11 = sld [smem:[#allocation3 + $0x5]] }
  0x1a LB: > { %v57_v0 = vlaneseq  ;;  %v4645_v1 = vmov 64.0   ;;  %s3984_s13 = sshll.u32 %s4642_s12, 2  ;;  %v81_v22 = vstv %s4703_s30  ;;  %vm1232_vm5 = vcmask 523264   ;;  %s4647_s22 = smov 64   ;;  %s4642_s12 = sphi %s4715_s12, %s56_s12  }
  0x1b   : > { %4568 = vrcp.f32 %v4645_v1  ;;  %v60_v4 = vstv %s3984_s13  ;;  %v83_v23 = vstv %s4705_s8  ;;  %s3023_s23 = scalar_lea.vmem [#allocation2], %s3984_s13  ;;  %s56_s12 = sadd.s32 1, %s4642_s12  }
  0x1c   : > { %v4720_v2 = vshrl.u32 %v57_v0, 7  ;;  %v4722_v3 = vand.u32 127, %v57_v0  ;;  %v86_v28 = vstv %s4707_s9  ;;  %p53_p1 = scmp.ge.s32.totalorder %s56_s12, 16  }
  0x1d   : > { %v88_v29 = vstv %s4709_s0  ;;  %s6697_s24 = sld [smem:[#allocation3 + $0xb]] (%p53_p1)  ;;  %p3717_p2 = scmp.eq.f32.partialorder (%p53_p1), %s4700_s29, 0.0 }
  0x1e   : > { %7419 = vst [vmem:[#allocation12_spill] sm:$0xff] %v4720_v2  ;;  %v4728_v5 = vadd.s32 32, %v4720_v2  ;;  %v4731_v6 = vadd.s32 16, %v4720_v2  ;;  %v61_v7 = vadd.s32 %v60_v4, %v4720_v2  ;;  %v65_v8 = vcvt.s32.f32 %v4722_v3  ;;  %s4650_s30 = smov (%p53_p1), 64  }
  0x1f   : > { %7420 = vst [vmem:[#allocation13_spill] sm:$0xff] %v4722_v3  ;;  %v90_v30 = vstv %s4711_s10  ;;  %v93_v38 = vstv %s4713_s11  ;;  %v4765_v50 = vadd.s32 40, %v4720_v2  ;;  %v4771_v53 = vadd.s32 24, %v4720_v2 }
  0x20   : > { %7421 = vst [vmem:[#allocation14_spill] sm:$0xff] %v4728_v5  ;;  %4357 = vset.pattern.permute.xlu2 %v4728_v5  ;;  %4369 = vset.pattern.permute.xlu0 %v4731_v6  ;;  %v62_v9 = vcvt.s32.f32 %v61_v7  ;;  %v66_v12 = vmul.f32 2.0, %v65_v8  ;;  %v4785_v58 = vadd.s32 56, %v4720_v2  ;;  %v4793_v61 = vadd.s32 48, %v4720_v2 }
  0x21   : > { %7422 = vst [vmem:[#allocation15_spill] sm:$0xff] %v4731_v6  ;;  %v4569_v10 = vpop.eup %4568  ;;  %4355 = vset.pattern.permute.xlu1 %v4731_v6  ;;  %v4814_v4 = vadd.s32 8, %v4720_v2 }
  0x22   : > { %v69_v11 = vmul.f32 64.0, %v4569_v10  ;;  %v77_v13 = vmul.f32 2.0, %v62_v9  ;;  %v67_v16 = vadd.f32 1.0, %v66_v12  ;;  %vm73_vm0 = vweird.f32 %v4569_v10  ;;  %7424 = vst [vmem:[#allocation17_spill] sm:$0xff] %v4765_v50 }
  0x23   : > { %7425 = vst [vmem:[#allocation18_spill] sm:$0xff] %v4771_v53 }
  0x24   : > { %v70_v14 = vsub.f32 1.0, %v69_v11  ;;  %v78_v17 = vadd.f32 1.0, %v77_v13  ;;  %7426 = vst [vmem:[#allocation19_spill] sm:$0xff] %v4785_v58 }
  0x25   : > { %7428 = vst [vmem:[#allocation21_spill] sm:$0xff] %v4793_v61 }
  0x26   : > { %v71_v15 = vmul.f32 %v4569_v10, %v70_v14  ;;  %7431 = vst [vmem:[#allocation24_spill] sm:$0xff] %v4814_v4 }
  0x28   : > { %v72_v18 = vadd.f32 %v4569_v10, %v71_v15 }
  0x2a   : > { %v4738_v19 = vsel %vm73_vm0, %v4569_v10, %v72_v18 }
  0x2b   : > { %7423 = vst [vmem:[#allocation16_spill] sm:$0xff] %v4738_v19  ;;  %v75_v20 = vmul.f32 %v4738_v19, %v67_v16  ;;  %v79_v21 = vmul.f32 %v78_v17, %v4738_v19 }
  0x2d   : > { %v3985_v24 = vadd.f32 -1.0, %v75_v20  ;;  %v3986_v25 = vadd.f32 -1.0, %v79_v21 }
  0x2f   : > { %v82_v26 = vmul.f32 %v3985_v24, %v81_v22  ;;  %v84_v27 = vmul.f32 %v3986_v25, %v83_v23  ;;  %v89_v33 = vmul.f32 %v3985_v24, %v88_v29  ;;  %v91_v34 = vmul.f32 %v3986_v25, %v90_v30 }
  0x31   : > { %v85_v31 = vadd.f32 %v84_v27, %v82_v26  ;;  %v92_v37 = vadd.f32 %v91_v34, %v89_v33 }
  0x33   : > { %v87_v32 = vadd.f32 %v86_v28, %v85_v31  ;;  %v94_v41 = vadd.f32 %v93_v38, %v92_v37 }
  0x35   : > { %v95_v35 = vadd.f32 1.0, %v87_v32  ;;  %v99_v45 = vadd.f32 1.0, %v94_v41 }
  0x37   : > { %v96_v36 = vmul.f32 64.0, %v95_v35  ;;  %v100_v49 = vmul.f32 64.0, %v99_v45 }
  0x39   : > { %v3987_v39 = vadd.f32 -1.0, %v96_v36  ;;  %v3988_v52 = vadd.f32 -1.0, %v100_v49 }
  0x3b   : > { %v98_v40 = vmul.f32 0.5, %v3987_v39  ;;  %v102_v54 = vmul.f32 0.5, %v3988_v52 }
  0x3d   : > { %v103_v42 = vfloor.f32 %v98_v40  ;;  %v104_v56 = vfloor.f32 %v102_v54 }
  0x3f   : > { %v4748_v43 = vcvt.f32.s32 %v103_v42  ;;  %v4750_v44 = vsub.f32 %v98_v40, %v103_v42  ;;  %v4781_v57 = vcvt.f32.s32 %v104_v56  ;;  %v4787_v59 = vsub.f32 %v102_v54, %v104_v56 }
  0x41   : > { %v4753_v46 = vperm.slane %v4748_v43, 2  ;;  %v4756_v47 = vperm.slane %v4748_v43, 0  ;;  %v4761_v48 = vsub.f32 1.0, %v4750_v44  ;;  %v4777_v55 = vperm.slane %v4750_v44, 0 }
  0x42   : > { %v4790_v60 = vperm.slane %v4781_v57, 1  ;;  %v4798_v62 = vsub.f32 1.0, %v4787_v59  ;;  %v4807_v0 = vadd.s32 1, %v4781_v57  ;;  %v4820_v7 = vperm.slane %v4748_v43, 1 }
  0x43   : > { %226 = vperm.xlu0 %4369, %v4753_v46   ;;  %140 = vperm.xlu2 %4357, %v4756_v47   ;;  %v4768_v51 = vperm.slane %v4761_v48, 3  ;;  %v258_v8 = vperm.slane %v4748_v43, 3  ;;  %v4849_v9 = vadd.s32 1, %v4748_v43  ;;  %v4859_v11 = vperm.slane %v4750_v44, 1 }
  0x44   : > { %128 = vperm.xlu1 %4355, %v4756_v47   ;;  %7427 = vst [vmem:[#allocation20_spill] sm:$0xff] %v4790_v60  ;;  %v4802_v63 = vperm.slane %v4798_v62, 2  ;;  %v4811_v1 = vperm.slane %v4807_v0, 3  ;;  %v4865_v12 = vperm.slane %v4781_v57, 2  ;;  %v4871_v13 = vperm.slane %v4798_v62, 3 }
  0x45   : > { %v4853_v10 = vperm.slane %v4849_v9, 0  ;;  %v4875_v14 = vperm.slane %v4787_v59, 0  ;;  %v403_v15 = vperm.slane %v4761_v48, 0  ;;  %v4886_v16 = vperm.slane %v4849_v9, 1 }
  0x46   : > { %7429 = vst [vmem:[#allocation22_spill] sm:$0xff] %v4802_v63  ;;  %v4892_v17 = vperm.slane %v4750_v44, 2  ;;  %v4896_v18 = vperm.slane %v4781_v57, 3  ;;  %v4902_v20 = vperm.slane %v4807_v0, 0  ;;  %v4906_v21 = vperm.slane %v4787_v59, 1 }
  0x47   : > { %7430 = vst [vmem:[#allocation23_spill] sm:$0xff] %v4811_v1  ;;  %v452_v22 = vperm.slane %v4761_v48, 1  ;;  %v4928_v23 = vperm.slane %v4849_v9, 2  ;;  %v4934_v24 = vperm.slane %v4750_v44, 3  ;;  %v4937_v25 = vperm.slane %v4761_v48, 2 }
  0x48   : > { %7432 = vst [vmem:[#allocation25_spill] sm:$0xff] %v4865_v12  ;;  %v4943_v26 = vperm.slane %v4798_v62, 0  ;;  %v4949_v27 = vperm.slane %v4807_v0, 1  ;;  %v4955_v28 = vperm.slane %v4787_v59, 2  ;;  %v4977_v31 = vperm.slane %v4849_v9, 3 }
  0x49   : > { %7433 = vst [vmem:[#allocation26_spill] sm:$0xff] %v4871_v13  ;;  %v4985_v33 = vperm.slane %v4781_v57, 0  ;;  %v4993_v35 = vperm.slane %v4798_v62, 1  ;;  %v4999_v36 = vperm.slane %v4807_v0, 2  ;;  %v5007_v38 = vperm.slane %v4787_v59, 3 }
  0x4a   : > { %7434 = vst [vmem:[#allocation27_spill] sm:$0xff] %v4875_v14 }
  0x4b   : > { %4358 = vset.pattern.permute.xlu2 %v4765_v50  ;;  %567 = vperm.xlu0 %4369, %v4768_v51   ;;  %7435 = vst [vmem:[#allocation28_spill] sm:$0xff] %v4896_v18 }
  0x4c   : > { %4356 = vset.pattern.permute.xlu1 %v4771_v53  ;;  %7436 = vst [vmem:[#allocation29_spill] sm:$0xff] %v4902_v20 }
  0x4d   : > { %7437 = vst [vmem:[#allocation30_spill] sm:$0xff] %v4906_v21 }
  0x4e   : > { %7438 = vst [vmem:[#allocation31_spill] sm:$0xff] %v4943_v26 }
  0x4f   : > { %7439 = vst [vmem:[#allocation32_spill] sm:$0xff] %v4949_v27 }
  0x50   : > { %7440 = vst [vmem:[#allocation33_spill] sm:$0xff] %v4955_v28 }
  0x51   : > { %7443 = vst [vmem:[#allocation36_spill] sm:$0xff] %v4985_v33 }
  0x52   : > { %7445 = vst [vmem:[#allocation38_spill] sm:$0xff] %v4993_v35 }
  0x53   : > { %146 = vperm.xlu2 %4358, %v4756_v47   ;;  %941 = vperm.xlu0 %4369, %v4777_v55   ;;  %7446 = vst [vmem:[#allocation39_spill] sm:$0xff] %v4999_v36 }
  0x54   : > { %134 = vperm.xlu1 %4356, %v4756_v47   ;;  %7448 = vst [vmem:[#allocation41_spill] sm:$0xff] %v5007_v38 }
  0x5b   : > { %4360 = vset.pattern.permute.xlu2 %v4785_v58  ;;  %1439 = vperm.xlu0 %4369, %v4790_v60  }
  0x5c   : > { %4359 = vset.pattern.permute.xlu1 %v4793_v61 }
  0x63   : > { %158 = vperm.xlu2 %4360, %v4756_v47   ;;  %1780 = vperm.xlu0 %4369, %v4802_v63  }
  0x64   : > { %152 = vperm.xlu1 %4359, %v4756_v47  }
  0x6b   : > { %4362 = vset.pattern.permute.xlu2 %v4731_v6  ;;  %2058 = vperm.xlu0 %4369, %v4811_v1  }
  0x6c   : > { %4361 = vset.pattern.permute.xlu1 %v4814_v4 }
  0x73   : > { %177 = vperm.xlu2 %4362, %v4820_v7   ;;  %4530 = vset.pattern.permute.xlu0 %v4785_v58 }
  0x74   : > { %171 = vperm.xlu1 %4361, %v4820_v7  }
  0x7b   : > { %4364 = vset.pattern.permute.xlu2 %v4728_v5  ;;  %256 = vperm.xlu0 %4530, %v4753_v46  }
  0x7c   : > { %4363 = vset.pattern.permute.xlu1 %v4771_v53 }
  0x83   : > { %189 = vperm.xlu2 %4364, %v4820_v7   ;;  %597 = vperm.xlu0 %4530, %v4768_v51  }
  0x84   : > { %183 = vperm.xlu1 %4363, %v4820_v7  }
  0x8b   : > { %4366 = vset.pattern.permute.xlu2 %v4785_v58  ;;  %971 = vperm.xlu0 %4530, %v4777_v55  }
  0x8c   : > { %4365 = vset.pattern.permute.xlu1 %v4793_v61 }
  0x93   : > { %207 = vperm.xlu2 %4366, %v4820_v7   ;;  %1469 = vperm.xlu0 %4530, %v4790_v60  }
  0x94   : > { %201 = vperm.xlu1 %4365, %v4820_v7  }
  0x9b   : > { %4368 = vset.pattern.permute.xlu2 %v4814_v4  ;;  %1810 = vperm.xlu0 %4530, %v4802_v63  }
  0x9c   : > { %4367 = vset.pattern.permute.xlu1 %v4720_v2 }
  0x9d   : > { %v5013_v40 = vpop.permute.xlu2 %140 }
  0x9e   : > { %vm311_vm11 = vcmp.eq.s32.totalorder %v4722_v3, %v5013_v40 }
  0xa3   : > { %220 = vperm.xlu2 %4368, %v4753_v46   ;;  %2088 = vperm.xlu0 %4530, %v4811_v1  }
  0xa4   : > { %214 = vperm.xlu1 %4367, %v4753_v46  }
  0xab   : > { %4371 = vset.pattern.permute.xlu2 %v4728_v5  ;;  %4535 = vset.pattern.permute.xlu0 %v4728_v5 }
  0xac   : > { %4370 = vset.pattern.permute.xlu1 %v4771_v53 }
  0xad   : > { %v5018_v41 = vpop.permute.xlu2 %146 }
  0xae   : > { %vm312_vm12 = vcmp.eq.s32.totalorder %v4722_v3, %v5018_v41 }
  0xb3   : > { %238 = vperm.xlu2 %4371, %v4753_v46   ;;  %287 = vperm.xlu0 %4535, %v258_v8  }
  0xb4   : > { %232 = vperm.xlu1 %4370, %v4753_v46  }
  0xb5   : > { %v4966_v29 = vpop.permute.xlu0 %226 }
  0xb6   : > { %7441 = vst [vmem:[#allocation34_spill] sm:$0xff] %v4966_v29  ;;  %v5028_v44 = vpop.permute.xlu1 %128 }
  0xb7   : > { %vm309_vm7 = vcmp.eq.s32.totalorder %v4722_v3, %v5028_v44 }
  0xbb   : > { %4373 = vset.pattern.permute.xlu2 %v4793_v61  ;;  %661 = vperm.xlu0 %4535, %v4853_v10  }
  0xbc   : > { %4372 = vset.pattern.permute.xlu1 %v4765_v50 }
  0xbd   : > { %v4971_v30 = vpop.permute.xlu0 %567  ;;  %v5025_v43 = vpop.permute.xlu2 %158 }
  0xbe   : > { %7442 = vst [vmem:[#allocation35_spill] sm:$0xff] %v4971_v30 }
  0xc3   : > { %250 = vperm.xlu2 %4373, %v4753_v46   ;;  %1002 = vperm.xlu0 %4535, %v4859_v11  }
  0xc4   : > { %244 = vperm.xlu1 %4372, %v4753_v46  }
  0xc5   : > { %v4981_v32 = vpop.permute.xlu0 %941 }
  0xcb   : > { %4375 = vset.pattern.permute.xlu2 %v4814_v4  ;;  %1500 = vperm.xlu0 %4535, %v4865_v12  }
  0xcc   : > { %4374 = vset.pattern.permute.xlu1 %v4720_v2 }
  0xcd   : > { %v4990_v34 = vpop.permute.xlu0 %1439  ;;  %v5034_v46 = vpop.permute.xlu2 %177 }
  0xce   : > { %7444 = vst [vmem:[#allocation37_spill] sm:$0xff] %v4990_v34 }
  0xd3   : > { %269 = vperm.xlu2 %4375, %v258_v8   ;;  %1841 = vperm.xlu0 %4535, %v4871_v13  }
  0xd4   : > { %263 = vperm.xlu1 %4374, %v258_v8  }
  0xd5   : > { %v5001_v37 = vpop.permute.xlu0 %1780 }
  0xd6   : > { %7447 = vst [vmem:[#allocation40_spill] sm:$0xff] %v5001_v37 }
  0xdb   : > { %4377 = vset.pattern.permute.xlu2 %v4771_v53  ;;  %2215 = vperm.xlu0 %4535, %v4875_v14  }
  0xdc   : > { %4376 = vset.pattern.permute.xlu1 %v4731_v6 }
  0xdd   : > { %v5009_v39 = vpop.permute.xlu0 %2058  ;;  %v5043_v49 = vpop.permute.xlu2 %189 }
  0xde   : > { %7449 = vst [vmem:[#allocation42_spill] sm:$0xff] %v5009_v39 }
  0xdf   : > { %7452 = vst [vmem:[#allocation45_spill] sm:$0xff] %v5043_v49 }
  0xe3   : > { %281 = vperm.xlu2 %4377, %v258_v8   ;;  %4540 = vset.pattern.permute.xlu0 %v4814_v4 }
  0xe4   : > { %275 = vperm.xlu1 %4376, %v258_v8  }
  0xeb   : > { %4379 = vset.pattern.permute.xlu2 %v4793_v61  ;;  %122 = vperm.xlu0 %4540, %v4756_v47  }
  0xec   : > { %4378 = vset.pattern.permute.xlu1 %v4765_v50 }
  0xed   : > { %v5020_v42 = vpop.permute.xlu0 %256  ;;  %v5052_v54 = vpop.permute.xlu2 %207 }
  0xee   : > { %7450 = vst [vmem:[#allocation43_spill] sm:$0xff] %v5020_v42 }
  0xef   : > { %7454 = vst [vmem:[#allocation47_spill] sm:$0xff] %v5052_v54 }
  0xf3   : > { %299 = vperm.xlu2 %4379, %v258_v8   ;;  %414 = vperm.xlu0 %4540, %v403_v15  }
  0xf4   : > { %293 = vperm.xlu1 %4378, %v258_v8  }
  0xf5   : > { %v5030_v45 = vpop.permute.xlu0 %597 }
  0xf6   : > { %7451 = vst [vmem:[#allocation44_spill] sm:$0xff] %v5030_v45 }
  0xfb   : > { %4381 = vset.pattern.permute.xlu2 %v4720_v2  ;;  %692 = vperm.xlu0 %4540, %v4886_v16  }
  0xfc   : > { %4380 = vset.pattern.permute.xlu1 %v4785_v58 }
  0xfd   : > { %v5039_v48 = vpop.permute.xlu0 %971  ;;  %v5059_v57 = vpop.permute.xlu2 %220 }
 0x103   : > { %1033 = vperm.xlu0 %4540, %v4892_v17   ;;  %408 = vperm.xlu2 %4381, %v403_v15  }
 0x104   : > { %305 = vperm.xlu1 %4380, %v258_v8  }
 0x105   : > { %v5048_v52 = vpop.permute.xlu0 %1469 }
 0x106   : > { %7453 = vst [vmem:[#allocation46_spill] sm:$0xff] %v5048_v52 }
 0x10b   : > { %1531 = vperm.xlu0 %4540, %v4896_v18   ;;  %4383 = vset.pattern.permute.xlu2 %v4771_v53 }
 0x10c   : > { %4382 = vset.pattern.permute.xlu1 %v4731_v6 }
 0x10d   : > { %v5061_v59 = vpop.permute.xlu0 %1810  ;;  %v5068_v0 = vpop.permute.xlu2 %238 }
 0x10e   : > { %7455 = vst [vmem:[#allocation48_spill] sm:$0xff] %v5061_v59 }
 0x10f   : > { %7456 = vst [vmem:[#allocation49_spill] sm:$0xff] %v5068_v0 }
 0x113   : > { %1905 = vperm.xlu0 %4540, %v4902_v20   ;;  %426 = vperm.xlu2 %4383, %v403_v15  }
 0x114   : > { %420 = vperm.xlu1 %4382, %v403_v15  }
 0x115   : > { %v5073_v8 = vpop.permute.xlu0 %2088 }
 0x116   : > { %7458 = vst [vmem:[#allocation51_spill] sm:$0xff] %v5073_v8 }
 0x11b   : > { %2246 = vperm.xlu0 %4540, %v4906_v21   ;;  %4385 = vset.pattern.permute.xlu2 %v4765_v50 }
 0x11c   : > { %4384 = vset.pattern.permute.xlu1 %v4728_v5 }
 0x11d   : > { %v5077_v9 = vpop.permute.xlu2 %250 }
 0x11e   : > { %7459 = vst [vmem:[#allocation52_spill] sm:$0xff] %v5077_v9 }
 0x123   : > { %4545 = vset.pattern.permute.xlu0 %v4793_v61  ;;  %438 = vperm.xlu2 %4385, %v403_v15  }
 0x124   : > { %432 = vperm.xlu1 %4384, %v403_v15  }
 0x12b   : > { %444 = vperm.xlu0 %4545, %v403_v15   ;;  %4387 = vset.pattern.permute.xlu2 %v4720_v2 }
 0x12c   : > { %4386 = vset.pattern.permute.xlu1 %v4785_v58 }
 0x133   : > { %722 = vperm.xlu0 %4545, %v4886_v16   ;;  %457 = vperm.xlu2 %4387, %v452_v22  }
 0x134   : > { %450 = vperm.xlu1 %4386, %v403_v15   ;;  %v5082_v15 = vpop.permute.xlu0 %287 }
 0x135   : > { %7460 = vst [vmem:[#allocation53_spill] sm:$0xff] %v5082_v15 }
 0x13b   : > { %1063 = vperm.xlu0 %4545, %v4892_v17   ;;  %4389 = vset.pattern.permute.xlu2 %v4731_v6 }
 0x13c   : > { %4388 = vset.pattern.permute.xlu1 %v4814_v4  ;;  %v5091_v19 = vpop.permute.xlu0 %661 }
 0x13d   : > { %vm832_vm10 = vcmp.eq.s32.totalorder %v4722_v3, %v5091_v19 }
 0x143   : > { %1561 = vperm.xlu0 %4545, %v4896_v18   ;;  %469 = vperm.xlu2 %4389, %v452_v22  }
 0x144   : > { %463 = vperm.xlu1 %4388, %v452_v22   ;;  %v5100_v59 = vpop.permute.xlu0 %1002 }
 0x145   : > { %7465 = vst [vmem:[#allocation58_spill] sm:$0xff] %v5100_v59 }
 0x14b   : > { %1935 = vperm.xlu0 %4545, %v4902_v20   ;;  %4391 = vset.pattern.permute.xlu2 %v4765_v50 }
 0x14c   : > { %4390 = vset.pattern.permute.xlu1 %v4728_v5 }
 0x153   : > { %2276 = vperm.xlu0 %4545, %v4906_v21   ;;  %487 = vperm.xlu2 %4391, %v452_v22  }
 0x154   : > { %481 = vperm.xlu1 %4390, %v452_v22  }
 0x15b   : > { %4550 = vset.pattern.permute.xlu0 %v4771_v53  ;;  %4393 = vset.pattern.permute.xlu2 %v4785_v58 }
 0x15c   : > { %4392 = vset.pattern.permute.xlu1 %v4793_v61 }
 0x163   : > { %475 = vperm.xlu0 %4550, %v452_v22   ;;  %499 = vperm.xlu2 %4393, %v452_v22  }
 0x164   : > { %493 = vperm.xlu1 %4392, %v452_v22   ;;  %v5086_v22 = vpop.permute.xlu2 %269 }
 0x165   : > { %7461 = vst [vmem:[#allocation54_spill] sm:$0xff] %v5086_v22 }
 0x16b   : > { %753 = vperm.xlu0 %4550, %v4928_v23   ;;  %4395 = vset.pattern.permute.xlu2 %v4731_v6 }
 0x16c   : > { %4394 = vset.pattern.permute.xlu1 %v4814_v4  ;;  %v5094_v8 = vpop.permute.xlu2 %281 }
 0x16d   : > { %7463 = vst [vmem:[#allocation56_spill] sm:$0xff] %v5094_v8 }
 0x173   : > { %1094 = vperm.xlu0 %4550, %v4934_v24   ;;  %518 = vperm.xlu2 %4395, %v4937_v25  }
 0x174   : > { %512 = vperm.xlu1 %4394, %v4937_v25   ;;  %v5102_v34 = vpop.permute.xlu2 %299 }
 0x175   : > { %7466 = vst [vmem:[#allocation59_spill] sm:$0xff] %v5102_v34 }
 0x17b   : > { %1688 = vperm.xlu0 %4550, %v4943_v26   ;;  %4397 = vset.pattern.permute.xlu2 %v4728_v5 }
 0x17c   : > { %4396 = vset.pattern.permute.xlu1 %v4771_v53  ;;  %v5108_v52 = vpop.permute.xlu2 %408 }
 0x183   : > { %1966 = vperm.xlu0 %4550, %v4949_v27   ;;  %530 = vperm.xlu2 %4397, %v4937_v25  }
 0x184   : > { %524 = vperm.xlu1 %4396, %v4937_v25   ;;  %v5119_v14 = vpop.permute.xlu2 %426 }
 0x18b   : > { %2307 = vperm.xlu0 %4550, %v4955_v28   ;;  %4399 = vset.pattern.permute.xlu2 %v4785_v58 }
 0x18c   : > { %4398 = vset.pattern.permute.xlu1 %v4793_v61 }
 0x193   : > { %4555 = vset.pattern.permute.xlu0 %v4720_v2  ;;  %548 = vperm.xlu2 %4399, %v4937_v25  }
 0x194   : > { %542 = vperm.xlu1 %4398, %v4937_v25  }
 0x19b   : > { %116 = vperm.xlu0 %4555, %v4756_v47   ;;  %4401 = vset.pattern.permute.xlu2 %v4814_v4  ;;  %v5037_v47 = vpop.permute.xlu1 %134 }
 0x19c   : > { %4400 = vset.pattern.permute.xlu1 %v4720_v2  ;;  %vm310_vm8 = vcmp.eq.s32.totalorder %v4722_v3, %v5037_v47 }
 0x1a3   : > { %165 = vperm.xlu0 %4555, %v4820_v7   ;;  %561 = vperm.xlu2 %4401, %v4768_v51  }
 0x1a4   : > { %555 = vperm.xlu1 %4400, %v4768_v51  }
 0x1ab   : > { %506 = vperm.xlu0 %4555, %v4937_v25   ;;  %4403 = vset.pattern.permute.xlu2 %v4728_v5 }
 0x1ac   : > { %4402 = vset.pattern.permute.xlu1 %v4771_v53 }
 0x1b3   : > { %784 = vperm.xlu0 %4555, %v4977_v31   ;;  %579 = vperm.xlu2 %4403, %v4768_v51  }
 0x1b4   : > { %573 = vperm.xlu1 %4402, %v4768_v51  }
 0x1bb   : > { %1378 = vperm.xlu0 %4555, %v4985_v33   ;;  %4405 = vset.pattern.permute.xlu2 %v4793_v61 }
 0x1bc   : > { %4404 = vset.pattern.permute.xlu1 %v4765_v50 }
 0x1c3   : > { %1719 = vperm.xlu0 %4555, %v4993_v35   ;;  %591 = vperm.xlu2 %4405, %v4768_v51  }
 0x1c4   : > { %585 = vperm.xlu1 %4404, %v4768_v51   ;;  %v5046_v51 = vpop.permute.xlu1 %152 }
 0x1cb   : > { %1997 = vperm.xlu0 %4555, %v4999_v36   ;;  %4407 = vset.pattern.permute.xlu2 %v4814_v4 }
 0x1cc   : > { %4406 = vset.pattern.permute.xlu1 %v4720_v2  ;;  %v5055_v56 = vpop.permute.xlu1 %171 }
 0x1d3   : > { %2338 = vperm.xlu0 %4555, %v5007_v38   ;;  %643 = vperm.xlu2 %4407, %v4853_v10  }
 0x1d4   : > { %637 = vperm.xlu1 %4406, %v4853_v10   ;;  %v5064_v62 = vpop.permute.xlu1 %183 }
 0x1db   : > { %4560 = vset.pattern.permute.xlu0 %v4765_v50  ;;  %4409 = vset.pattern.permute.xlu2 %v4771_v53 }
 0x1dc   : > { %4408 = vset.pattern.permute.xlu1 %v4731_v6 }
 0x1e3   : > { %195 = vperm.xlu0 %4560, %v4820_v7   ;;  %655 = vperm.xlu2 %4409, %v4853_v10   ;;  %v5071_v7 = vpop.permute.xlu1 %201 }
 0x1e4   : > { %649 = vperm.xlu1 %4408, %v4853_v10   ;;  %7457 = vst [vmem:[#allocation50_spill] sm:$0xff] %v5071_v7 }
 0x1eb   : > { %536 = vperm.xlu0 %4560, %v4937_v25   ;;  %4411 = vset.pattern.permute.xlu2 %v4793_v61 }
 0x1ec   : > { %4410 = vset.pattern.permute.xlu1 %v4765_v50 }
 0x1f3   : > { %673 = vperm.xlu2 %4411, %v4853_v10   ;;  %814 = vperm.xlu0 %4560, %v4977_v31  }
 0x1f4   : > { %667 = vperm.xlu1 %4410, %v4853_v10  }
 0x1fb   : > { %4413 = vset.pattern.permute.xlu2 %v4720_v2  ;;  %1408 = vperm.xlu0 %4560, %v4985_v33  }
 0x1fc   : > { %4412 = vset.pattern.permute.xlu1 %v4785_v58 }
 0x203   : > { %686 = vperm.xlu2 %4413, %v4886_v16   ;;  %1749 = vperm.xlu0 %4560, %v4993_v35  }
 0x204   : > { %679 = vperm.xlu1 %4412, %v4853_v10   ;;  %v5080_v10 = vpop.permute.xlu1 %214 }
 0x20b   : > { %4415 = vset.pattern.permute.xlu2 %v4771_v53  ;;  %2027 = vperm.xlu0 %4560, %v4999_v36  }
 0x20c   : > { %4414 = vset.pattern.permute.xlu1 %v4731_v6  ;;  %v5089_v25 = vpop.permute.xlu1 %232 }
 0x20d   : > { %7462 = vst [vmem:[#allocation55_spill] sm:$0xff] %v5089_v25 }
 0x213   : > { %704 = vperm.xlu2 %4415, %v4886_v16   ;;  %2368 = vperm.xlu0 %4560, %v5007_v38   ;;  %v5111_v38 = vpop.permute.xlu0 %1500 }
 0x214   : > { %698 = vperm.xlu1 %4414, %v4886_v16   ;;  %v5097_v39 = vpop.permute.xlu1 %244  ;;  %7468 = vst [vmem:[#allocation61_spill] sm:$0xff] %v5111_v38 }
 0x215   : > { %7464 = vst [vmem:[#allocation57_spill] sm:$0xff] %v5097_v39 }
 0x21b   : > { %4417 = vset.pattern.permute.xlu2 %v4765_v50  ;;  %4567 = vset.pattern.permute.xlu0 %v4785_v58  ;;  %v5121_v1 = vpop.permute.xlu0 %1841 }
 0x21c   : > { %4416 = vset.pattern.permute.xlu1 %v4728_v5  ;;  %v5105_v37 = vpop.permute.xlu1 %263  ;;  %7471 = vst [vmem:[#allocation64_spill] sm:$0xff] %v5121_v1 }
 0x21d   : > { %7467 = vst [vmem:[#allocation60_spill] sm:$0xff] %v5105_v37 }
 0x223   : > { %716 = vperm.xlu2 %4417, %v4886_v16   ;;  %v5129_v38 = vpop.permute.xlu0 %2215 }
 0x224   : > { %710 = vperm.xlu1 %4416, %v4886_v16   ;;  %v5113_v28 = vpop.permute.xlu1 %275  ;;  %7473 = vst [vmem:[#allocation66_spill] sm:$0xff] %v5129_v38 }
 0x225   : > { %7469 = vst [vmem:[#allocation62_spill] sm:$0xff] %v5113_v28 }
 0x22b   : > { %4419 = vset.pattern.permute.xlu2 %v4720_v2  ;;  %v5138_v1 = vpop.permute.xlu0 %122 }
 0x22c   : > { %4418 = vset.pattern.permute.xlu1 %v4785_v58  ;;  %v5117_v21 = vpop.permute.xlu1 %293  ;;  %vm308_vm1 = vcmp.eq.s32.totalorder %v4722_v3, %v5138_v1 }
 0x22d   : > { %7470 = vst [vmem:[#allocation63_spill] sm:$0xff] %v5117_v21 }
 0x233   : > { %735 = vperm.xlu2 %4419, %v4928_v23   ;;  %v5147_v38 = vpop.permute.xlu0 %414 }
 0x234   : > { %728 = vperm.xlu1 %4418, %v4886_v16   ;;  %v5125_v36 = vpop.permute.xlu1 %305  ;;  %v5127_v16 = vpop.permute.xlu2 %438 }
 0x235   : > { %7472 = vst [vmem:[#allocation65_spill] sm:$0xff] %v5125_v36 }
 0x23b   : > { %4421 = vset.pattern.permute.xlu2 %v4731_v6  ;;  %v5157_v45 = vpop.permute.xlu0 %692 }
 0x23c   : > { %4420 = vset.pattern.permute.xlu1 %v4814_v4  ;;  %v5133_v27 = vpop.permute.xlu1 %420  ;;  %v5135_v20 = vpop.permute.xlu2 %457  ;;  %vm837_vm14 = vcmp.eq.s32.totalorder %v4722_v3, %v5157_v45 }
 0x243   : > { %747 = vperm.xlu2 %4421, %v4928_v23   ;;  %v5165_v12 = vpop.permute.xlu0 %1033 }
 0x244   : > { %741 = vperm.xlu1 %4420, %v4928_v23   ;;  %v5141_v13 = vpop.permute.xlu1 %432  ;;  %v5143_v63 = vpop.permute.xlu2 %469 }
 0x24b   : > { %4423 = vset.pattern.permute.xlu2 %v4765_v50  ;;  %v5174_v15 = vpop.permute.xlu0 %1531 }
 0x24c   : > { %4422 = vset.pattern.permute.xlu1 %v4728_v5  ;;  %v5149_v35 = vpop.permute.xlu1 %450  ;;  %v5151_v26 = vpop.permute.xlu2 %487  ;;  %7479 = vst [vmem:[#allocation72_spill] sm:$0xff] %v5174_v15 }
 0x24d   : > { %7474 = vst [vmem:[#allocation67_spill] sm:$0xff] %v5151_v26 }
 0x253   : > { %765 = vperm.xlu2 %4423, %v4928_v23   ;;  %v5185_v37 = vpop.permute.xlu0 %1905 }
 0x254   : > { %759 = vperm.xlu1 %4422, %v4928_v23   ;;  %v5155_v18 = vpop.permute.xlu1 %463  ;;  %v5159_v36 = vpop.permute.xlu2 %499  ;;  %7482 = vst [vmem:[#allocation75_spill] sm:$0xff] %v5185_v37 }
 0x255   : > { %7475 = vst [vmem:[#allocation68_spill] sm:$0xff] %v5159_v36 }
 0x25b   : > { %4425 = vset.pattern.permute.xlu2 %v4785_v58  ;;  %v5195_v9 = vpop.permute.xlu0 %2246 }
 0x25c   : > { %4424 = vset.pattern.permute.xlu1 %v4793_v61  ;;  %v5163_v34 = vpop.permute.xlu1 %481  ;;  %v5167_v21 = vpop.permute.xlu2 %518  ;;  %7486 = vst [vmem:[#allocation79_spill] sm:$0xff] %v5195_v9 }
 0x25d   : > { %7476 = vst [vmem:[#allocation69_spill] sm:$0xff] %v5163_v34 }
 0x25e   : > { %7477 = vst [vmem:[#allocation70_spill] sm:$0xff] %v5167_v21 }
 0x263   : > { %777 = vperm.xlu2 %4425, %v4928_v23   ;;  %v5203_v37 = vpop.permute.xlu0 %444 }
 0x264   : > { %771 = vperm.xlu1 %4424, %v4928_v23   ;;  %v5171_v23 = vpop.permute.xlu1 %493  ;;  %v5176_v30 = vpop.permute.xlu2 %530 }
 0x265   : > { %7478 = vst [vmem:[#allocation71_spill] sm:$0xff] %v5171_v23 }
 0x266   : > { %7480 = vst [vmem:[#allocation73_spill] sm:$0xff] %v5176_v30 }
 0x26b   : > { %4427 = vset.pattern.permute.xlu2 %v4731_v6 }
 0x26c   : > { %4426 = vset.pattern.permute.xlu1 %v4814_v4  ;;  %v5179_v8 = vpop.permute.xlu1 %512  ;;  %v5182_v28 = vpop.permute.xlu2 %548 }
 0x26d   : > { %7481 = vst [vmem:[#allocation74_spill] sm:$0xff] %v5182_v28 }
 0x273   : > { %796 = vperm.xlu2 %4427, %v4977_v31  }
 0x274   : > { %790 = vperm.xlu1 %4426, %v4977_v31   ;;  %v5187_v22 = vpop.permute.xlu1 %524  ;;  %v5191_v15 = vpop.permute.xlu2 %561 }
 0x275   : > { %7483 = vst [vmem:[#allocation76_spill] sm:$0xff] %v5187_v22 }
 0x276   : > { %7484 = vst [vmem:[#allocation77_spill] sm:$0xff] %v5191_v15 }
 0x27b   : > { %4429 = vset.pattern.permute.xlu2 %v4728_v5 }
 0x27c   : > { %4428 = vset.pattern.permute.xlu1 %v4771_v53  ;;  %v5193_v60 = vpop.permute.xlu1 %542  ;;  %v5201_v42 = vpop.permute.xlu2 %579 }
 0x27d   : > { %7485 = vst [vmem:[#allocation78_spill] sm:$0xff] %v5193_v60  ;;  %v5211_v60 = vpop.permute.xlu0 %722 }
 0x27e   : > { %7488 = vst [vmem:[#allocation81_spill] sm:$0xff] %v5201_v42 }
 0x27f   : > { %7491 = vst [vmem:[#allocation84_spill] sm:$0xff] %v5211_v60 }
 0x283   : > { %808 = vperm.xlu2 %4429, %v4977_v31  }
 0x284   : > { %802 = vperm.xlu1 %4428, %v4977_v31   ;;  %v5199_v28 = vpop.permute.xlu1 %555  ;;  %v5209_v15 = vpop.permute.xlu2 %591 }
 0x285   : > { %7487 = vst [vmem:[#allocation80_spill] sm:$0xff] %v5199_v28  ;;  %v5220_v42 = vpop.permute.xlu0 %1063 }
 0x286   : > { %7490 = vst [vmem:[#allocation83_spill] sm:$0xff] %v5209_v15 }
 0x287   : > { %7493 = vst [vmem:[#allocation86_spill] sm:$0xff] %v5220_v42 }
 0x28b   : > { %4431 = vset.pattern.permute.xlu2 %v4785_v58 }
 0x28c   : > { %4430 = vset.pattern.permute.xlu1 %v4793_v61  ;;  %v5207_v30 = vpop.permute.xlu1 %573  ;;  %v5217_v9 = vpop.permute.xlu2 %643 }
 0x28d   : > { %7489 = vst [vmem:[#allocation82_spill] sm:$0xff] %v5207_v30  ;;  %v5229_v15 = vpop.permute.xlu0 %1561  ;;  %vm829_vm3 = vcmp.eq.s32.totalorder %v4722_v3, %v5217_v9 }
 0x28e   : > { %7494 = vst [vmem:[#allocation87_spill] sm:$0xff] %v5229_v15 }
 0x293   : > { %826 = vperm.xlu2 %4431, %v4977_v31  }
 0x294   : > { %820 = vperm.xlu1 %4430, %v4977_v31   ;;  %v5215_v31 = vpop.permute.xlu1 %585  ;;  %v5225_v30 = vpop.permute.xlu2 %655 }
 0x295   : > { %7492 = vst [vmem:[#allocation85_spill] sm:$0xff] %v5215_v31  ;;  %v5239_v0 = vpop.permute.xlu0 %1935  ;;  %vm831_vm9 = vcmp.eq.s32.totalorder %v4722_v3, %v5225_v30 }
 0x296   : > { %7495 = vst [vmem:[#allocation88_spill] sm:$0xff] %v5239_v0 }
 0x29b   : > { %4433 = vset.pattern.permute.xlu2 %v4814_v4 }
 0x29c   : > { %4432 = vset.pattern.permute.xlu1 %v4720_v2  ;;  %v5223_v28 = vpop.permute.xlu1 %637  ;;  %v5233_v31 = vpop.permute.xlu2 %673 }
 0x29d   : > { %v5249_v25 = vpop.permute.xlu0 %2276  ;;  %vm828_vm4 = vcmp.eq.s32.totalorder %v4722_v3, %v5223_v28  ;;  %vm834_vm15 = vcmp.eq.s32.totalorder %v4722_v3, %v5233_v31 }
 0x29e   : > { %7496 = vst [vmem:[#allocation89_spill] sm:$0xff] %v5249_v25 }
 0x2a3   : > { %935 = vperm.xlu2 %4433, %v4777_v55  }
 0x2a4   : > { %929 = vperm.xlu1 %4432, %v4777_v55   ;;  %v5231_v39 = vpop.permute.xlu1 %649  ;;  %v5241_v22 = vpop.permute.xlu2 %686 }
 0x2a5   : > { %v5258_v0 = vpop.permute.xlu0 %475  ;;  %vm830_vm6 = vcmp.eq.s32.totalorder %v4722_v3, %v5231_v39 }
 0x2ab   : > { %4435 = vset.pattern.permute.xlu2 %v4728_v5 }
 0x2ac   : > { %4434 = vset.pattern.permute.xlu1 %v4771_v53  ;;  %v5237_v42 = vpop.permute.xlu1 %667  ;;  %v5247_v15 = vpop.permute.xlu2 %704 }
 0x2ad   : > { %v5266_v25 = vpop.permute.xlu0 %753  ;;  %vm833_vm13 = vcmp.eq.s32.totalorder %v4722_v3, %v5237_v42 }
 0x2ae   : > { %7499 = vst [vmem:[#allocation92_spill] sm:$0xff] %v5266_v25  ;;  %v4289_v25 = vld [vmem:[%s7347_s1 + $0x18] sm:$0xff] }
 0x2af   : > { %1285 = vmatpush.bf16.msra.mxu0 %v4289_v25  ;;  %4290 = vmatpush.bf16.msra.mxu1 %v4289_v25 }
 0x2b0   : > { %4291 = vmatpush.bf16.msra.mxu2 %v4289_v25  ;;  %4292 = vmatpush.bf16.msra.mxu3 %v4289_v25 }
 0x2b3   : > { %953 = vperm.xlu2 %4435, %v4777_v55  }
 0x2b4   : > { %947 = vperm.xlu1 %4434, %v4777_v55   ;;  %v5245_v21 = vpop.permute.xlu1 %679  ;;  %v5255_v23 = vpop.permute.xlu2 %716 }
 0x2b5   : > { %7497 = vst [vmem:[#allocation90_spill] sm:$0xff] %v5255_v23  ;;  %v5275_v54 = vpop.permute.xlu0 %1094  ;;  %vm835_vm0 = vcmp.eq.s32.totalorder %v4722_v3, %v5245_v21 }
 0x2b6   : > { %7502 = vst [vmem:[#allocation95_spill] sm:$0xff] %v5275_v54 }
 0x2bb   : > { %4437 = vset.pattern.permute.xlu2 %v4793_v61 }
 0x2bc   : > { %4436 = vset.pattern.permute.xlu1 %v4765_v50  ;;  %v5253_v29 = vpop.permute.xlu1 %698  ;;  %v5263_v36 = vpop.permute.xlu2 %735 }
 0x2c3   : > { %965 = vperm.xlu2 %4437, %v4777_v55  }
 0x2c4   : > { %959 = vperm.xlu1 %4436, %v4777_v55   ;;  %v5261_v55 = vpop.permute.xlu1 %710  ;;  %v5271_v7 = vpop.permute.xlu2 %747 }
 0x2c5   : > { %7498 = vst [vmem:[#allocation91_spill] sm:$0xff] %v5261_v55 }
 0x2c6   : > { %7501 = vst [vmem:[#allocation94_spill] sm:$0xff] %v5271_v7  ;;  %v5288_v7 = vpop.permute.xlu0 %1688 }
 0x2c7   : > { %7505 = vst [vmem:[#allocation98_spill] sm:$0xff] %v5288_v7 }
 0x2cb   : > { %4439 = vset.pattern.permute.xlu2 %v4814_v4 }
 0x2cc   : > { %4438 = vset.pattern.permute.xlu1 %v4720_v2  ;;  %v5269_v33 = vpop.permute.xlu1 %728  ;;  %v5279_v26 = vpop.permute.xlu2 %765 }
 0x2cd   : > { %7500 = vst [vmem:[#allocation93_spill] sm:$0xff] %v5269_v33 }
 0x2ce   : > { %7503 = vst [vmem:[#allocation96_spill] sm:$0xff] %v5279_v26  ;;  %v4288_v26 = vld [vmem:[%s7347_s1 + $0x10] sm:$0xff]  ;;  %v5307_v34 = vpop.permute.xlu0 %1966 }
 0x2cf   : > { %1286 = vmatpush.bf16.msra.mxu0 %v4288_v26  ;;  %4293 = vmatpush.bf16.msra.mxu1 %v4288_v26  ;;  %7509 = vst [vmem:[#allocation102_spill] sm:$0xff] %v5307_v34 }
 0x2d0   : > { %4294 = vmatpush.bf16.msra.mxu2 %v4288_v26  ;;  %4295 = vmatpush.bf16.msra.mxu3 %v4288_v26 }
 0x2d3   : > { %984 = vperm.xlu2 %4439, %v4859_v11  }
 0x2d4   : > { %978 = vperm.xlu1 %4438, %v4859_v11   ;;  %v5277_v60 = vpop.permute.xlu1 %741  ;;  %v5290_v54 = vpop.permute.xlu2 %777 }
 0x2d5   : > { %7506 = vst [vmem:[#allocation99_spill] sm:$0xff] %v5290_v54  ;;  %v4286_v54 = vld [vmem:[%s7347_s1] sm:$0xff] }
 0x2db   : > { %4441 = vset.pattern.permute.xlu2 %v4771_v53 }
 0x2dc   : > { %4440 = vset.pattern.permute.xlu1 %v4731_v6  ;;  %v5286_v33 = vpop.permute.xlu1 %759  ;;  %v5302_v7 = vpop.permute.xlu2 %796 }
 0x2dd   : > { %7504 = vst [vmem:[#allocation97_spill] sm:$0xff] %v5286_v33  ;;  %v4287_v33 = vld [vmem:[%s7347_s1 + $0x8] sm:$0xff]  ;;  %s6737_s1 = sld [smem:[#allocation3 + $0x8]] (%p53_p1) }
 0x2de   : > { %1287 = vmatpush.bf16.msra.mxu0 %v4287_v33  ;;  %4296 = vmatpush.bf16.msra.mxu1 %v4287_v33  ;;  %7508 = vst [vmem:[#allocation101_spill] sm:$0xff] %v5302_v7  ;;  %v5316_v7 = vpop.permute.xlu0 %2307 }
 0x2df   : > { %4297 = vmatpush.bf16.msra.mxu2 %v4287_v33  ;;  %4298 = vmatpush.bf16.msra.mxu3 %v4287_v33  ;;  %7512 = vst [vmem:[#allocation105_spill] sm:$0xff] %v5316_v7 }
 0x2e2   : > { %1288 = vmatpush.bf16.msra.mxu0 %v4286_v54  ;;  %4299 = vmatpush.bf16.msra.mxu1 %v4286_v54 }
 0x2e3   : > { %996 = vperm.xlu2 %4441, %v4859_v11   ;;  %4300 = vmatpush.bf16.msra.mxu2 %v4286_v54 }
 0x2e4   : > { %990 = vperm.xlu1 %4440, %v4859_v11   ;;  %v5300_v25 = vpop.permute.xlu1 %771  ;;  %4301 = vmatpush.bf16.msra.mxu3 %v4286_v54 }
 0x2e5   : > { %7507 = vst [vmem:[#allocation100_spill] sm:$0xff] %v5300_v25  ;;  %v5313_v25 = vpop.permute.xlu2 %808 }
 0x2e6   : > { %7511 = vst [vmem:[#allocation104_spill] sm:$0xff] %v5313_v25  ;;  %v117_v59 = vpop.permute.xlu0 %116 }
 0x2e7   : > { %vm307_vm2 = vcmp.eq.s32.totalorder %v4722_v3, %v117_v59 }
 0x2eb   : > { %4443 = vset.pattern.permute.xlu2 %v4793_v61 }
 0x2ec   : > { %4442 = vset.pattern.permute.xlu1 %v4765_v50  ;;  %v5311_v26 = vpop.permute.xlu1 %790 }
 0x2ed   : > { %7510 = vst [vmem:[#allocation103_spill] sm:$0xff] %v5311_v26  ;;  %v5321_v34 = vpop.permute.xlu2 %826 }
 0x2ee   : > { %7514 = vst [vmem:[#allocation107_spill] sm:$0xff] %v5321_v34  ;;  %v5342_v28 = vpop.permute.xlu0 %165 }
 0x2f3   : > { %1014 = vperm.xlu2 %4443, %v4859_v11  }
 0x2f4   : > { %1008 = vperm.xlu1 %4442, %v4859_v11  }
 0x2f6   : > { %v5319_v33 = vpop.permute.xlu1 %802 }
 0x2f7   : > { %7513 = vst [vmem:[#allocation106_spill] sm:$0xff] %v5319_v33 }
 0x2fb   : > { %4445 = vset.pattern.permute.xlu2 %v4720_v2 }
 0x2fc   : > { %4444 = vset.pattern.permute.xlu1 %v4785_v58 }
 0x2fd   : > { %v936_v25 = vpop.permute.xlu2 %935 }
 0x303   : > { %1027 = vperm.xlu2 %4445, %v4892_v17  }
 0x304   : > { %1020 = vperm.xlu1 %4444, %v4859_v11   ;;  %v7393_v11 = vmov 0.0  }
 0x305   : > { %v3990_v7 = vsel %vm308_vm1, 1.0, %v7393_v11  ;;  %v3989_v34 = vsel %vm307_vm2, 1.0, %v7393_v11  ;;  %v4021_v9 = vsel %vm828_vm4, 1.0, %v7393_v11  ;;  %v3992_v39 = vsel %vm310_vm8, 1.0, %v7393_v11 }
 0x306   : > { %v5325_v54 = vpop.permute.xlu1 %820  ;;  %v600_v1 = vmul.f32 %v3990_v7, %v5147_v38  ;;  %v599_v26 = vmul.f32 %v3989_v34, %v5108_v52  ;;  %v4023_v38 = vsel %vm830_vm6, 1.0, %v7393_v11  ;;  %v4024_v44 = vsel %vm831_vm9, 1.0, %v7393_v11 }
 0x307   : > { %7515 = vst [vmem:[#allocation108_spill] sm:$0xff] %v5325_v54  ;;  %v4022_v54 = vsel %vm829_vm3, 1.0, %v7393_v11  ;;  %v1122_v34 = vmul.f32 %v4023_v38, %v4981_v32  ;;  %v602_v47 = vmul.f32 %v3992_v39, %v5119_v14  ;;  %v4025_v32 = vsel %vm832_vm10, 1.0, %v7393_v11 }
 0x308   : > { %v1121_v59 = vmul.f32 %v4022_v54, %v936_v25  ;;  %v3993_v19 = vsel %vm311_vm11, 1.0, %v7393_v11  ;;  %vm313_vm1 = vcmp.eq.s32.totalorder %v4722_v3, %v5046_v51  ;;  %vm315_vm2 = vcmp.eq.s32.totalorder %v4722_v3, %v5342_v28 }
 0x309   : > { %v603_v41 = vmul.f32 %v3993_v19, %v5141_v13  ;;  %vm314_vm3 = vcmp.eq.s32.totalorder %v4722_v3, %v5025_v43  ;;  %v4027_v45 = vsel %vm834_vm15, 1.0, %v7393_v11  ;;  %v4030_v31 = vsel %vm837_vm14, 1.0, %v7393_v11 }
 0x30a   : > { %v1153_v23 = vadd.f32 %v1121_v59, %v600_v1  ;;  %v4026_v1 = vsel %vm833_vm13, 1.0, %v7393_v11  ;;  %vm316_vm4 = vcmp.eq.s32.totalorder %v4722_v3, %v5055_v56  ;;  %vm836_vm6 = vcmp.eq.s32.totalorder %v4722_v3, %v5241_v22 }
 0x30b   : > { %4447 = vset.pattern.permute.xlu2 %v4771_v53  ;;  %v3995_v51 = vsel %vm313_vm1, 1.0, %v7393_v11  ;;  %v3997_v43 = vsel %vm315_vm2, 1.0, %v7393_v11  ;;  %v3998_v22 = vsel %vm316_vm4, 1.0, %v7393_v11  ;;  %vm317_vm8 = vcmp.eq.s32.totalorder %v4722_v3, %v5034_v46 }
 0x30c   : > { %4446 = vset.pattern.permute.xlu1 %v4731_v6  ;;  %v605_v28 = vmul.f32 %v3995_v51, %v5203_v37  ;;  %vm318_vm9 = vcmp.eq.s32.totalorder %v4722_v3, %v5064_v62  ;;  %vm838_vm10 = vcmp.eq.s32.totalorder %v4722_v3, %v5253_v29  ;;  %vm845_vm11 = vcmp.eq.s32.totalorder %v4722_v3, %v5277_v60 }
 0x30d   : > { %v954_v14 = vpop.permute.xlu2 %953  ;;  %v4000_v46 = vsel %vm318_vm9, 1.0, %v7393_v11  ;;  %v4031_v62 = vsel %vm838_vm10, 1.0, %v7393_v11  ;;  %vm323_vm13 = vcmp.eq.s32.totalorder %v4722_v3, %v5080_v10  ;;  %vm844_vm14 = vcmp.eq.s32.totalorder %v4722_v3, %v5263_v36 }
 0x313   : > { %1045 = vperm.xlu2 %4447, %v4892_v17  }
 0x314   : > { %1039 = vperm.xlu1 %4446, %v4892_v17  }
 0x316   : > { %v930_v33 = vpop.permute.xlu1 %929 }
 0x317   : > { %v1120_v53 = vmul.f32 %v4021_v9, %v930_v33  ;;  %v3994_v33 = vsel %vm312_vm12, 1.0, %v7393_v11  ;;  %vm324_vm12 = vcmp.eq.s32.totalorder %v4722_v3, %v5059_v57  ;;  %v4037_v57 = vsel %vm844_vm14, 1.0, %v7393_v11 }
 0x318   : > { %v604_v59 = vmul.f32 %v3994_v33, %v5127_v16  ;;  %v4028_v16 = vsel %vm835_vm0, 1.0, %v7393_v11 }
 0x319   : > { %v1152_v49 = vadd.f32 %v1120_v53, %v599_v26  ;;  %v5357_v53 = vpop.permute.xlu0 %506 }
 0x31b   : > { %4449 = vset.pattern.permute.xlu2 %v4765_v50  ;;  %v1184_v55 = vpack.c.bf16 %v1153_v23, %v1152_v49  ;;  %v3991_v49 = vsel %vm309_vm7, 1.0, %v7393_v11  ;;  %vm839_vm7 = vcmp.eq.s32.totalorder %v4722_v3, %v5247_v15  ;;  %v3999_v15 = vsel %vm317_vm8, 1.0, %v7393_v11 }
 0x31c   : > { %4448 = vset.pattern.permute.xlu1 %v4728_v5  ;;  %v601_v7 = vmul.f32 %v3991_v49, %v5133_v27  ;;  %v1124_v27 = vmul.f32 %v4025_v32, %v954_v14  ;;  %v3996_v49 = vsel %vm314_vm3, 1.0, %v7393_v11 }
 0x31d   : > { %4069 = vmatmul.msk.bf16.vlgmr.msra.gmra.mxu0 %vm1232_vm5, %v1184_v55  ;;  %v606_v56 = vmul.f32 %v3996_v49, %v5149_v35 }
 0x31e   : > { %v1154_v23 = vadd.f32 %v1122_v34, %v601_v7  ;;  %v1156_v42 = vadd.f32 %v1124_v27, %v603_v41  ;;  %v966_v34 = vpop.permute.xlu2 %965  ;;  %v4029_v7 = vsel %vm836_vm6, 1.0, %v7393_v11 }
 0x31f   : > { %v1126_v21 = vmul.f32 %v4027_v45, %v966_v34  ;;  %v4005_v34 = vsel %vm323_vm13, 1.0, %v7393_v11 }
 0x320   : > { %v615_v36 = vmul.f32 %v4005_v34, %v5357_v53  ;;  %v7521_v53 = vld [vmem:[#allocation58_spill] sm:$0xff] }
 0x321   : > { %v5367_v26 = vpop.permute.xlu0 %784 }
 0x323   : > { %1057 = vperm.xlu2 %4449, %v4892_v17  }
 0x324   : > { %1051 = vperm.xlu1 %4448, %v4892_v17  }
 0x326   : > { %v948_v52 = vpop.permute.xlu1 %947 }
 0x327   : > { %v1123_v30 = vmul.f32 %v4024_v44, %v948_v52  ;;  %v1127_v52 = vmul.f32 %v4028_v16, %v5039_v48 }
 0x329   : > { %v1155_v55 = vadd.f32 %v1123_v30, %v602_v47  ;;  %v5384_v54 = vpop.permute.xlu0 %1378  ;;  %v608_v30 = vmul.f32 %v3998_v22, %v5155_v18  ;;  %v1159_v32 = vadd.f32 %v1127_v52, %v606_v56  ;;  %v7522_v22 = vld [vmem:[#allocation69_spill] sm:$0xff] }
 0x32b   : > { %4451 = vset.pattern.permute.xlu2 %v4720_v2  ;;  %v1185_v25 = vpack.c.bf16 %v1155_v55, %v1154_v23  ;;  %v607_v23 = vmul.f32 %v3997_v43, %v5135_v20  ;;  %v1158_v55 = vadd.f32 %v1126_v21, %v605_v28  ;;  %v4032_v20 = vsel %vm839_vm7, 1.0, %v7393_v11  ;;  %v7519_v43 = vld [vmem:[#allocation45_spill] sm:$0xff]  ;;  %v7520_v28 = vld [vmem:[#allocation90_spill] sm:$0xff] }
 0x32c   : > { %4450 = vset.pattern.permute.xlu1 %v4785_v58  ;;  %vm319_vm1 = vcmp.eq.s32.totalorder %v4722_v3, %v7519_v43  ;;  %vm841_vm2 = vcmp.eq.s32.totalorder %v4722_v3, %v7520_v28 }
 0x32d   : > { %4070 = vmatmul.msk.bf16.gmra.mxu0 %vm1232_vm5, %v1185_v25  ;;  %v985_v39 = vpop.permute.xlu2 %984  ;;  %v1187_v48 = vpack.c.bf16 %v1159_v32, %v1158_v55  ;;  %v4001_v52 = vsel %vm319_vm1, 1.0, %v7393_v11  ;;  %v4034_v56 = vsel %vm841_vm2, 1.0, %v7393_v11 }
 0x32e   : > { %v1129_v44 = vmul.f32 %v4030_v31, %v985_v39  ;;  %v7518_v31 = vld [vmem:[#allocation91_spill] sm:$0xff] }
 0x32f   : > { %vm840_vm15 = vcmp.eq.s32.totalorder %v4722_v3, %v7518_v31 }
 0x330   : > { %v1161_v37 = vadd.f32 %v1129_v44, %v608_v30  ;;  %v4033_v21 = vsel %vm840_vm15, 1.0, %v7393_v11 }
 0x331   : > { %v5398_v13 = vpop.permute.xlu0 %1719  ;;  %v1132_v49 = vmul.f32 %v4033_v21, %v7521_v53 }
 0x332   : > { %7516 = vst [vmem:[#allocation109_spill] sm:$0xff] %v5398_v13 }
 0x333   : > { %1076 = vperm.xlu2 %4451, %v4934_v24  }
 0x334   : > { %1069 = vperm.xlu1 %4450, %v4892_v17  }
 0x336   : > { %v960_v40 = vpop.permute.xlu1 %959 }
 0x337   : > { %v1125_v9 = vmul.f32 %v4026_v1, %v960_v40  ;;  %v609_v40 = vmul.f32 %v3999_v15, %v5143_v63 }
 0x339   : > { %v1157_v38 = vadd.f32 %v1125_v9, %v604_v59  ;;  %v5425_v27 = vpop.permute.xlu0 %1997  ;;  %v610_v59 = vmul.f32 %v4000_v46, %v5258_v0  ;;  %v4038_v9 = vsel %vm845_vm11, 1.0, %v7393_v11  ;;  %v4006_v0 = vsel %vm324_vm12, 1.0, %v7393_v11 }
 0x33a   : > { %7517 = vst [vmem:[#allocation110_spill] sm:$0xff] %v5425_v27  ;;  %v1137_v63 = vmul.f32 %v4038_v9, %v5165_v12  ;;  %v616_v10 = vmul.f32 %v4006_v0, %v5179_v8  ;;  %v7533_v0 = vld [vmem:[#allocation34_spill] sm:$0xff] }
 0x33b   : > { %4453 = vset.pattern.permute.xlu2 %v4731_v6  ;;  %v1186_v17 = vpack.c.bf16 %v1157_v38, %v1156_v42  ;;  %vm325_vm9 = vcmp.eq.s32.totalorder %v4722_v3, %v7533_v0  ;;  %v7549_v0 = vld [vmem:[#allocation74_spill] sm:$0xff] }
 0x33c   : > { %4452 = vset.pattern.permute.xlu1 %v4814_v4  ;;  %v1169_v12 = vadd.f32 %v1137_v63, %v616_v10  ;;  %v7531_v63 = vld [vmem:[#allocation18_spill] sm:$0xff] }
 0x33d   : > { %4071 = vmatmul.msk.bf16.gmra.mxu0 %vm1232_vm5, %v1186_v17  ;;  %v997_v33 = vpop.permute.xlu2 %996  ;;  %v7535_v10 = vld [vmem:[#allocation94_spill] sm:$0xff] }
 0x33e   : > { %v1131_v19 = vmul.f32 %v4032_v20, %v997_v33  ;;  %v7528_v33 = vld [vmem:[#allocation36_spill] sm:$0xff]  ;;  %vm846_vm11 = vcmp.eq.s32.totalorder %v4722_v3, %v7535_v10 }
 0x340   : > { %v1163_v42 = vadd.f32 %v1131_v19, %v610_v59  ;;  %v7530_v59 = vld [vmem:[#allocation71_spill] sm:$0xff] }
 0x341   : > { %v5440_v18 = vpop.permute.xlu0 %2338 }
 0x343   : > { %1088 = vperm.xlu2 %4453, %v4934_v24  }
 0x344   : > { %1082 = vperm.xlu1 %4452, %v4934_v24  }
 0x346   : > { %v979_v47 = vpop.permute.xlu1 %978 }
 0x347   : > { %v1128_v25 = vmul.f32 %v4029_v7, %v979_v47  ;;  %v611_v47 = vmul.f32 %v4001_v52, %v7522_v22  ;;  %v7523_v7 = vld [vmem:[#allocation67_spill] sm:$0xff]  ;;  %v7538_v52 = vld [vmem:[#allocation96_spill] sm:$0xff]  ;;  %v7540_v22 = vld [vmem:[#allocation57_spill] sm:$0xff] }
 0x348   : > { %vm849_vm12 = vcmp.eq.s32.totalorder %v4722_v3, %v7538_v52  ;;  %vm328_vm14 = vcmp.eq.s32.totalorder %v4722_v3, %v7540_v22 }
 0x349   : > { %v1160_v14 = vadd.f32 %v1128_v25, %v607_v23  ;;  %v196_v16 = vpop.permute.xlu0 %195  ;;  %v1164_v55 = vadd.f32 %v1132_v49, %v611_v47  ;;  %v7541_v47 = vld [vmem:[#allocation97_spill] sm:$0xff] }
 0x34a   : > { %vm320_vm0 = vcmp.eq.s32.totalorder %v4722_v3, %v196_v16  ;;  %vm848_vm15 = vcmp.eq.s32.totalorder %v4722_v3, %v7541_v47 }
 0x34b   : > { %4455 = vset.pattern.permute.xlu2 %v4765_v50  ;;  %v1188_v35 = vpack.c.bf16 %v1161_v37, %v1160_v14  ;;  %v4002_v8 = vsel %vm320_vm0, 1.0, %v7393_v11  ;;  %v7525_v14 = vld [vmem:[#allocation47_spill] sm:$0xff] }
 0x34c   : > { %4454 = vset.pattern.permute.xlu1 %v4728_v5  ;;  %v612_v30 = vmul.f32 %v4002_v8, %v7523_v7  ;;  %vm322_vm4 = vcmp.eq.s32.totalorder %v4722_v3, %v7525_v14 }
 0x34d   : > { %4072 = vmatmul.msk.bf16.gmra.mxu0 %vm1232_vm5, %v1187_v48  ;;  %4073 = vmatmul.msk.bf16.vlgmr.msra.gmra.mxu1 %vm1232_vm5, %v1188_v35  ;;  %v1015_v1 = vpop.permute.xlu2 %1014  ;;  %v7526_v48 = vld [vmem:[#allocation50_spill] sm:$0xff]  ;;  %v7527_v35 = vld [vmem:[#allocation93_spill] sm:$0xff]  ;;  %v4004_v19 = vsel %vm322_vm4, 1.0, %v7393_v11  ;;  %vm852_vm4 = vcmp.eq.s32.totalorder %v4722_v3, %v5367_v26 }
 0x34e   : > { %vm321_vm6 = vcmp.eq.s32.totalorder %v4722_v3, %v7526_v48  ;;  %vm843_vm7 = vcmp.eq.s32.totalorder %v4722_v3, %v7527_v35 }
 0x34f   : > { %v4003_v15 = vsel %vm321_vm6, 1.0, %v7393_v11  ;;  %v4036_v46 = vsel %vm843_vm7, 1.0, %v7393_v11 }
 0x351   : > { %v537_v7 = vpop.permute.xlu0 %536 }
 0x353   : > { %1106 = vperm.xlu2 %4455, %v4934_v24  }
 0x354   : > { %1100 = vperm.xlu1 %4454, %v4934_v24  }
 0x356   : > { %v991_v29 = vpop.permute.xlu1 %990 }
 0x357   : > { %v1130_v41 = vmul.f32 %v4031_v62, %v991_v29  ;;  %v7529_v29 = vld [vmem:[#allocation68_spill] sm:$0xff] }
 0x359   : > { %v1162_v38 = vadd.f32 %v1130_v41, %v609_v40  ;;  %v614_v40 = vmul.f32 %v4004_v19, %v7529_v29  ;;  %v613_v41 = vmul.f32 %v4003_v15, %v7530_v59  ;;  %v7545_v29 = vld [vmem:[#allocation52_spill] sm:$0xff]  ;;  %v7547_v59 = vld [vmem:[#allocation20_spill] sm:$0xff] }
 0x35a   : > { %vm329_vm2 = vcmp.eq.s32.totalorder %v4722_v3, %v7545_v29 }
 0x35b   : > { %4457 = vset.pattern.permute.xlu2 %v4785_v58  ;;  %v1189_v60 = vpack.c.bf16 %v1163_v42, %v1162_v38 }
 0x35c   : > { %4456 = vset.pattern.permute.xlu1 %v4793_v61 }
 0x35d   : > { %4074 = vmatmul.msk.bf16.gmra.mxu1 %vm1232_vm5, %v1189_v60  ;;  %v1028_v17 = vpop.permute.xlu2 %1027 }
 0x35e   : > { %v1136_v45 = vmul.f32 %v4037_v57, %v1028_v17  ;;  %v7534_v17 = vld [vmem:[#allocation55_spill] sm:$0xff] }
 0x35f   : > { %vm326_vm10 = vcmp.eq.s32.totalorder %v4722_v3, %v7534_v17 }
 0x360   : > { %v1168_v39 = vadd.f32 %v1136_v45, %v615_v36  ;;  %v4007_v36 = vsel %vm325_vm9, 1.0, %v7393_v11  ;;  %v4008_v45 = vsel %vm326_vm10, 1.0, %v7393_v11 }
 0x362   : > { %v1192_v51 = vpack.c.bf16 %v1169_v12, %v1168_v39  ;;  %v4039_v12 = vsel %vm846_vm11, 1.0, %v7393_v11  ;;  %v7536_v39 = vld [vmem:[#allocation70_spill] sm:$0xff] }
 0x363   : > { %1118 = vperm.xlu2 %4457, %v4934_v24   ;;  %v617_v21 = vmul.f32 %v4007_v36, %v7536_v39  ;;  %v7551_v39 = vld [vmem:[#allocation54_spill] sm:$0xff] }
 0x364   : > { %1112 = vperm.xlu1 %4456, %v4934_v24   ;;  %4077 = vmatmul.msk.bf16.vlgmr.msra.gmra.mxu2 %vm1232_vm5, %v1192_v51  ;;  %v7524_v24 = vld [vmem:[#allocation84_spill] sm:$0xff]  ;;  %vm332_vm6 = vcmp.eq.s32.totalorder %v4722_v3, %v7551_v39  ;;  %v7568_v39 = vld [vmem:[#allocation85_spill] sm:$0xff] }
 0x365   : > { %vm842_vm3 = vcmp.eq.s32.totalorder %v4722_v3, %v7524_v24  ;;  %v7537_v51 = vld [vmem:[#allocation76_spill] sm:$0xff] }
 0x366   : > { %v1009_v44 = vpop.permute.xlu1 %1008  ;;  %v4035_v37 = vsel %vm842_vm3, 1.0, %v7393_v11  ;;  %v618_v43 = vmul.f32 %v4008_v45, %v7537_v51  ;;  %v7553_v51 = vld [vmem:[#allocation103_spill] sm:$0xff] }
 0x367   : > { %v1133_v23 = vmul.f32 %v4034_v56, %v1009_v44  ;;  %v1134_v20 = vmul.f32 %v4035_v37, %v1015_v1  ;;  %v7532_v1 = vld [vmem:[#allocation92_spill] sm:$0xff]  ;;  %v7539_v56 = vld [vmem:[#allocation49_spill] sm:$0xff] }
 0x368   : > { %vm847_vm8 = vcmp.eq.s32.totalorder %v4722_v3, %v7532_v1  ;;  %vm327_vm13 = vcmp.eq.s32.totalorder %v4722_v3, %v7539_v56  ;;  %v7542_v37 = vld [vmem:[#allocation73_spill] sm:$0xff] }
 0x369   : > { %v1165_v25 = vadd.f32 %v1133_v23, %v612_v30  ;;  %v1166_v42 = vadd.f32 %v1134_v20, %v613_v41  ;;  %v4040_v34 = vsel %vm847_vm8, 1.0, %v7393_v11  ;;  %v4042_v30 = vsel %vm849_vm12, 1.0, %v7393_v11 }
 0x36a   : > { %vm853_vm8 = vcmp.eq.s32.totalorder %v4722_v3, %v7553_v51 }
 0x36b   : > { %4459 = vset.pattern.permute.xlu2 %v4731_v6  ;;  %v1190_v32 = vpack.c.bf16 %v1165_v25, %v1164_v55  ;;  %v4009_v55 = vsel %vm327_vm13, 1.0, %v7393_v11  ;;  %v4010_v25 = vsel %vm328_vm14, 1.0, %v7393_v11 }
 0x36c   : > { %4458 = vset.pattern.permute.xlu1 %v4814_v4  ;;  %v619_v14 = vmul.f32 %v4009_v55, %v7542_v37  ;;  %v620_v48 = vmul.f32 %v4010_v25, %v537_v7  ;;  %v7557_v55 = vld [vmem:[#allocation101_spill] sm:$0xff]  ;;  %v7558_v25 = vld [vmem:[#allocation106_spill] sm:$0xff] }
 0x36d   : > { %4075 = vmatmul.msk.bf16.gmra.mxu1 %vm1232_vm5, %v1190_v32  ;;  %v1046_v57 = vpop.permute.xlu2 %1045  ;;  %v4041_v32 = vsel %vm848_vm15, 1.0, %v7393_v11  ;;  %vm854_vm10 = vcmp.eq.s32.totalorder %v4722_v3, %v7557_v55  ;;  %vm855_vm11 = vcmp.eq.s32.totalorder %v4722_v3, %v7558_v25 }
 0x36e   : > { %v1139_v16 = vmul.f32 %v4040_v34, %v1046_v57  ;;  %v7550_v57 = vld [vmem:[#allocation78_spill] sm:$0xff]  ;;  %v4048_v37 = vsel %vm855_vm11, 1.0, %v7393_v11 }
 0x370   : > { %v1171_v8 = vadd.f32 %v1139_v16, %v618_v43 }
 0x373   : > { %1390 = vperm.xlu2 %4459, %v7528_v33  }
 0x374   : > { %1384 = vperm.xlu1 %4458, %v7528_v33  }
 0x376   : > { %v1021_v62 = vpop.permute.xlu1 %1020 }
 0x377   : > { %v1135_v9 = vmul.f32 %v4036_v46, %v1021_v62  ;;  %v7544_v46 = vld [vmem:[#allocation43_spill] sm:$0xff] }
 0x378   : > { %vm330_vm1 = vcmp.eq.s32.totalorder %v4722_v3, %v7544_v46 }
 0x379   : > { %v1167_v38 = vadd.f32 %v1135_v9, %v614_v40  ;;  %v7546_v40 = vld [vmem:[#allocation99_spill] sm:$0xff]  ;;  %v4012_v41 = vsel %vm330_vm1, 1.0, %v7393_v11  ;;  %v7548_v9 = vld [vmem:[#allocation86_spill] sm:$0xff] }
 0x37a   : > { %vm851_vm3 = vcmp.eq.s32.totalorder %v4722_v3, %v7546_v40  ;;  %v622_v34 = vmul.f32 %v4012_v41, %v7549_v0 }
 0x37b   : > { %4461 = vset.pattern.permute.xlu2 %v4728_v5  ;;  %v1191_v60 = vpack.c.bf16 %v1167_v38, %v1166_v42  ;;  %v4011_v38 = vsel %vm329_vm2, 1.0, %v7393_v11  ;;  %v4044_v1 = vsel %vm851_vm3, 1.0, %v7393_v11 }
 0x37c   : > { %4460 = vset.pattern.permute.xlu1 %v7531_v63  ;;  %v621_v17 = vmul.f32 %v4011_v38, %v7550_v57  ;;  %v7563_v38 = vld [vmem:[#allocation53_spill] sm:$0xff] }
 0x37d   : > { %4076 = vmatmul.msk.bf16.gmra.mxu1 %vm1232_vm5, %v1191_v60  ;;  %v1058_v44 = vpop.permute.xlu2 %1057  ;;  %vm335_vm13 = vcmp.eq.s32.totalorder %v4722_v3, %v7563_v38 }
 0x37e   : > { %v1141_v23 = vmul.f32 %v4042_v30, %v1058_v44  ;;  %v7555_v44 = vld [vmem:[#allocation80_spill] sm:$0xff] }
 0x380   : > { %v1173_v20 = vadd.f32 %v1141_v23, %v620_v48  ;;  %v7556_v23 = vld [vmem:[#allocation62_spill] sm:$0xff]  ;;  %v7559_v48 = vld [vmem:[#allocation56_spill] sm:$0xff] }
 0x381   : > { %vm333_vm9 = vcmp.eq.s32.totalorder %v4722_v3, %v7556_v23  ;;  %vm334_vm12 = vcmp.eq.s32.totalorder %v4722_v3, %v7559_v48  ;;  %v7573_v23 = vld [vmem:[#allocation83_spill] sm:$0xff] }
 0x382   : > { %v4016_v46 = vsel %vm334_vm12, 1.0, %v7393_v11 }
 0x383   : > { %1402 = vperm.xlu2 %4461, %v7528_v33  }
 0x384   : > { %1396 = vperm.xlu1 %4460, %v7528_v33  }
 0x386   : > { %v1040_v31 = vpop.permute.xlu1 %1039 }
 0x387   : > { %v1138_v28 = vmul.f32 %v4039_v12, %v1040_v31  ;;  %v4045_v31 = vsel %vm852_vm4, 1.0, %v7393_v11 }
 0x389   : > { %v1170_v53 = vadd.f32 %v1138_v28, %v617_v21  ;;  %v7552_v21 = vld [vmem:[#allocation60_spill] sm:$0xff]  ;;  %v4014_v28 = vsel %vm332_vm6, 1.0, %v7393_v11  ;;  %vm1370_vm6 = vcmp.ge.s32.totalorder %v4722_v3, 64 }
 0x38a   : > { %vm331_vm7 = vcmp.eq.s32.totalorder %v4722_v3, %v7552_v21 }
 0x38b   : > { %4463 = vset.pattern.permute.xlu2 %v4785_v58  ;;  %v1193_v49 = vpack.c.bf16 %v1171_v8, %v1170_v53  ;;  %v4013_v26 = vsel %vm331_vm7, 1.0, %v7393_v11  ;;  %v4046_v8 = vsel %vm853_vm8, 1.0, %v7393_v11 }
 0x38c   : > { %4462 = vset.pattern.permute.xlu1 %v4793_v61  ;;  %v623_v56 = vmul.f32 %v4013_v26, %v7555_v44  ;;  %v7569_v26 = vld [vmem:[#allocation108_spill] sm:$0xff] }
 0x38d   : > { %4078 = vmatmul.msk.bf16.gmra.mxu2 %vm1232_vm5, %v1193_v49  ;;  %v1077_v12 = vpop.permute.xlu2 %1076  ;;  %v7554_v49 = vld [vmem:[#allocation77_spill] sm:$0xff]  ;;  %vm858_vm1 = vcmp.eq.s32.totalorder %v4722_v3, %v7569_v26 }
 0x38e   : > { %v1144_v43 = vmul.f32 %v4045_v31, %v1077_v12  ;;  %v624_v52 = vmul.f32 %v4014_v28, %v7554_v49  ;;  %v7571_v49 = vld [vmem:[#allocation65_spill] sm:$0xff] }
 0x38f   : > { %vm338_vm3 = vcmp.eq.s32.totalorder %v4722_v3, %v7571_v49 }
 0x390   : > { %v1176_v47 = vadd.f32 %v1144_v43, %v623_v56  ;;  %v4051_v56 = vsel %vm858_vm1, 1.0, %v7393_v11 }
 0x393   : > { %1420 = vperm.xlu2 %4463, %v7528_v33  }
 0x394   : > { %1414 = vperm.xlu1 %4462, %v7528_v33   ;;  %v7543_v33 = vld [vmem:[#allocation100_spill] sm:$0xff] }
 0x395   : > { %vm850_vm0 = vcmp.eq.s32.totalorder %v4722_v3, %v7543_v33 }
 0x396   : > { %v1052_v24 = vpop.permute.xlu1 %1051  ;;  %v4043_v62 = vsel %vm850_vm0, 1.0, %v7393_v11 }
 0x397   : > { %v1140_v35 = vmul.f32 %v4041_v32, %v1052_v24  ;;  %v1142_v42 = vmul.f32 %v4043_v62, %v7548_v9  ;;  %v4015_v24 = vsel %vm333_vm9, 1.0, %v7393_v11  ;;  %v7562_v62 = vld [vmem:[#allocation82_spill] sm:$0xff] }
 0x398   : > { %v626_v29 = vmul.f32 %v4016_v46, %v7562_v62  ;;  %v7580_v46 = vld [vmem:[#allocation29_spill] sm:$0xff] }
 0x399   : > { %v1172_v19 = vadd.f32 %v1140_v35, %v619_v14  ;;  %v1174_v36 = vadd.f32 %v1142_v42, %v621_v17  ;;  %v4047_v14 = vsel %vm854_vm10, 1.0, %v7393_v11  ;;  %v815_v42 = vpop.permute.xlu0 %814  ;;  %v7565_v17 = vld [vmem:[#allocation63_spill] sm:$0xff] }
 0x39a   : > { %vm857_vm15 = vcmp.eq.s32.totalorder %v4722_v3, %v815_v42  ;;  %vm336_vm0 = vcmp.eq.s32.totalorder %v4722_v3, %v7565_v17 }
 0x39b   : > { %4465 = vset.pattern.permute.xlu2 %v4814_v4  ;;  %v1194_v15 = vpack.c.bf16 %v1173_v20, %v1172_v19  ;;  %v7560_v20 = vld [vmem:[#allocation35_spill] sm:$0xff]  ;;  %v4050_v0 = vsel %vm857_vm15, 1.0, %v7393_v11  ;;  %v4018_v12 = vsel %vm336_vm0, 1.0, %v7393_v11 }
 0x39c   : > { %4464 = vset.pattern.permute.xlu1 %v4720_v2  ;;  %v625_v19 = vmul.f32 %v4015_v24, %v7560_v20  ;;  %v628_v21 = vmul.f32 %v4018_v12, %v7568_v39  ;;  %v7576_v20 = vld [vmem:[#allocation31_spill] sm:$0xff] }
 0x39d   : > { %4079 = vmatmul.msk.bf16.gmra.mxu2 %vm1232_vm5, %v1194_v15  ;;  %v1089_v32 = vpop.permute.xlu2 %1088  ;;  %v7561_v15 = vld [vmem:[#allocation95_spill] sm:$0xff] }
 0x39e   : > { %v1146_v35 = vmul.f32 %v4047_v14, %v1089_v32  ;;  %v1147_v33 = vmul.f32 %v4048_v37, %v7561_v15  ;;  %v7574_v32 = vld [vmem:[#allocation44_spill] sm:$0xff]  ;;  %v7578_v15 = vld [vmem:[#allocation22_spill] sm:$0xff] }
 0x3a0   : > { %v1178_v40 = vadd.f32 %v1146_v35, %v625_v19  ;;  %v1179_v41 = vadd.f32 %v1147_v33, %v626_v29  ;;  %v7575_v35 = vld [vmem:[#allocation28_spill] sm:$0xff]  ;;  %v7577_v19 = vld [vmem:[#allocation38_spill] sm:$0xff] }
 0x3a1   : > { %v7579_v33 = vld [vmem:[#allocation26_spill] sm:$0xff] }
 0x3a2   : > { %v1197_v9 = vpack.c.bf16 %v1179_v41, %v1178_v40 }
 0x3a3   : > { %1433 = vperm.xlu2 %4465, %v7547_v59  }
 0x3a4   : > { %1427 = vperm.xlu1 %4464, %v7547_v59  }
 0x3a6   : > { %v1070_v60 = vpop.permute.xlu1 %1069 }
 0x3a7   : > { %v1143_v10 = vmul.f32 %v4044_v1, %v1070_v60  ;;  %v4017_v1 = vsel %vm335_vm13, 1.0, %v7393_v11 }
 0x3a9   : > { %v1175_v16 = vadd.f32 %v1143_v10, %v622_v34 }
 0x3ab   : > { %4467 = vset.pattern.permute.xlu2 %v4728_v5  ;;  %v1195_v45 = vpack.c.bf16 %v1175_v16, %v1174_v36  ;;  %v7566_v36 = vld [vmem:[#allocation25_spill] sm:$0xff] }
 0x3ac   : > { %4466 = vset.pattern.permute.xlu1 %v7531_v63  ;;  %v7567_v16 = vld [vmem:[#allocation81_spill] sm:$0xff] }
 0x3ad   : > { %4080 = vmatmul.msk.bf16.gmra.mxu2 %vm1232_vm5, %v1195_v45  ;;  %v1107_v34 = vpop.permute.xlu2 %1106  ;;  %v627_v45 = vmul.f32 %v4017_v1, %v7567_v16  ;;  %v7581_v1 = vld [vmem:[#allocation32_spill] sm:$0xff] }
 0x3ae   : > { %v1149_v31 = vmul.f32 %v4050_v0, %v1107_v34 }
 0x3b0   : > { %v1181_v43 = vadd.f32 %v1149_v31, %v628_v21 }
 0x3b3   : > { %1451 = vperm.xlu2 %4467, %v7547_v59  }
 0x3b4   : > { %1445 = vperm.xlu1 %4466, %v7547_v59  }
 0x3b6   : > { %v1083_v53 = vpop.permute.xlu1 %1082 }
 0x3b7   : > { %v1145_v22 = vmul.f32 %v4046_v8, %v1083_v53  ;;  %v7570_v53 = vld [vmem:[#allocation59_spill] sm:$0xff] }
 0x3b8   : > { %vm337_vm2 = vcmp.eq.s32.totalorder %v4722_v3, %v7570_v53 }
 0x3b9   : > { %v1177_v7 = vadd.f32 %v1145_v22, %v624_v52  ;;  %v7572_v52 = vld [vmem:[#allocation107_spill] sm:$0xff] }
 0x3ba   : > { %vm859_vm4 = vcmp.eq.s32.totalorder %v4722_v3, %v7572_v52 }
 0x3bb   : > { %4469 = vset.pattern.permute.xlu2 %v4793_v61  ;;  %v1196_v30 = vpack.c.bf16 %v1177_v7, %v1176_v47  ;;  %v4020_v47 = vsel %vm338_vm3, 1.0, %v7393_v11  ;;  %v4019_v7 = vsel %vm337_vm2, 1.0, %v7393_v11 }
 0x3bc   : > { %4468 = vset.pattern.permute.xlu1 %v4765_v50  ;;  %v629_v55 = vmul.f32 %v4019_v7, %v7573_v23  ;;  %v630_v24 = vmul.f32 %v4020_v47, %v7574_v32  ;;  %v7598_v32 = vld [vmem:[#allocation23_spill] sm:$0xff] }
 0x3bd   : > { %4081 = vmatmul.msk.bf16.vlgmr.msra.gmra.mxu3 %vm1232_vm5, %v1196_v30  ;;  %v1119_v44 = vpop.permute.xlu2 %1118  ;;  %v4052_v30 = vsel %vm859_vm4, 1.0, %v7393_v11 }
 0x3be   : > { %v1151_v25 = vmul.f32 %v4052_v30, %v1119_v44 }
 0x3c0   : > { %v1183_v14 = vadd.f32 %v1151_v25, %v630_v24 }
 0x3c3   : > { %1463 = vperm.xlu2 %4469, %v7547_v59  }
 0x3c4   : > { %1457 = vperm.xlu1 %4468, %v7547_v59   ;;  %v7564_v59 = vld [vmem:[#allocation104_spill] sm:$0xff] }
 0x3c5   : > { %vm856_vm14 = vcmp.eq.s32.totalorder %v4722_v3, %v7564_v59 }
 0x3c6   : > { %v1101_v60 = vpop.permute.xlu1 %1100  ;;  %v4049_v57 = vsel %vm856_vm14, 1.0, %v7393_v11 }
 0x3c7   : > { %v1148_v10 = vmul.f32 %v4049_v57, %v1101_v60 }
 0x3c9   : > { %v1180_v51 = vadd.f32 %v1148_v10, %v627_v45 }
 0x3cb   : > { %4471 = vset.pattern.permute.xlu2 %v4814_v4  ;;  %v1198_v28 = vpack.c.bf16 %v1181_v43, %v1180_v51 }
 0x3cc   : > { %4470 = vset.pattern.permute.xlu1 %v4720_v2 }
 0x3cd   : > { %4082 = vmatmul.msk.bf16.gmra.mxu3 %vm1232_vm5, %v1197_v9  ;;  %v5710_v62 = vpop.permute.xlu2 %1390 }
 0x3d3   : > { %1482 = vperm.xlu2 %4471, %v7566_v36  }
 0x3d4   : > { %1476 = vperm.xlu1 %4470, %v7566_v36  }
 0x3d6   : > { %v1113_v8 = vpop.permute.xlu1 %1112 }
 0x3d7   : > { %v1150_v22 = vmul.f32 %v4051_v56, %v1113_v8  ;;  %v7594_v8 = vld [vmem:[#allocation39_spill] sm:$0xff] }
 0x3d9   : > { %v1182_v37 = vadd.f32 %v1150_v22, %v629_v55 }
 0x3db   : > { %4473 = vset.pattern.permute.xlu2 %v7531_v63  ;;  %v1199_v48 = vpack.c.bf16 %v1183_v14, %v1182_v37 }
 0x3dc   : > { %4472 = vset.pattern.permute.xlu1 %v4731_v6 }
 0x3dd   : > { %4083 = vmatmul.msk.bf16.gmra.mxu3 %vm1232_vm5, %v1198_v28  ;;  %v5714_v29 = vpop.permute.xlu2 %1402 }
 0x3e3   : > { %1494 = vperm.xlu2 %4473, %v7566_v36  }
 0x3e4   : > { %1488 = vperm.xlu1 %4472, %v7566_v36  }
 0x3e6   : > { %v5717_v40 = vpop.permute.xlu1 %1384 }
 0x3eb   : > { %4475 = vset.pattern.permute.xlu2 %v4793_v61 }
 0x3ec   : > { %4474 = vset.pattern.permute.xlu1 %v4765_v50 }
 0x3ed   : > { %4084 = vmatmul.msk.bf16.gmra.mxu3 %vm1232_vm5, %v1199_v48  ;;  %v5720_v41 = vpop.permute.xlu2 %1420 }
 0x3f3   : > { %1512 = vperm.xlu2 %4475, %v7566_v36  }
 0x3f4   : > { %1506 = vperm.xlu1 %4474, %v7566_v36  }
 0x3f6   : > { %v5723_v9 = vpop.permute.xlu1 %1396 }
 0x3fb   : > { %4477 = vset.pattern.permute.xlu2 %v4720_v2 }
 0x3fc   : > { %4476 = vset.pattern.permute.xlu1 %v4785_v58 }
 0x3fd   : > { %v5726_v42 = vpop.permute.xlu2 %1433 }
 0x403   : > { %1525 = vperm.xlu2 %4477, %v7575_v35  }
 0x404   : > { %1518 = vperm.xlu1 %4476, %v7566_v36  }
 0x406   : > { %v5729_v38 = vpop.permute.xlu1 %1414 }
 0x40b   : > { %4479 = vset.pattern.permute.xlu2 %v7531_v63 }
 0x40c   : > { %4478 = vset.pattern.permute.xlu1 %v4731_v6 }
 0x40d   : > { %v5732_v59 = vpop.permute.xlu2 %1451 }
 0x413   : > { %1543 = vperm.xlu2 %4479, %v7575_v35  }
 0x414   : > { %1537 = vperm.xlu1 %4478, %v7575_v35  }
 0x416   : > { %v5735_v60 = vpop.permute.xlu1 %1427 }
 0x41b   : > { %4481 = vset.pattern.permute.xlu2 %v4765_v50 }
 0x41c   : > { %4480 = vset.pattern.permute.xlu1 %v4728_v5 }
 0x41d   : > { %v5738_v0 = vpop.permute.xlu2 %1463 }
 0x41e   : > { %7582 = vst [vmem:[#allocation91_spill] sm:$0xff] %v5738_v0 }
 0x423   : > { %1555 = vperm.xlu2 %4481, %v7575_v35  }
 0x424   : > { %1549 = vperm.xlu1 %4480, %v7575_v35  }
 0x426   : > { %v5741_v34 = vpop.permute.xlu1 %1445 }
 0x427   : > { %7583 = vst [vmem:[#allocation45_spill] sm:$0xff] %v5741_v34 }
 0x42b   : > { %4483 = vset.pattern.permute.xlu2 %v4720_v2 }
 0x42c   : > { %4482 = vset.pattern.permute.xlu1 %v4785_v58 }
 0x42d   : > { %v5744_v57 = vpop.permute.xlu2 %1482 }
 0x42e   : > { %7584 = vst [vmem:[#allocation90_spill] sm:$0xff] %v5744_v57  ;;  %v5915_v57 = vpop.f32.mrf.mxu0 }
 0x433   : > { %1670 = vperm.xlu2 %4483, %v7576_v20  }
 0x434   : > { %1567 = vperm.xlu1 %4482, %v7575_v35  }
 0x436   : > { %v5747_v17 = vpop.permute.xlu1 %1457 }
 0x437   : > { %7585 = vst [vmem:[#allocation58_spill] sm:$0xff] %v5747_v17 }
 0x43b   : > { %4485 = vset.pattern.permute.xlu2 %v4731_v6 }
 0x43c   : > { %4484 = vset.pattern.permute.xlu1 %v4814_v4 }
 0x43d   : > { %v5750_v10 = vpop.permute.xlu2 %1494 }
 0x43e   : > { %7586 = vst [vmem:[#allocation69_spill] sm:$0xff] %v5750_v10 }
 0x443   : > { %1682 = vperm.xlu2 %4485, %v7576_v20  }
 0x444   : > { %1676 = vperm.xlu1 %4484, %v7576_v20  }
 0x446   : > { %v5753_v36 = vpop.permute.xlu1 %1476 }
 0x447   : > { %7587 = vst [vmem:[#allocation67_spill] sm:$0xff] %v5753_v36 }
 0x44b   : > { %4487 = vset.pattern.permute.xlu2 %v4765_v50 }
 0x44c   : > { %4486 = vset.pattern.permute.xlu1 %v4728_v5 }
 0x44d   : > { %v5756_v16 = vpop.permute.xlu2 %1512 }
 0x44e   : > { %7588 = vst [vmem:[#allocation84_spill] sm:$0xff] %v5756_v16 }
 0x453   : > { %1700 = vperm.xlu2 %4487, %v7576_v20  }
 0x454   : > { %1694 = vperm.xlu1 %4486, %v7576_v20  }
 0x456   : > { %v5759_v45 = vpop.permute.xlu1 %1488 }
 0x45b   : > { %4489 = vset.pattern.permute.xlu2 %v4785_v58 }
 0x45c   : > { %4488 = vset.pattern.permute.xlu1 %v4793_v61 }
 0x45d   : > { %v5762_v31 = vpop.permute.xlu2 %1525 }
 0x463   : > { %1712 = vperm.xlu2 %4489, %v7576_v20  }
 0x464   : > { %1706 = vperm.xlu1 %4488, %v7576_v20  }
 0x466   : > { %v5765_v12 = vpop.permute.xlu1 %1506 }
 0x46b   : > { %4491 = vset.pattern.permute.xlu2 %v4731_v6 }
 0x46c   : > { %4490 = vset.pattern.permute.xlu1 %v4814_v4 }
 0x46d   : > { %v5768_v39 = vpop.permute.xlu2 %1543 }
 0x46e   : > { %7589 = vst [vmem:[#allocation47_spill] sm:$0xff] %v5768_v39  ;;  %v7612_v39 = vld [vmem:[#allocation30_spill] sm:$0xff] }
 0x473   : > { %1731 = vperm.xlu2 %4491, %v7577_v19  }
 0x474   : > { %1725 = vperm.xlu1 %4490, %v7577_v19  }
 0x476   : > { %v5771_v21 = vpop.permute.xlu1 %1518 }
 0x477   : > { %7590 = vst [vmem:[#allocation50_spill] sm:$0xff] %v5771_v21 }
 0x47b   : > { %4493 = vset.pattern.permute.xlu2 %v4728_v5 }
 0x47c   : > { %4492 = vset.pattern.permute.xlu1 %v7531_v63 }
 0x47d   : > { %v5774_v51 = vpop.permute.xlu2 %1555 }
 0x47e   : > { %7591 = vst [vmem:[#allocation93_spill] sm:$0xff] %v5774_v51 }
 0x483   : > { %1743 = vperm.xlu2 %4493, %v7577_v19  }
 0x484   : > { %1737 = vperm.xlu1 %4492, %v7577_v19  }
 0x486   : > { %v5777_v43 = vpop.permute.xlu1 %1537 }
 0x487   : > { %7592 = vst [vmem:[#allocation36_spill] sm:$0xff] %v5777_v43 }
 0x48b   : > { %4495 = vset.pattern.permute.xlu2 %v4785_v58 }
 0x48c   : > { %4494 = vset.pattern.permute.xlu1 %v4793_v61 }
 0x48d   : > { %v5780_v28 = vpop.permute.xlu2 %1670 }
 0x493   : > { %1761 = vperm.xlu2 %4495, %v7577_v19  }
 0x494   : > { %1755 = vperm.xlu1 %4494, %v7577_v19  }
 0x496   : > { %v5783_v26 = vpop.permute.xlu1 %1549 }
 0x497   : > { %7593 = vst [vmem:[#allocation68_spill] sm:$0xff] %v5783_v26 }
 0x49b   : > { %4497 = vset.pattern.permute.xlu2 %v4814_v4 }
 0x49c   : > { %4496 = vset.pattern.permute.xlu1 %v4720_v2 }
 0x49d   : > { %v5787_v53 = vpop.permute.xlu2 %1682 }
 0x4a3   : > { %1774 = vperm.xlu2 %4497, %v7578_v15  }
 0x4a4   : > { %1768 = vperm.xlu1 %4496, %v7578_v15  }
 0x4a6   : > { %v5789_v49 = vpop.permute.xlu1 %1567 }
 0x4a7   : > { %7595 = vst [vmem:[#allocation71_spill] sm:$0xff] %v5789_v49 }
 0x4ab   : > { %4499 = vset.pattern.permute.xlu2 %v4728_v5 }
 0x4ac   : > { %4498 = vset.pattern.permute.xlu1 %v7531_v63 }
 0x4ad   : > { %v5795_v44 = vpop.permute.xlu2 %1700 }
 0x4b3   : > { %1792 = vperm.xlu2 %4499, %v7578_v15  }
 0x4b4   : > { %1786 = vperm.xlu1 %4498, %v7578_v15  }
 0x4b6   : > { %v5793_v52 = vpop.permute.xlu1 %1676 }
 0x4bb   : > { %4501 = vset.pattern.permute.xlu2 %v4793_v61 }
 0x4bc   : > { %4500 = vset.pattern.permute.xlu1 %v4765_v50 }
 0x4bd   : > { %v5801_v22 = vpop.permute.xlu2 %1712 }
 0x4c3   : > { %1804 = vperm.xlu2 %4501, %v7578_v15  }
 0x4c4   : > { %1798 = vperm.xlu1 %4500, %v7578_v15  }
 0x4c6   : > { %v5799_v56 = vpop.permute.xlu1 %1694 }
 0x4cb   : > { %4503 = vset.pattern.permute.xlu2 %v4814_v4 }
 0x4cc   : > { %4502 = vset.pattern.permute.xlu1 %v4720_v2 }
 0x4cd   : > { %v5807_v7 = vpop.permute.xlu2 %1731 }
 0x4ce   : > { %7596 = vst [vmem:[#allocation92_spill] sm:$0xff] %v5807_v7 }
 0x4d3   : > { %1823 = vperm.xlu2 %4503, %v7579_v33  }
 0x4d4   : > { %1817 = vperm.xlu1 %4502, %v7579_v33  }
 0x4d6   : > { %v5805_v47 = vpop.permute.xlu1 %1706 }
 0x4db   : > { %4505 = vset.pattern.permute.xlu2 %v7531_v63 }
 0x4dc   : > { %4504 = vset.pattern.permute.xlu1 %v4731_v6 }
 0x4dd   : > { %v5813_v23 = vpop.permute.xlu2 %1743 }
 0x4e3   : > { %1835 = vperm.xlu2 %4505, %v7579_v33  }
 0x4e4   : > { %1829 = vperm.xlu1 %4504, %v7579_v33  }
 0x4e6   : > { %v5811_v30 = vpop.permute.xlu1 %1725 }
 0x4eb   : > { %4507 = vset.pattern.permute.xlu2 %v4793_v61 }
 0x4ec   : > { %4506 = vset.pattern.permute.xlu1 %v4765_v50 }
 0x4ed   : > { %v5819_v25 = vpop.permute.xlu2 %1761 }
 0x4f3   : > { %1853 = vperm.xlu2 %4507, %v7579_v33  }
 0x4f4   : > { %1847 = vperm.xlu1 %4506, %v7579_v33  }
 0x4f6   : > { %v5817_v55 = vpop.permute.xlu1 %1737 }
 0x4f7   : > { %7597 = vst [vmem:[#allocation34_spill] sm:$0xff] %v5817_v55 }
 0x4fb   : > { %4509 = vset.pattern.permute.xlu2 %v4720_v2 }
 0x4fc   : > { %4508 = vset.pattern.permute.xlu1 %v4785_v58 }
 0x4fd   : > { %v5825_v37 = vpop.permute.xlu2 %1774 }
 0x4fe   : > { %7600 = vst [vmem:[#allocation94_spill] sm:$0xff] %v5825_v37 }
 0x503   : > { %1899 = vperm.xlu2 %4509, %v7580_v46  }
 0x504   : > { %1859 = vperm.xlu1 %4508, %v7579_v33  }
 0x506   : > { %v5823_v24 = vpop.permute.xlu1 %1755 }
 0x507   : > { %7599 = vst [vmem:[#allocation55_spill] sm:$0xff] %v5823_v24 }
 0x50b   : > { %4511 = vset.pattern.permute.xlu2 %v7531_v63 }
 0x50c   : > { %4510 = vset.pattern.permute.xlu1 %v4731_v6 }
 0x50d   : > { %v5831_v48 = vpop.permute.xlu2 %1792 }
 0x50e   : > { %7602 = vst [vmem:[#allocation76_spill] sm:$0xff] %v5831_v48 }
 0x513   : > { %1917 = vperm.xlu2 %4511, %v7580_v46  }
 0x514   : > { %1911 = vperm.xlu1 %4510, %v7580_v46  }
 0x516   : > { %v5829_v14 = vpop.permute.xlu1 %1768 }
 0x517   : > { %7601 = vst [vmem:[#allocation70_spill] sm:$0xff] %v5829_v14 }
 0x51b   : > { %4513 = vset.pattern.permute.xlu2 %v4765_v50 }
 0x51c   : > { %4512 = vset.pattern.permute.xlu1 %v4728_v5 }
 0x51d   : > { %v5837_v20 = vpop.permute.xlu2 %1804 }
 0x51e   : > { %7604 = vst [vmem:[#allocation49_spill] sm:$0xff] %v5837_v20 }
 0x523   : > { %1929 = vperm.xlu2 %4513, %v7580_v46  }
 0x524   : > { %1923 = vperm.xlu1 %4512, %v7580_v46  }
 0x526   : > { %v5835_v35 = vpop.permute.xlu1 %1786 }
 0x527   : > { %7603 = vst [vmem:[#allocation96_spill] sm:$0xff] %v5835_v35 }
 0x52b   : > { %4515 = vset.pattern.permute.xlu2 %v4720_v2 }
 0x52c   : > { %4514 = vset.pattern.permute.xlu1 %v4785_v58 }
 0x52d   : > { %v5843_v15 = vpop.permute.xlu2 %1823 }
 0x52e   : > { %7605 = vst [vmem:[#allocation57_spill] sm:$0xff] %v5843_v15 }
 0x533   : > { %1948 = vperm.xlu2 %4515, %v7581_v1  }
 0x534   : > { %1941 = vperm.xlu1 %4514, %v7580_v46  }
 0x536   : > { %v5841_v19 = vpop.permute.xlu1 %1798 }
 0x53b   : > { %4517 = vset.pattern.permute.xlu2 %v4731_v6 }
 0x53c   : > { %4516 = vset.pattern.permute.xlu1 %v4814_v4 }
 0x53d   : > { %v5850_v46 = vpop.permute.xlu2 %1835 }
 0x53e   : > { %7606 = vst [vmem:[#allocation97_spill] sm:$0xff] %v5850_v46 }
 0x543   : > { %1960 = vperm.xlu2 %4517, %v7581_v1  }
 0x544   : > { %1954 = vperm.xlu1 %4516, %v7581_v1  }
 0x546   : > { %v5847_v33 = vpop.permute.xlu1 %1817 }
 0x54b   : > { %4519 = vset.pattern.permute.xlu2 %v4765_v50 }
 0x54c   : > { %4518 = vset.pattern.permute.xlu1 %v4728_v5 }
 0x54d   : > { %v5856_v11 = vpop.permute.xlu2 %1853 }
 0x54e   : > { %7609 = vst [vmem:[#allocation100_spill] sm:$0xff] %v5856_v11 }
 0x553   : > { %1978 = vperm.xlu2 %4519, %v7581_v1  }
 0x554   : > { %1972 = vperm.xlu1 %4518, %v7581_v1  }
 0x55b   : > { %4521 = vset.pattern.permute.xlu2 %v4785_v58 }
 0x55c   : > { %4520 = vset.pattern.permute.xlu1 %v4793_v61 }
 0x563   : > { %1990 = vperm.xlu2 %4521, %v7581_v1  }
 0x564   : > { %1984 = vperm.xlu1 %4520, %v7581_v1   ;;  %v5853_v1 = vpop.permute.xlu1 %1829 }
 0x565   : > { %7607 = vst [vmem:[#allocation73_spill] sm:$0xff] %v5853_v1 }
 0x56b   : > { %4523 = vset.pattern.permute.xlu2 %v4731_v6 }
 0x56c   : > { %4522 = vset.pattern.permute.xlu1 %v4814_v4  ;;  %v5859_v49 = vpop.permute.xlu1 %1847 }
 0x56d   : > { %7610 = vst [vmem:[#allocation43_spill] sm:$0xff] %v5859_v49 }
 0x573   : > { %2009 = vperm.xlu2 %4523, %v7594_v8  }
 0x574   : > { %2003 = vperm.xlu1 %4522, %v7594_v8  }
 0x576   : > { %v5865_v51 = vpop.permute.xlu1 %1859 }
 0x577   : > { %7611 = vst [vmem:[#allocation52_spill] sm:$0xff] %v5865_v51 }
 0x57b   : > { %4525 = vset.pattern.permute.xlu2 %v4728_v5 }
 0x57c   : > { %4524 = vset.pattern.permute.xlu1 %v7531_v63 }
 0x583   : > { %2021 = vperm.xlu2 %4525, %v7594_v8  }
 0x584   : > { %2015 = vperm.xlu1 %4524, %v7594_v8  }
 0x586   : > { %v5871_v1 = vpop.permute.xlu1 %1911 }
 0x58b   : > { %4527 = vset.pattern.permute.xlu2 %v4785_v58 }
 0x58c   : > { %4526 = vset.pattern.permute.xlu1 %v4793_v61 }
 0x593   : > { %2039 = vperm.xlu2 %4527, %v7594_v8  }
 0x594   : > { %2033 = vperm.xlu1 %4526, %v7594_v8   ;;  %v7608_v8 = vld [vmem:[#allocation27_spill] sm:$0xff] }
 0x596   : > { %v5877_v49 = vpop.permute.xlu1 %1923 }
 0x59b   : > { %4529 = vset.pattern.permute.xlu2 %v4814_v4 }
 0x59c   : > { %4528 = vset.pattern.permute.xlu1 %v4720_v2 }
 0x5a3   : > { %2052 = vperm.xlu2 %4529, %v7598_v32  }
 0x5a4   : > { %2046 = vperm.xlu1 %4528, %v7598_v32  }
 0x5a6   : > { %v5883_v51 = vpop.permute.xlu1 %1941 }
 0x5ab   : > { %4532 = vset.pattern.permute.xlu2 %v4728_v5 }
 0x5ac   : > { %4531 = vset.pattern.permute.xlu1 %v7531_v63 }
 0x5b3   : > { %2070 = vperm.xlu2 %4532, %v7598_v32  }
 0x5b4   : > { %2064 = vperm.xlu1 %4531, %v7598_v32  }
 0x5b6   : > { %v5889_v43 = vpop.permute.xlu1 %1954 }
 0x5bb   : > { %4534 = vset.pattern.permute.xlu2 %v4793_v61 }
 0x5bc   : > { %4533 = vset.pattern.permute.xlu1 %v4765_v50 }
 0x5c3   : > { %2082 = vperm.xlu2 %4534, %v7598_v32  }
 0x5c4   : > { %2076 = vperm.xlu1 %4533, %v7598_v32   ;;  %v5862_v32 = vpop.permute.xlu2 %1899 }
 0x5c6   : > { %v5895_v21 = vpop.permute.xlu1 %1972 }
 0x5cb   : > { %4537 = vset.pattern.permute.xlu2 %v4814_v4 }
 0x5cc   : > { %4536 = vset.pattern.permute.xlu1 %v4720_v2  ;;  %v5868_v46 = vpop.permute.xlu2 %1917 }
 0x5d3   : > { %2197 = vperm.xlu2 %4537, %v7608_v8  }
 0x5d4   : > { %2191 = vperm.xlu1 %4536, %v7608_v8   ;;  %v5874_v11 = vpop.permute.xlu2 %1929 }
 0x5d6   : > { %v5901_v16 = vpop.permute.xlu1 %1984 }
 0x5d7   : > { %7614 = vst [vmem:[#allocation20_spill] sm:$0xff] %v5901_v16 }
 0x5db   : > { %4539 = vset.pattern.permute.xlu2 %v7531_v63 }
 0x5dc   : > { %4538 = vset.pattern.permute.xlu1 %v4731_v6  ;;  %v5880_v26 = vpop.permute.xlu2 %1948 }
 0x5e3   : > { %2209 = vperm.xlu2 %4539, %v7608_v8  }
 0x5e4   : > { %2203 = vperm.xlu1 %4538, %v7608_v8   ;;  %v5886_v15 = vpop.permute.xlu2 %1960 }
 0x5e6   : > { %v5907_v37 = vpop.permute.xlu1 %2003 }
 0x5e7   : > { %7615 = vst [vmem:[#allocation86_spill] sm:$0xff] %v5907_v37 }
 0x5eb   : > { %4542 = vset.pattern.permute.xlu2 %v4793_v61 }
 0x5ec   : > { %4541 = vset.pattern.permute.xlu1 %v4765_v50  ;;  %v5892_v20 = vpop.permute.xlu2 %1978 }
 0x5ed   : > { %7613 = vst [vmem:[#allocation99_spill] sm:$0xff] %v5892_v20 }
 0x5f3   : > { %2227 = vperm.xlu2 %4542, %v7608_v8  }
 0x5f4   : > { %2221 = vperm.xlu1 %4541, %v7608_v8   ;;  %v5898_v48 = vpop.permute.xlu2 %1990 }
 0x5f6   : > { %v5913_v10 = vpop.permute.xlu1 %2015 }
 0x5f7   : > { %7617 = vst [vmem:[#allocation78_spill] sm:$0xff] %v5913_v10  ;;  %v7621_v10 = vld [vmem:[#allocation33_spill] sm:$0xff] }
 0x5fb   : > { %4544 = vset.pattern.permute.xlu2 %v4720_v2 }
 0x5fc   : > { %4543 = vset.pattern.permute.xlu1 %v4785_v58  ;;  %v5904_v35 = vpop.permute.xlu2 %2009 }
 0x603   : > { %2240 = vperm.xlu2 %4544, %v7612_v39  }
 0x604   : > { %2233 = vperm.xlu1 %4543, %v7608_v8   ;;  %v5910_v8 = vpop.permute.xlu2 %2021 }
 0x605   : > { %7616 = vst [vmem:[#allocation74_spill] sm:$0xff] %v5910_v8  ;;  %v5927_v8 = vpop.f32.mrf.mxu0 }
 0x606   : > { %v5921_v24 = vpop.permute.xlu1 %2033 }
 0x607   : > { %7619 = vst [vmem:[#allocation60_spill] sm:$0xff] %v5921_v24 }
 0x60b   : > { %4547 = vset.pattern.permute.xlu2 %v7531_v63 }
 0x60c   : > { %4546 = vset.pattern.permute.xlu1 %v4731_v6  ;;  %v5918_v14 = vpop.permute.xlu2 %2039 }
 0x60d   : > { %7618 = vst [vmem:[#allocation54_spill] sm:$0xff] %v5918_v14  ;;  %v1295_v27 = vpop.f32.mrf.mxu0 }
 0x613   : > { %2258 = vperm.xlu2 %4547, %v7612_v39  }
 0x614   : > { %2252 = vperm.xlu1 %4546, %v7612_v39   ;;  %v5924_v37 = vpop.permute.xlu2 %2052 }
 0x615   : > { %7620 = vst [vmem:[#allocation103_spill] sm:$0xff] %v5924_v37 }
 0x616   : > { %v5929_v36 = vpop.permute.xlu1 %2046 }
 0x61b   : > { %4549 = vset.pattern.permute.xlu2 %v4765_v50 }
 0x61c   : > { %4548 = vset.pattern.permute.xlu1 %v4728_v5  ;;  %v5932_v0 = vpop.permute.xlu2 %2070 }
 0x61d   : > { %7622 = vst [vmem:[#allocation77_spill] sm:$0xff] %v5932_v0  ;;  %v5955_v0 = vpop.f32.mrf.mxu0 }
 0x623   : > { %2270 = vperm.xlu2 %4549, %v7612_v39  }
 0x624   : > { %2264 = vperm.xlu1 %4548, %v7612_v39   ;;  %v5941_v37 = vpop.permute.xlu2 %2082 }
 0x625   : > { %7625 = vst [vmem:[#allocation101_spill] sm:$0xff] %v5941_v37  ;;  %v7627_v37 = vmov 0.0   ;;  %v5968_v20 = vpop.f32.mrf.mxu0 }
 0x626   : > { %v5935_v14 = vpop.permute.xlu1 %2064 }
 0x627   : > { %7623 = vst [vmem:[#allocation80_spill] sm:$0xff] %v5935_v14 }
 0x62b   : > { %4552 = vset.pattern.permute.xlu2 %v4720_v2  ;;  %v5939_v2 = vadd.s32 4294967232, %v4722_v3 }
 0x62c   : > { %4551 = vset.pattern.permute.xlu1 %v4785_v58 }
 0x62d   : > { %7624 = vst [vmem:[#allocation62_spill] sm:$0xff] %v5939_v2 }
 0x633   : > { %2289 = vperm.xlu2 %4552, %v7621_v10  }
 0x634   : > { %2282 = vperm.xlu1 %4551, %v7612_v39   ;;  %v5951_v39 = vsel %vm1370_vm6, %v5939_v2, %v4722_v3 }
 0x635   : > { %vm1569_vm7 = vcmp.eq.s32.totalorder %v5951_v39, %v5384_v54  ;;  %vm2090_vm8 = vcmp.eq.s32.totalorder %v5951_v39, %v5862_v32  ;;  %vm1571_vm9 = vcmp.eq.s32.totalorder %v5951_v39, %v5710_v62  ;;  %vm2092_vm10 = vcmp.eq.s32.totalorder %v5951_v39, %v5871_v1 }
 0x636   : > { %v5945_v24 = vpop.permute.xlu1 %2076  ;;  %v4086_v14 = vsel %vm1569_vm7, 1.0, %v7627_v37  ;;  %v4118_v2 = vsel %vm2090_vm8, 1.0, %v7627_v37  ;;  %vm1575_vm12 = vcmp.eq.s32.totalorder %v5951_v39, %v5729_v38  ;;  %vm2099_vm13 = vcmp.eq.s32.totalorder %v5951_v39, %v5889_v43  ;;  %v7630_v43 = vld [vmem:[#allocation79_spill] sm:$0xff] }
 0x637   : > { %7626 = vst [vmem:[#allocation106_spill] sm:$0xff] %v5945_v24  ;;  %v5962_v24 = vpop.permute.xlu2 %2197  ;;  %v1861_v3 = vmul.f32 %v4086_v14, %v5780_v28  ;;  %vm1578_vm14 = vcmp.eq.s32.totalorder %v5951_v39, %v5726_v42  ;;  %vm1581_vm15 = vcmp.eq.s32.totalorder %v5951_v39, %v5732_v59  ;;  %vm2102_vm0 = vcmp.eq.s32.totalorder %v5951_v39, %v5895_v21 }
 0x638   : > { %vm2105_vm2 = vcmp.eq.s32.totalorder %v5951_v39, %v5898_v48  ;;  %vm1587_vm3 = vcmp.eq.s32.totalorder %v5951_v39, %v5759_v45  ;;  %vm2108_vm4 = vcmp.eq.s32.totalorder %v5951_v39, %v5904_v35  ;;  %v7638_v45 = vld [vmem:[#allocation75_spill] sm:$0xff]  ;;  %v7639_v35 = vld [vmem:[#allocation40_spill] sm:$0xff]  ;;  %vm1570_vm8 = vcmp.eq.s32.totalorder %v5951_v39, %v5717_v40 }
 0x639   : > { %v4104_v48 = vsel %vm1587_vm3, 1.0, %v7627_v37  ;;  %vm2091_vm7 = vcmp.eq.s32.totalorder %v5951_v39, %v7638_v45  ;;  %vm2097_vm3 = vcmp.eq.s32.totalorder %v5951_v39, %v5883_v51 }
 0x63b   : > { %4554 = vset.pattern.permute.xlu2 %v4731_v6 }
 0x63c   : > { %4553 = vset.pattern.permute.xlu1 %v4814_v4 }
 0x63f   : > { %v5972_v32 = vpop.permute.xlu2 %2209 }
 0x643   : > { %2301 = vperm.xlu2 %4554, %v7621_v10  }
 0x644   : > { %2295 = vperm.xlu1 %4553, %v7621_v10  }
 0x646   : > { %v2192_v16 = vpop.permute.xlu1 %2191 }
 0x647   : > { %v2382_v55 = vmul.f32 %v4118_v2, %v2192_v16  ;;  %v7628_v2 = vld [vmem:[#allocation88_spill] sm:$0xff]  ;;  %v4088_v16 = vsel %vm1571_vm9, 1.0, %v7627_v37 }
 0x648   : > { %vm2096_vm11 = vcmp.eq.s32.totalorder %v5951_v39, %v7628_v2  ;;  %v1863_v62 = vmul.f32 %v4088_v16, %v5787_v53  ;;  %v4092_v2 = vsel %vm1575_vm12, 1.0, %v7627_v37  ;;  %v6000_v16 = vpop.f32.mrf.mxu1  ;;  %vm2094_vm12 = vcmp.eq.s32.totalorder %v5951_v39, %v5877_v49 }
 0x649   : > { %v5966_v54 = vadd.f32 %v2382_v55, %v1861_v3  ;;  %v5982_v3 = vpop.f32.mrf.mxu0  ;;  %v4120_v55 = vsel %vm2092_vm10, 1.0, %v7627_v37  ;;  %v1867_v7 = vmul.f32 %v4092_v2, %v5805_v47  ;;  %vm1590_vm10 = vcmp.eq.s32.totalorder %v5951_v39, %v5765_v12 }
 0x64b   : > { %4557 = vset.pattern.permute.xlu2 %v4765_v50  ;;  %v4124_v50 = vsel %vm2096_vm11, 1.0, %v7627_v37  ;;  %vm1572_vm11 = vcmp.eq.s32.totalorder %v5951_v39, %v5723_v9 }
 0x64c   : > { %4556 = vset.pattern.permute.xlu1 %v4728_v5  ;;  %v4089_v49 = vsel %vm1572_vm11, 1.0, %v7627_v37 }
 0x64d   : > { %v2228_v28 = vpop.permute.xlu2 %2227 }
 0x64e   : > { %v2388_v17 = vmul.f32 %v4124_v50, %v2228_v28  ;;  %v4127_v50 = vsel %vm2099_vm13, 1.0, %v7627_v37  ;;  %vm2093_vm13 = vcmp.eq.s32.totalorder %v5951_v39, %v5868_v46 }
 0x64f   : > { %v2391_v28 = vmul.f32 %v4127_v50, %v7630_v43  ;;  %v6036_v50 = vpop.f32.mrf.mxu2 }
 0x650   : > { %v2420_v38 = vadd.f32 %v2388_v17, %v1867_v7 }
 0x651   : > { %v1305_v47 = vpop.f32.mrf.mxu0 }
 0x653   : > { %2319 = vperm.xlu2 %4557, %v7621_v10  }
 0x654   : > { %2313 = vperm.xlu1 %4556, %v7621_v10  }
 0x656   : > { %v2204_v14 = vpop.permute.xlu1 %2203 }
 0x657   : > { %v2384_v1 = vmul.f32 %v4120_v55, %v2204_v14  ;;  %v6006_v55 = vmul.f32 %v2420_v38, %v1305_v47  ;;  %v1312_v14 = vpop.f32.mrf.mxu1 }
 0x659   : > { %v2416_v34 = vadd.f32 %v2384_v1, %v1863_v62  ;;  %7631 = vst [vmem:[#allocation35_spill] sm:$0xff] %v6006_v55  ;;  %v2496_v17 = vsel %vm1232_vm5, %v6006_v55, 0.0 }
 0x65b   : > { %4559 = vset.pattern.permute.xlu2 %v4785_v58  ;;  %v5995_v13 = vmul.f32 %v2416_v34, %v1295_v27  ;;  %v4095_v27 = vsel %vm1578_vm14, 1.0, %v7627_v37  ;;  %vm2114_vm14 = vcmp.eq.s32.totalorder %v5951_v39, %v5929_v36 }
 0x65c   : > { %4558 = vset.pattern.permute.xlu1 %v4793_v61  ;;  %v1870_v34 = vmul.f32 %v4095_v27, %v5811_v30  ;;  %v7633_v30 = vld [vmem:[#allocation41_spill] sm:$0xff] }
 0x65d   : > { %7629 = vst [vmem:[#allocation56_spill] sm:$0xff] %v5995_v13  ;;  %v2484_v53 = vsel %vm1232_vm5, %v5995_v13, 0.0  ;;  %v6032_v38 = vpop.permute.xlu2 %2240  ;;  %v1879_v13 = vmul.f32 %v4104_v48, %v7639_v35  ;;  %v4121_v48 = vsel %vm2093_vm13, 1.0, %v7627_v37  ;;  %v7641_v35 = vld [vmem:[#allocation98_spill] sm:$0xff] }
 0x65e   : > { %2485 = vadd.xlane.f32.xlu0 %v2484_v53  ;;  %v2423_v7 = vadd.f32 %v2391_v28, %v1870_v34  ;;  %v6044_v28 = vpop.f32.mrf.mxu2  ;;  %v4098_v34 = vsel %vm1581_vm15, 1.0, %v7627_v37  ;;  %vm1573_vm15 = vcmp.eq.s32.totalorder %v5951_v39, %v5714_v29  ;;  %v2385_v36 = vmul.f32 %v4121_v48, %v5972_v32 }
 0x65f   : > { %7634 = vst [vmem:[#allocation82_spill] sm:$0xff] %v6044_v28 }
 0x660   : > { %v6014_v42 = vmul.f32 %v2423_v7, %v1312_v14  ;;  %v4130_v7 = vsel %vm2102_vm0, 1.0, %v7627_v37  ;;  %vm1593_vm0 = vcmp.eq.s32.totalorder %v5951_v39, %v5762_v31 }
 0x662   : > { %7632 = vst [vmem:[#allocation95_spill] sm:$0xff] %v6014_v42  ;;  %v2505_v62 = vsel %vm1232_vm5, %v6014_v42, 0.0  ;;  %v7636_v42 = vld [vmem:[#allocation46_spill] sm:$0xff] }
 0x663   : > { %2331 = vperm.xlu2 %4559, %v7621_v10   ;;  %vm1584_vm1 = vcmp.eq.s32.totalorder %v5951_v39, %v7636_v42 }
 0x664   : > { %2325 = vperm.xlu1 %4558, %v7621_v10   ;;  %v6022_v10 = vpop.f32.mrf.mxu1 }
 0x666   : > { %2497 = vadd.xlane.f32.xlu0 %v2496_v17  ;;  %v6026_v1 = vpop.permute.xlu1 %2221 }
 0x66b   : > { %4562 = vset.pattern.permute.xlu2 %v4731_v6 }
 0x66c   : > { %4561 = vset.pattern.permute.xlu1 %v4814_v4  ;;  %v6028_v2 = vpop.f32.mrf.mxu1 }
 0x66e   : > { %2506 = vadd.xlane.f32.xlu0 %v2505_v62  ;;  %v1873_v62 = vmul.f32 %v4098_v34, %v5813_v23 }
 0x673   : > { %2350 = vperm.xlu2 %4562, %v7633_v30  }
 0x674   : > { %2344 = vperm.xlu1 %4561, %v7633_v30   ;;  %v1320_v47 = vpop.f32.mrf.mxu1 }
 0x676   : > { %v6034_v53 = vpop.permute.xlu1 %2233 }
 0x67b   : > { %4564 = vset.pattern.permute.xlu2 %v4728_v5  ;;  %v6059_v5 = vpop.permute.xlu0 %1408 }
 0x67c   : > { %4563 = vset.pattern.permute.xlu1 %v7531_v63  ;;  %v6040_v63 = vpop.permute.xlu2 %2258  ;;  %v6052_v27 = vpop.f32.mrf.mxu1 }
 0x683   : > { %2362 = vperm.xlu2 %4564, %v7633_v30   ;;  %v6075_v23 = vpop.permute.xlu0 %1749 }
 0x684   : > { %2356 = vperm.xlu1 %4563, %v7633_v30   ;;  %v6055_v17 = vpop.permute.xlu2 %2270  ;;  %v6067_v4 = vpop.f32.mrf.mxu1 }
 0x686   : > { %v6042_v43 = vpop.permute.xlu1 %2252 }
 0x68b   : > { %4566 = vset.pattern.permute.xlu2 %v4785_v58  ;;  %v2028_v28 = vpop.permute.xlu0 %2027 }
 0x68c   : > { %4565 = vset.pattern.permute.xlu1 %v4793_v61  ;;  %v1335_v61 = vpop.f32.mrf.mxu2  ;;  %v1327_v55 = vpop.f32.mrf.mxu1  ;;  %vm2111_vm9 = vcmp.eq.s32.totalorder %v5951_v39, %v2028_v28 }
 0x68d   : > { %v6065_v6 = vpop.permute.xlu2 %2289  ;;  %v4139_v40 = vsel %vm2111_vm9, 1.0, %v7627_v37  ;;  %vm2100_vm9 = vcmp.eq.s32.totalorder %v5951_v39, %v5886_v15 }
 0x693   : > { %2380 = vperm.xlu2 %4566, %v7633_v30  }
 0x694   : > { %2374 = vperm.xlu1 %4565, %v7633_v30  }
 0x696   : > { %v2265_v14 = vpop.permute.xlu1 %2264 }
 0x697   : > { %v2394_v58 = vmul.f32 %v4130_v7, %v2265_v14  ;;  %v4133_v14 = vsel %vm2105_vm2, 1.0, %v7627_v37  ;;  %vm2095_vm2 = vcmp.eq.s32.totalorder %v5951_v39, %v5874_v11 }
 0x698   : > { %v4123_v11 = vsel %vm2095_vm2, 1.0, %v7627_v37 }
 0x699   : > { %v2426_v59 = vadd.f32 %v2394_v58, %v1873_v62  ;;  %v6073_v58 = vpop.f32.mrf.mxu2 }
 0x69a   : > { %7637 = vst [vmem:[#allocation104_spill] sm:$0xff] %v6073_v58 }
 0x69b   : > { %v6061_v21 = vmul.f32 %v2426_v59, %v1320_v47  ;;  %v4101_v47 = vsel %vm1584_vm1, 1.0, %v7627_v37  ;;  %v4136_v59 = vsel %vm2108_vm4, 1.0, %v7627_v37  ;;  %vm1574_vm1 = vcmp.eq.s32.totalorder %v5951_v39, %v6059_v5 }
 0x69c   : > { %v1876_v42 = vmul.f32 %v4101_v47, %v5819_v25  ;;  %vm1576_vm4 = vcmp.eq.s32.totalorder %v5951_v39, %v5720_v41 }
 0x69d   : > { %7635 = vst [vmem:[#allocation53_spill] sm:$0xff] %v6061_v21  ;;  %v2514_v30 = vsel %vm1232_vm5, %v6061_v21, 0.0  ;;  %v2302_v34 = vpop.permute.xlu2 %2301  ;;  %v4093_v41 = vsel %vm1576_vm4, 1.0, %v7627_v37 }
 0x69e   : > { %2515 = vadd.xlane.f32.xlu0 %v2514_v30  ;;  %v2400_v30 = vmul.f32 %v4136_v59, %v2302_v34  ;;  %v4090_v59 = vsel %vm1573_vm15, 1.0, %v7627_v37 }
 0x69f   : > { %v1865_v31 = vmul.f32 %v4090_v59, %v5799_v56 }
 0x6a0   : > { %v2432_v25 = vadd.f32 %v2400_v30, %v1879_v13  ;;  %v7640_v30 = vld [vmem:[#allocation66_spill] sm:$0xff] }
 0x6a1   : > { %v6096_v34 = vpop.f32.mrf.mxu2 }
 0x6a6   : > { %v2283_v7 = vpop.permute.xlu1 %2282 }
 0x6a7   : > { %v2397_v62 = vmul.f32 %v4133_v14, %v2283_v7  ;;  %v4119_v7 = vsel %vm2091_vm7, 1.0, %v7627_v37  ;;  %vm1577_vm7 = vcmp.eq.s32.totalorder %v5951_v39, %v5735_v60 }
 0x6a9   : > { %v2429_v21 = vadd.f32 %v2397_v62, %v1876_v42  ;;  %v6105_v42 = vmul.f32 %v2432_v25, %v1335_v61  ;;  %v4107_v62 = vsel %vm1590_vm10, 1.0, %v7627_v37  ;;  %v4122_v61 = vsel %vm2094_vm12, 1.0, %v7627_v37  ;;  %v1342_v46 = vpop.f32.mrf.mxu2 }
 0x6aa   : > { %v1882_v12 = vmul.f32 %v4107_v62, %v5841_v19  ;;  %v4142_v19 = vsel %vm2114_vm14, 1.0, %v7627_v37  ;;  %v2386_v45 = vmul.f32 %v4122_v61, %v7640_v30  ;;  %v1864_v25 = vmul.f32 %v4089_v49, %v7641_v35  ;;  %v7644_v30 = vld [vmem:[#allocation102_spill] sm:$0xff] }
 0x6ab   : > { %v6089_v58 = vmul.f32 %v2429_v21, %v1327_v55  ;;  %v2383_v55 = vmul.f32 %v4119_v7, %v5962_v24  ;;  %v4087_v21 = vsel %vm1570_vm8, 1.0, %v7627_v37  ;;  %v2532_v24 = vsel %vm1232_vm5, %v6105_v42, 0.0 }
 0x6ac   : > { %v1862_v13 = vmul.f32 %v4087_v21, %v5793_v52  ;;  %v6137_v7 = vmul.f32 %v5966_v54, %v5915_v57  ;;  %v2418_v57 = vadd.f32 %v2386_v45, %v1865_v31  ;;  %v2387_v21 = vmul.f32 %v4123_v11, %v6026_v1  ;;  %v7645_v45 = vld [vmem:[#allocation92_spill] sm:$0xff]  ;;  %v7648_v31 = vld [vmem:[#allocation99_spill] sm:$0xff] }
 0x6ad   : > { %v2523_v47 = vsel %vm1232_vm5, %v6089_v58, 0.0  ;;  %v2320_v14 = vpop.permute.xlu2 %2319  ;;  %vm2098_vm8 = vcmp.eq.s32.totalorder %v5951_v39, %v5880_v26  ;;  %v7642_v26 = vld [vmem:[#allocation37_spill] sm:$0xff]  ;;  %v4128_v49 = vsel %vm2100_vm9, 1.0, %v7627_v37  ;;  %vm2101_vm11 = vcmp.eq.s32.totalorder %v5951_v39, %v7644_v30 }
 0x6ae   : > { %2524 = vadd.xlane.f32.xlu0 %v2523_v47  ;;  %v2403_v28 = vmul.f32 %v4139_v40, %v2320_v14  ;;  %v2415_v52 = vadd.f32 %v2383_v55, %v1862_v13  ;;  %v2406_v47 = vmul.f32 %v4142_v19, %v5440_v18  ;;  %v2417_v55 = vadd.f32 %v2385_v36, %v1864_v25  ;;  %v1350_v40 = vpop.f32.mrf.mxu3  ;;  %v7643_v19 = vld [vmem:[#allocation109_spill] sm:$0xff] }
 0x6af   : > { %v2478_v5 = vsel %vm1232_vm5, %v6137_v7, 0.0  ;;  %v4125_v13 = vsel %vm2097_vm3, 1.0, %v7627_v37  ;;  %v4126_v61 = vsel %vm2098_vm8, 1.0, %v7627_v37  ;;  %vm1579_vm10 = vcmp.eq.s32.totalorder %v5951_v39, %v7642_v26  ;;  %v7646_v25 = vld [vmem:[#allocation45_spill] sm:$0xff]  ;;  %v7655_v26 = vld [vmem:[#allocation55_spill] sm:$0xff] }
 0x6b0   : > { %v2435_v9 = vadd.f32 %v2403_v28, %v1882_v12  ;;  %v6129_v29 = vmul.f32 %v2415_v52, %v5927_v8  ;;  %v4110_v8 = vsel %vm1593_vm0, 1.0, %v7627_v37  ;;  %v6162_v51 = vmul.f32 %v2417_v55, %v5955_v0 }
 0x6b1   : > { %v1885_v32 = vmul.f32 %v4110_v8, %v5847_v33  ;;  %v4091_v33 = vsel %vm1574_vm1, 1.0, %v7627_v37  ;;  %v2389_v62 = vmul.f32 %v4125_v13, %v6034_v53  ;;  %v6168_v12 = vmul.f32 %v2418_v57, %v5968_v20 }
 0x6b2   : > { %v6139_v14 = vmul.f32 %v2435_v9, %v1342_v46  ;;  %v2481_v18 = vsel %vm1232_vm5, %v6129_v29, 0.0  ;;  %v1866_v28 = vmul.f32 %v4091_v33, %v5795_v44  ;;  %v1868_v0 = vmul.f32 %v4093_v41, %v5801_v22  ;;  %v7649_v33 = vld [vmem:[#allocation34_spill] sm:$0xff] }
 0x6b3   : > { %v2438_v54 = vadd.f32 %v2406_v47, %v1885_v32  ;;  %v2487_v44 = vsel %vm1232_vm5, %v6162_v51, 0.0  ;;  %v2490_v53 = vsel %vm1232_vm5, %v6168_v12, 0.0  ;;  %v4094_v22 = vsel %vm1577_vm7, 1.0, %v7627_v37  ;;  %v7651_v41 = vld [vmem:[#allocation110_spill] sm:$0xff] }
 0x6b4   : > { %v2541_v56 = vsel %vm1232_vm5, %v6139_v14, 0.0  ;;  %v2419_v1 = vadd.f32 %v2387_v21, %v1866_v28  ;;  %v2421_v20 = vadd.f32 %v2389_v62, %v1868_v0  ;;  %v2390_v9 = vmul.f32 %v4126_v61, %v6032_v38  ;;  %v7650_v21 = vld [vmem:[#allocation20_spill] sm:$0xff]  ;;  %v7652_v0 = vld [vmem:[#allocation91_spill] sm:$0xff] }
 0x6b5   : > { %v6170_v52 = vmul.f32 %v2438_v54, %v1350_v40  ;;  %v1869_v48 = vmul.f32 %v4094_v22, %v7643_v19  ;;  %v2392_v36 = vmul.f32 %v4128_v49, %v6042_v43  ;;  %v4096_v59 = vsel %vm1579_vm10, 1.0, %v7627_v37  ;;  %v7647_v43 = vld [vmem:[#allocation58_spill] sm:$0xff] }
 0x6b6   : > { %2533 = vadd.xlane.f32.xlu0 %v2532_v24  ;;  %v6192_v15 = vmul.f32 %v2419_v1, %v5982_v3  ;;  %v1307_v24 = vpop.f32.mrf.mxu0  ;;  %v1871_v35 = vmul.f32 %v4096_v59, %v7645_v45  ;;  %vm1580_vm12 = vcmp.eq.s32.totalorder %v5951_v39, %v7646_v25  ;;  %v6207_v47 = vpop.f32.mrf.mxu3  ;;  %vm1582_vm13 = vcmp.eq.s32.totalorder %v5951_v39, %v7647_v43  ;;  %v7657_v59 = vld [vmem:[#allocation86_spill] sm:$0xff]  ;;  %v7660_v43 = vld [vmem:[#allocation69_spill] sm:$0xff] }
 0x6b7   : > { %v2550_v60 = vsel %vm1232_vm5, %v6170_v52, 0.0  ;;  %v6197_v46 = vmul.f32 %v2421_v20, %v1307_v24  ;;  %v2422_v38 = vadd.f32 %v2390_v9, %v1869_v48  ;;  %vm2103_vm14 = vcmp.eq.s32.totalorder %v5951_v39, %v7648_v31  ;;  %v7654_v20 = vld [vmem:[#allocation89_spill] sm:$0xff]  ;;  %v7656_v48 = vld [vmem:[#allocation70_spill] sm:$0xff] }
 0x6b8   : > { %v2493_v3 = vsel %vm1232_vm5, %v6192_v15, 0.0  ;;  %v2424_v8 = vadd.f32 %v2392_v36, %v1871_v35  ;;  %v4129_v55 = vsel %vm2101_vm11, 1.0, %v7627_v37  ;;  %v4099_v54 = vsel %vm1582_vm13, 1.0, %v7627_v37  ;;  %v7659_v35 = vld [vmem:[#allocation90_spill] sm:$0xff] }
 0x6b9   : > { %v2499_v32 = vsel %vm1232_vm5, %v6197_v46, 0.0  ;;  %v6218_v57 = vmul.f32 %v2422_v38, %v6000_v16  ;;  %vm2104_vm15 = vcmp.eq.s32.totalorder %v5951_v39, %v7650_v21  ;;  %vm2106_vm0 = vcmp.eq.s32.totalorder %v5951_v39, %v7651_v41 }
 0x6ba   : > { %v6228_v13 = vmul.f32 %v2424_v8, %v6022_v10  ;;  %v4132_v62 = vsel %vm2104_vm15, 1.0, %v7627_v37  ;;  %vm1583_vm1 = vcmp.eq.s32.totalorder %v5951_v39, %v7652_v0  ;;  %v4134_v61 = vsel %vm2106_vm0, 1.0, %v7627_v37 }
 0x6bb   : > { %v2502_v28 = vsel %vm1232_vm5, %v6218_v57, 0.0  ;;  %v4100_v22 = vsel %vm1583_vm1, 1.0, %v7627_v37  ;;  %v2398_v49 = vmul.f32 %v4134_v61, %v6065_v6  ;;  %vm2107_vm3 = vcmp.eq.s32.totalorder %v5951_v39, %v7657_v59  ;;  %v7671_v59 = vld [vmem:[#allocation50_spill] sm:$0xff] }
 0x6bc   : > { %2482 = vadd.xlane.f32.xlu2 %v2481_v18  ;;  %v2393_v18 = vmul.f32 %v4129_v55, %v6040_v63  ;;  %v1874_v63 = vmul.f32 %v4099_v54, %v6075_v23  ;;  %v2508_v10 = vsel %vm1232_vm5, %v6228_v13, 0.0  ;;  %v1875_v9 = vmul.f32 %v4100_v22, %v7655_v26  ;;  %v7669_v26 = vld [vmem:[#allocation76_spill] sm:$0xff] }
 0x6bd   : > { %vm1586_vm7 = vcmp.eq.s32.totalorder %v5951_v39, %v7659_v35  ;;  %vm1588_vm8 = vcmp.eq.s32.totalorder %v5951_v39, %v7660_v43  ;;  %vm1592_vm13 = vcmp.eq.s32.totalorder %v5951_v39, %v7671_v59 }
 0x6be   : > { %2479 = vadd.xlane.f32.xlu1 %v2478_v5  ;;  %2542 = vadd.xlane.f32.xlu0 %v2541_v56  ;;  %v4097_v5 = vsel %vm1580_vm12, 1.0, %v7627_v37  ;;  %v4131_v56 = vsel %vm2103_vm14, 1.0, %v7627_v37  ;;  %v6242_v23 = vpop.f32.mrf.mxu3  ;;  %v4103_v55 = vsel %vm1586_vm7, 1.0, %v7627_v37  ;;  %v4105_v21 = vsel %vm1588_vm8, 1.0, %v7627_v37 }
 0x6bf   : > { %v1872_v11 = vmul.f32 %v4097_v5, %v7649_v33  ;;  %v2395_v40 = vmul.f32 %v4131_v56, %v6055_v17  ;;  %v7653_v17 = vld [vmem:[#allocation67_spill] sm:$0xff]  ;;  %v7662_v5 = vld [vmem:[#allocation105_spill] sm:$0xff] }
 0x6c0   : > { %vm1585_vm2 = vcmp.eq.s32.totalorder %v5951_v39, %v7653_v17 }
 0x6c1   : > { %v2425_v16 = vadd.f32 %v2393_v18, %v1872_v11  ;;  %v2427_v1 = vadd.f32 %v2395_v40, %v1874_v63  ;;  %v4102_v24 = vsel %vm1585_vm2, 1.0, %v7627_v37  ;;  %v7661_v18 = vld [vmem:[#allocation94_spill] sm:$0xff]  ;;  %v7663_v11 = vld [vmem:[#allocation61_spill] sm:$0xff]  ;;  %v7664_v40 = vld [vmem:[#allocation96_spill] sm:$0xff] }
 0x6c2   : > { %v1877_v36 = vmul.f32 %v4102_v24, %v7656_v48  ;;  %v1878_v54 = vmul.f32 %v4103_v55, %v7661_v18  ;;  %vm1589_vm9 = vcmp.eq.s32.totalorder %v5951_v39, %v7663_v11  ;;  %v1880_v63 = vmul.f32 %v4105_v21, %v7664_v40 }
 0x6c3   : > { %v6254_v19 = vmul.f32 %v2427_v1, %v6052_v27  ;;  %v4106_v0 = vsel %vm1589_vm9, 1.0, %v7627_v37  ;;  %v2332_v1 = vpop.permute.xlu2 %2331  ;;  %v4109_v55 = vsel %vm1592_vm13, 1.0, %v7627_v37 }
 0x6c4   : > { %2488 = vadd.xlane.f32.xlu2 %v2487_v44  ;;  %v2296_v44 = vpop.permute.xlu1 %2295  ;;  %v2430_v6 = vadd.f32 %v2398_v49, %v1877_v36  ;;  %v7670_v49 = vld [vmem:[#allocation104_spill] sm:$0xff] }
 0x6c5   : > { %v2517_v27 = vsel %vm1232_vm5, %v6254_v19, 0.0 }
 0x6c6   : > { %2491 = vadd.xlane.f32.xlu1 %v2490_v53  ;;  %2551 = vadd.xlane.f32.xlu0 %v2550_v60  ;;  %v2396_v53 = vmul.f32 %v4132_v62, %v7654_v20  ;;  %v6246_v60 = vmul.f32 %v2425_v16, %v6028_v2  ;;  %v7658_v2 = vld [vmem:[#allocation78_spill] sm:$0xff]  ;;  %v6280_v33 = vmul.f32 %v2430_v6, %v6036_v50  ;;  %v7666_v62 = vld [vmem:[#allocation60_spill] sm:$0xff] }
 0x6c7   : > { %vm2109_vm4 = vcmp.eq.s32.totalorder %v5951_v39, %v7658_v2  ;;  %vm2112_vm11 = vcmp.eq.s32.totalorder %v5951_v39, %v7666_v62  ;;  %v7673_v6 = vld [vmem:[#allocation54_spill] sm:$0xff] }
 0x6c8   : > { %v2511_v30 = vsel %vm1232_vm5, %v6246_v60, 0.0  ;;  %v2428_v45 = vadd.f32 %v2396_v53, %v1875_v9  ;;  %v4137_v38 = vsel %vm2109_vm4, 1.0, %v7627_v37  ;;  %v2526_v50 = vsel %vm1232_vm5, %v6280_v33, 0.0  ;;  %v7668_v53 = vld [vmem:[#allocation82_spill] sm:$0xff] }
 0x6c9   : > { %v2401_v56 = vmul.f32 %v4137_v38, %v7662_v5  ;;  %v4140_v61 = vsel %vm2112_vm11, 1.0, %v7627_v37  ;;  %v1881_v9 = vmul.f32 %v4106_v0, %v7669_v26  ;;  %vm2113_vm14 = vcmp.eq.s32.totalorder %v5951_v39, %v7673_v6  ;;  %v7677_v62 = vld [vmem:[#allocation42_spill] sm:$0xff] }
 0x6ca   : > { %v6272_v8 = vmul.f32 %v2428_v45, %v6067_v4  ;;  %v7665_v4 = vld [vmem:[#allocation74_spill] sm:$0xff]  ;;  %v7672_v45 = vld [vmem:[#allocation49_spill] sm:$0xff]  ;;  %v4141_v18 = vsel %vm2113_vm14, 1.0, %v7627_v37  ;;  %vm2116_vm1 = vcmp.eq.s32.totalorder %v5951_v39, %v7677_v62  ;;  %v7688_v62 = vld [vmem:[#allocation51_spill] sm:$0xff] }
 0x6cb   : > { %vm2110_vm10 = vcmp.eq.s32.totalorder %v5951_v39, %v7665_v4  ;;  %v2433_v41 = vadd.f32 %v2401_v56, %v1880_v63  ;;  %v2405_v56 = vmul.f32 %v4141_v18, %v2332_v1  ;;  %v7676_v63 = vld [vmem:[#allocation48_spill] sm:$0xff]  ;;  %v4144_v59 = vsel %vm2116_vm1, 1.0, %v7627_v37  ;;  %v7686_v18 = vld [vmem:[#allocation106_spill] sm:$0xff] }
 0x6cc   : > { %2494 = vadd.xlane.f32.xlu2 %v2493_v3  ;;  %v4135_v3 = vsel %vm2107_vm3, 1.0, %v7627_v37  ;;  %v2314_v25 = vpop.permute.xlu1 %2313  ;;  %v1884_v4 = vmul.f32 %v4109_v55, %v7676_v63  ;;  %v7681_v1 = vld [vmem:[#allocation80_spill] sm:$0xff]  ;;  %vm2119_vm9 = vcmp.eq.s32.totalorder %v5951_v39, %v7686_v18  ;;  %vm2841_vm1 = vcmask 261312  }
 0x6cd   : > { %v2399_v31 = vmul.f32 %v4135_v3, %v2296_v44  ;;  %v7667_v44 = vld [vmem:[#allocation84_spill] sm:$0xff]  ;;  %v6304_v48 = vmul.f32 %v2433_v41, %v7670_v49  ;;  %vm2117_vm4 = vcmp.eq.s32.totalorder %v5951_v39, %v7681_v1 }
 0x6ce   : > { %2500 = vadd.xlane.f32.xlu1 %v2499_v32  ;;  %v6274_v32 = vpop.f32.mrf.mxu3  ;;  %vm1591_vm12 = vcmp.eq.s32.totalorder %v5951_v39, %v7667_v44  ;;  %v7674_v3 = vld [vmem:[#allocation72_spill] sm:$0xff] }
 0x6cf   : > { %v2431_v16 = vadd.f32 %v2399_v31, %v1878_v54  ;;  %v4108_v2 = vsel %vm1591_vm12, 1.0, %v7627_v37  ;;  %vm1594_vm15 = vcmp.eq.s32.totalorder %v5951_v39, %v7674_v3  ;;  %v2535_v31 = vsel %vm1232_vm5, %v6304_v48, 0.0  ;;  %v2351_v54 = vpop.permute.xlu2 %2350  ;;  %v7679_v41 = vld [vmem:[#allocation36_spill] sm:$0xff] }
 0x6d0   : > { %v1883_v35 = vmul.f32 %v4108_v2, %v7672_v45  ;;  %v4111_v21 = vsel %vm1594_vm15, 1.0, %v7627_v37  ;;  %vm1595_vm3 = vcmp.eq.s32.totalorder %v5951_v39, %v7679_v41  ;;  %v4147_v41 = vsel %vm2119_vm9, 1.0, %v7627_v37 }
 0x6d1   : > { %v6299_v22 = vmul.f32 %v2431_v16, %v7668_v53  ;;  %v7682_v53 = vld [vmem:[#allocation68_spill] sm:$0xff]  ;;  %v4112_v49 = vsel %vm1595_vm3, 1.0, %v7627_v37  ;;  %vm2833_vm15 = vcmask 130112   ;;  %vm2849_vm3 = vcmask 392512  }
 0x6d2   : > { %vm1597_vm7 = vcmp.eq.s32.totalorder %v5951_v39, %v7682_v53  ;;  %vm2906_vm9 = vcmask 1042434  }
 0x6d3   : > { %v2529_v38 = vsel %vm1232_vm5, %v6299_v22, 0.0 }
 0x6d4   : > { %2503 = vadd.xlane.f32.xlu2 %v2502_v28  ;;  %v2520_v28 = vsel %vm1232_vm5, %v6272_v8, 0.0 }
 0x6d6   : > { %2509 = vadd.xlane.f32.xlu1 %v2508_v10  ;;  %v4138_v10 = vsel %vm2110_vm10, 1.0, %v7627_v37  ;;  %v2326_v17 = vpop.permute.xlu1 %2325  ;;  %v6306_v36 = vpop.f32.mrf.mxu3  ;;  %vm2121_vm10 = vcmp.eq.s32.totalorder %v5951_v39, %v7688_v62 }
 0x6d7   : > { %v2402_v20 = vmul.f32 %v4138_v10, %v2314_v25  ;;  %v2404_v24 = vmul.f32 %v4140_v61, %v2326_v17  ;;  %v7675_v25 = vld [vmem:[#allocation103_spill] sm:$0xff]  ;;  %v2437_v10 = vadd.f32 %v2405_v56, %v1884_v4  ;;  %v7683_v61 = vld [vmem:[#allocation77_spill] sm:$0xff] }
 0x6d8   : > { %vm2115_vm0 = vcmp.eq.s32.totalorder %v5951_v39, %v7675_v25  ;;  %vm2118_vm8 = vcmp.eq.s32.totalorder %v5951_v39, %v7683_v61  ;;  %v4114_v25 = vsel %vm1597_vm7, 1.0, %v7627_v37  ;;  %vm2857_vm7 = vcmask 523712  }
 0x6d9   : > { %v2436_v43 = vadd.f32 %v2404_v24, %v1883_v35  ;;  %v4143_v40 = vsel %vm2115_vm0, 1.0, %v7627_v37  ;;  %v7684_v35 = vld [vmem:[#allocation97_spill] sm:$0xff]  ;;  %v4146_v55 = vsel %vm2118_vm8, 1.0, %v7627_v37  ;;  %vm2837_vm0 = vcmask 195712  }
 0x6da   : > { %vm2904_vm8 = vcmask 1041409  }
 0x6dc   : > { %2512 = vadd.xlane.f32.xlu2 %v2511_v30  ;;  %v1345_v30 = vpop.f32.mrf.mxu2 }
 0x6dd   : > { %v2363_v2 = vpop.permute.xlu2 %2362 }
 0x6de   : > { %2518 = vadd.xlane.f32.xlu1 %v2517_v27  ;;  %v2434_v27 = vadd.f32 %v2402_v20, %v1881_v9  ;;  %v6343_v44 = vpop.f32.mrf.mxu3 }
 0x6e0   : > { %v6325_v11 = vmul.f32 %v2434_v27, %v6096_v34  ;;  %v7680_v34 = vld [vmem:[#allocation57_spill] sm:$0xff]  ;;  %v2408_v27 = vmul.f32 %v4144_v59, %v2351_v54  ;;  %v7687_v54 = vld [vmem:[#allocation64_spill] sm:$0xff] }
 0x6e1   : > { %v1886_v0 = vmul.f32 %v4111_v21, %v7680_v34  ;;  %v7689_v34 = vld [vmem:[#allocation93_spill] sm:$0xff] }
 0x6e2   : > { %v2538_v17 = vsel %vm1232_vm5, %v6325_v11, 0.0  ;;  %vm1598_vm11 = vcmp.eq.s32.totalorder %v5951_v39, %v7689_v34  ;;  %v7697_v34 = vld [vmem:[#allocation13_spill] sm:$0xff] }
 0x6e3   : > { %v4115_v61 = vsel %vm1598_vm11, 1.0, %v7627_v37  ;;  %vm2947_vm11 = vcmask 654912  }
 0x6e4   : > { %2521 = vadd.xlane.f32.xlu2 %v2520_v28  ;;  %v6330_v28 = vmul.f32 %v2436_v43, %v1345_v30  ;;  %v1347_v20 = vpop.f32.mrf.mxu2  ;;  %v4145_v30 = vsel %vm2117_vm4, 1.0, %v7627_v37  ;;  %v7685_v43 = vld [vmem:[#allocation73_spill] sm:$0xff]  ;;  %vm2853_vm4 = vcmask 458112  }
 0x6e5   : > { %v6359_v3 = vmul.f32 %v2437_v10, %v1347_v20 }
 0x6e6   : > { %2527 = vadd.xlane.f32.xlu1 %v2526_v50  ;;  %v2345_v5 = vpop.permute.xlu1 %2344  ;;  %v7678_v50 = vld [vmem:[#allocation47_spill] sm:$0xff]  ;;  %v2544_v9 = vsel %vm1232_vm5, %v6330_v28, 0.0  ;;  %v1365_v10 = vpop.f32.mrf.mxu3 }
 0x6e7   : > { %v2407_v16 = vmul.f32 %v4143_v40, %v2345_v5  ;;  %vm1596_vm2 = vcmp.eq.s32.totalorder %v5951_v39, %v7678_v50  ;;  %v2410_v5 = vmul.f32 %v4146_v55, %v2363_v2  ;;  %v1889_v40 = vmul.f32 %v4114_v25, %v7687_v54  ;;  %v2369_v50 = vpop.permute.xlu0 %2368  ;;  %v7695_v55 = vld [vmem:[#allocation100_spill] sm:$0xff] }
 0x6e8   : > { %v4113_v24 = vsel %vm1596_vm2, 1.0, %v7627_v37  ;;  %v2547_v4 = vsel %vm1232_vm5, %v6359_v3, 0.0  ;;  %v2411_v20 = vmul.f32 %v4147_v41, %v2369_v50  ;;  %vm2845_vm2 = vcmask 326912  }
 0x6e9   : > { %v2439_v26 = vadd.f32 %v2407_v16, %v1886_v0  ;;  %v1888_v6 = vmul.f32 %v4113_v24, %v7684_v35  ;;  %v7692_v24 = vld [vmem:[#allocation43_spill] sm:$0xff]  ;;  %v7694_v35 = vld [vmem:[#allocation101_spill] sm:$0xff] }
 0x6ea   : > { %vm2120_vm14 = vcmp.eq.s32.totalorder %v5951_v39, %v7694_v35 }
 0x6eb   : > { %v6370_v21 = vmul.f32 %v2439_v26, %v6207_v47  ;;  %v2442_v47 = vadd.f32 %v2410_v5, %v1889_v40  ;;  %v4149_v26 = vsel %vm2121_vm10, 1.0, %v7627_v37  ;;  %vm2908_vm10 = vcmask 1043459  }
 0x6ec   : > { %2530 = vadd.xlane.f32.xlu2 %v2529_v38 }
 0x6ed   : > { %v2553_v0 = vsel %vm1232_vm5, %v6370_v21, 0.0  ;;  %v6401_v2 = vmul.f32 %v2442_v47, %v6306_v36  ;;  %v6438_v47 = vadd.s32 4294967288, %v7697_v34 }
 0x6ee   : > { %2536 = vadd.xlane.f32.xlu1 %v2535_v31  ;;  %v1887_v31 = vmul.f32 %v4112_v49, %v7685_v43  ;;  %v1890_v49 = vmul.f32 %v4115_v61, %v7692_v24  ;;  %v1367_v54 = vpop.f32.mrf.mxu3 }
 0x6ef   : > { %v2562_v43 = vsel %vm1232_vm5, %v6401_v2, 0.0  ;;  %v2486_v41 = vpop.xlane.xlu0 %2485 }
 0x6f0   : > { %v2440_v63 = vadd.f32 %v2408_v27, %v1887_v31  ;;  %v4148_v31 = vsel %vm2120_vm14, 1.0, %v7627_v37  ;;  %vm2959_vm14 = vcmask 851712  }
 0x6f2   : > { %v6390_v53 = vmul.f32 %v2440_v63, %v6242_v23  ;;  %v7693_v23 = vld [vmem:[#allocation52_spill] sm:$0xff] }
 0x6f4   : > { %2539 = vadd.xlane.f32.xlu2 %v2538_v17  ;;  %v7690_v17 = vld [vmem:[#allocation71_spill] sm:$0xff]  ;;  %v2556_v27 = vsel %vm1232_vm5, %v6390_v53, 0.0 }
 0x6f5   : > { %vm1600_vm12 = vcmp.eq.s32.totalorder %v5951_v39, %v7690_v17 }
 0x6f6   : > { %v2357_v45 = vpop.permute.xlu1 %2356  ;;  %2545 = vadd.xlane.f32.xlu1 %v2544_v9  ;;  %v7691_v9 = vld [vmem:[#allocation87_spill] sm:$0xff] }
 0x6f7   : > { %v2409_v38 = vmul.f32 %v4145_v30, %v2357_v45  ;;  %vm1599_vm13 = vcmp.eq.s32.totalorder %v5951_v39, %v7691_v9  ;;  %v4117_v30 = vsel %vm1600_vm12, 1.0, %v7627_v37  ;;  %vm2951_vm12 = vcmask 720512  }
 0x6f8   : > { %v1892_v45 = vmul.f32 %v4117_v30, %v7693_v23  ;;  %v6474_v23 = vadd.s32 4294967256, %v7697_v34 }
 0x6f9   : > { %v2441_v56 = vadd.f32 %v2409_v38, %v1888_v6  ;;  %v2443_v6 = vadd.f32 %v2411_v20, %v1890_v49  ;;  %v4116_v38 = vsel %vm1599_vm13, 1.0, %v7627_v37  ;;  %v2498_v20 = vpop.xlane.xlu0 %2497  ;;  %vm2955_vm13 = vcmask 786112  }
 0x6fa   : > { %v1891_v18 = vmul.f32 %v4116_v38, %v7695_v55 }
 0x6fb   : > { %v6376_v16 = vmul.f32 %v2441_v56, %v6274_v32  ;;  %v2381_v32 = vpop.permute.xlu2 %2380  ;;  %v6415_v56 = vmul.f32 %v2443_v6, %v6343_v44  ;;  %v7696_v44 = vld [vmem:[#allocation56_spill] sm:$0xff]  ;;  %v6479_v6 = vadd.s32 4294967240, %v7697_v34 }
 0x6fc   : > { %2548 = vadd.xlane.f32.xlu2 %v2547_v4  ;;  %v2413_v59 = vmul.f32 %v4149_v26, %v2381_v32  ;;  %v6460_v26 = vadd.s32 4294967264, %v7697_v34 }
 0x6fd   : > { %v2559_v1 = vsel %vm1232_vm5, %v6376_v16, 0.0  ;;  %v2565_v4 = vsel %vm1232_vm5, %v6415_v56, 0.0 }
 0x6fe   : > { %2554 = vadd.xlane.f32.xlu1 %v2553_v0  ;;  %2560 = vadd.xlane.f32.xlu0 %v2559_v1  ;;  %v2445_v25 = vadd.f32 %v2413_v59, %v1892_v45  ;;  %v6441_v0 = vadd.s32 4294967280, %v7697_v34  ;;  %v7699_v59 = vld [vmem:[#allocation95_spill] sm:$0xff] }
 0x700   : > { %v6417_v63 = vmul.f32 %v2445_v25, %v1367_v54 }
 0x701   : > { %v2507_v35 = vpop.xlane.xlu0 %2506 }
 0x702   : > { %v2571_v50 = vsel %vm1232_vm5, %v6417_v63, 0.0 }
 0x704   : > { %2557 = vadd.xlane.f32.xlu2 %v2556_v27 }
 0x706   : > { %v2375_v36 = vpop.permute.xlu1 %2374  ;;  %2563 = vadd.xlane.f32.xlu1 %v2562_v43 }
 0x707   : > { %v2412_v5 = vmul.f32 %v4148_v31, %v2375_v36  ;;  %v7700_v36 = vld [vmem:[#allocation53_spill] sm:$0xff] }
 0x709   : > { %v2444_v40 = vadd.f32 %v2412_v5, %v1891_v18  ;;  %v2860_v18 = vperm.slane %v2507_v35, %v6438_v47 }
 0x70b   : > { %v6421_v62 = vmul.f32 %v2444_v40, %v1365_v10  ;;  %v7698_v10 = vld [vmem:[#allocation35_spill] sm:$0xff] }
 0x70c   : > { %2566 = vadd.xlane.f32.xlu2 %v2565_v4 }
 0x70d   : > { %v2568_v37 = vsel %vm1232_vm5, %v6421_v62, 0.0 }
 0x70e   : > { %2569 = vadd.xlane.f32.xlu0 %v2568_v37  ;;  %2572 = vadd.xlane.f32.xlu1 %v2571_v50 }
 0x711   : > { %v2516_v5 = vpop.xlane.xlu0 %2515 }
 0x722   : > { %2608 = vrot.lane.b32.xlu0 %v6129_v29, %s4647_s22 }
 0x724   : > { %2606 = vrot.lane.b32.xlu2 %v6137_v7, %s4647_s22 }
 0x727   : > { %2610 = vrot.lane.b32.xlu1 %v7696_v44, %s4647_s22 }
 0x72a   : > { %2612 = vrot.lane.b32.xlu0 %v6162_v51, %s4647_s22 }
 0x72c   : > { %2614 = vrot.lane.b32.xlu2 %v6168_v12, %s4647_s22  ;;  %v2836_v12 = vperm.slane %v2486_v41, %v6441_v0  ;;  %v2866_v41 = vperm.slane %v2516_v5, %v6460_v26 }
 0x72f   : > { %2616 = vrot.lane.b32.xlu1 %v6192_v15, %s4647_s22  ;;  %v2483_v29 = vpop.xlane.xlu2 %2482  ;;  %v6454_v15 = vadd.s32 4294967272, %v7697_v34 }
 0x730   : > { %v2832_v7 = vperm.slane %v2483_v29, %v6438_v47 }
 0x731   : > { %v2480_v1 = vpop.xlane.xlu1 %2479 }
 0x732   : > { %v2830_v51 = vperm.slane %v2480_v1, %v7697_v34  ;;  %2618 = vrot.lane.b32.xlu0 %v7698_v10, %s4647_s22 }
 0x734   : > { %v2834_v32 = vsel %vm2833_vm15, %v2832_v7, %v2830_v51  ;;  %2620 = vrot.lane.b32.xlu2 %v6197_v46, %s4647_s22 }
 0x735   : > { %v2838_v17 = vsel %vm2837_vm0, %v2836_v12, %v2834_v32 }
 0x737   : > { %2622 = vrot.lane.b32.xlu1 %v6218_v57, %s4647_s22  ;;  %v2489_v61 = vpop.xlane.xlu2 %2488  ;;  %v6471_v57 = vadd.s32 4294967248, %v7697_v34 }
 0x738   : > { %v2840_v9 = vperm.slane %v2489_v61, %v6454_v15 }
 0x739   : > { %v2492_v24 = vpop.xlane.xlu1 %2491 }
 0x73a   : > { %v2842_v46 = vsel %vm2841_vm1, %v2840_v9, %v2838_v17  ;;  %v2844_v49 = vperm.slane %v2492_v24, %v6460_v26  ;;  %2624 = vrot.lane.b32.xlu0 %v7699_v59, %s4647_s22 }
 0x73c   : > { %v2846_v30 = vsel %vm2845_vm2, %v2844_v49, %v2842_v46  ;;  %2626 = vrot.lane.b32.xlu2 %v6228_v13, %s4647_s22  ;;  %v2852_v13 = vperm.slane %v2498_v20, %v6471_v57 }
 0x73f   : > { %2628 = vrot.lane.b32.xlu1 %v6246_v60, %s4647_s22  ;;  %v2495_v45 = vpop.xlane.xlu2 %2494 }
 0x740   : > { %v2848_v27 = vperm.slane %v2495_v45, %v6474_v23 }
 0x741   : > { %v2501_v38 = vpop.xlane.xlu1 %2500 }
 0x742   : > { %v2850_v25 = vsel %vm2849_vm3, %v2848_v27, %v2846_v30  ;;  %v2856_v43 = vperm.slane %v2501_v38, %v6479_v6  ;;  %2630 = vrot.lane.b32.xlu0 %v7700_v36, %s4647_s22 }
 0x743   : > { %v2854_v60 = vsel %vm2853_vm4, %v2852_v13, %v2850_v25 }
 0x744   : > { %v2858_v31 = vsel %vm2857_vm7, %v2856_v43, %v2854_v60  ;;  %2632 = vrot.lane.b32.xlu2 %v6254_v19, %s4647_s22 }
 0x747   : > { %2634 = vrot.lane.b32.xlu1 %v6272_v8, %s4647_s22  ;;  %v2504_v55 = vpop.xlane.xlu2 %2503  ;;  %v2525_v8 = vpop.xlane.xlu0 %2524 }
 0x748   : > { %v2859_v54 = vperm.slane %v2504_v55, %v7697_v34  ;;  %v2872_v10 = vperm.slane %v2525_v8, %v6479_v6 }
 0x749   : > { %v2510_v40 = vpop.xlane.xlu1 %2509 }
 0x74a   : > { %v2861_v4 = vsel %vm2833_vm15, %v2860_v18, %v2859_v54  ;;  %v2862_v37 = vperm.slane %v2510_v40, %v6441_v0  ;;  %2636 = vrot.lane.b32.xlu0 %v6089_v58, %s4647_s22 }
 0x74c   : > { %v2863_v50 = vsel %vm2837_vm0, %v2862_v37, %v2861_v4  ;;  %2638 = vrot.lane.b32.xlu2 %v6280_v33, %s4647_s22 }
 0x74f   : > { %2640 = vrot.lane.b32.xlu1 %v6299_v22, %s4647_s22  ;;  %v2513_v19 = vpop.xlane.xlu2 %2512  ;;  %v2534_v32 = vpop.xlane.xlu0 %2533 }
 0x750   : > { %v2864_v44 = vperm.slane %v2513_v19, %v6454_v15  ;;  %v2877_v9 = vperm.slane %v2534_v32, %v6441_v0 }
 0x751   : > { %v2519_v29 = vpop.xlane.xlu1 %2518 }
 0x752   : > { %v2865_v7 = vsel %vm2841_vm1, %v2864_v44, %v2863_v50  ;;  %v2868_v1 = vperm.slane %v2519_v29, %v6474_v23  ;;  %2642 = vrot.lane.b32.xlu0 %v6105_v42, %s4647_s22 }
 0x753   : > { %v2867_v58 = vsel %vm2845_vm2, %v2866_v41, %v2865_v7 }
 0x754   : > { %v2869_v33 = vsel %vm2849_vm3, %v2868_v1, %v2867_v58  ;;  %2644 = vrot.lane.b32.xlu2 %v6304_v48, %s4647_s22 }
 0x757   : > { %2646 = vrot.lane.b32.xlu1 %v6325_v11, %s4647_s22  ;;  %v2522_v22 = vpop.xlane.xlu2 %2521  ;;  %v2543_v49 = vpop.xlane.xlu0 %2542 }
 0x758   : > { %v2870_v51 = vperm.slane %v2522_v22, %v6471_v57  ;;  %v2883_v45 = vperm.slane %v2543_v49, %v6474_v23 }
 0x759   : > { %v2528_v12 = vpop.xlane.xlu1 %2527 }
 0x75a   : > { %v2871_v42 = vsel %vm2853_vm4, %v2870_v51, %v2869_v33  ;;  %2648 = vrot.lane.b32.xlu0 %v6139_v14, %s4647_s22  ;;  %v2874_v20 = vperm.slane %v2528_v12, %v7697_v34 }
 0x75b   : > { %v2873_v17 = vsel %vm2857_vm7, %v2872_v10, %v2871_v42 }
 0x75c   : > { %2650 = vrot.lane.b32.xlu2 %v6330_v28, %s4647_s22  ;;  %v2905_v48 = vsel %vm2904_vm8, %v2873_v17, %v2858_v31 }
 0x75f   : > { %2652 = vrot.lane.b32.xlu1 %v6359_v3, %s4647_s22  ;;  %v2531_v11 = vpop.xlane.xlu2 %2530 }
 0x760   : > { %v2875_v61 = vperm.slane %v2531_v11, %v6438_v47 }
 0x761   : > { %v2537_v24 = vpop.xlane.xlu1 %2536 }
 0x762   : > { %v2876_v14 = vsel %vm2833_vm15, %v2875_v61, %v2874_v20  ;;  %v2879_v46 = vperm.slane %v2537_v24, %v6454_v15  ;;  %2654 = vrot.lane.b32.xlu0 %v6170_v52, %s4647_s22 }
 0x763   : > { %v2878_v28 = vsel %vm2837_vm0, %v2877_v9, %v2876_v14 }
 0x764   : > { %v2880_v3 = vsel %vm2841_vm1, %v2879_v46, %v2878_v28  ;;  %2656 = vrot.lane.b32.xlu2 %v6370_v21, %s4647_s22 }
 0x767   : > { %2658 = vrot.lane.b32.xlu1 %v6390_v53, %s4647_s22  ;;  %v2540_v59 = vpop.xlane.xlu2 %2539  ;;  %v2552_v53 = vpop.xlane.xlu0 %2551 }
 0x768   : > { %v2881_v30 = vperm.slane %v2540_v59, %v6460_v26  ;;  %v2889_v36 = vperm.slane %v2552_v53, %v7697_v34 }
 0x769   : > { %v2546_v35 = vpop.xlane.xlu1 %2545 }
 0x76a   : > { %v2882_v27 = vsel %vm2845_vm2, %v2881_v30, %v2880_v3  ;;  %v2885_v52 = vperm.slane %v2546_v35, %v6471_v57  ;;  %2660 = vrot.lane.b32.xlu0 %v6376_v16, %s4647_s22 }
 0x76b   : > { %v2884_v13 = vsel %vm2849_vm3, %v2883_v45, %v2882_v27 }
 0x76c   : > { %v2886_v21 = vsel %vm2853_vm4, %v2885_v52, %v2884_v13  ;;  %2662 = vrot.lane.b32.xlu2 %v6401_v2, %s4647_s22 }
 0x76f   : > { %2664 = vrot.lane.b32.xlu1 %v6415_v56, %s4647_s22  ;;  %v2549_v38 = vpop.xlane.xlu2 %2548 }
 0x770   : > { %v2887_v25 = vperm.slane %v2549_v38, %v6479_v6 }
 0x771   : > { %v2555_v43 = vpop.xlane.xlu1 %2554  ;;  %v2561_v56 = vpop.xlane.xlu0 %2560 }
 0x772   : > { %v2888_v16 = vsel %vm2857_vm7, %v2887_v25, %v2886_v21  ;;  %v2890_v60 = vperm.slane %v2555_v43, %v6438_v47  ;;  %2666 = vrot.lane.b32.xlu0 %v6421_v62, %s4647_s22  ;;  %v2894_v5 = vperm.slane %v2561_v56, %v6454_v15 }
 0x773   : > { %v2907_v2 = vsel %vm2906_vm9, %v2888_v16, %v2905_v48 }
 0x774   : > { %v2891_v31 = vsel %vm2833_vm15, %v2890_v60, %v2889_v36  ;;  %2668 = vrot.lane.b32.xlu2 %v6417_v63, %s4647_s22  ;;  %vm2963_vm15 = vcmask 917312  }
 0x777   : > { %v2558_v55 = vpop.xlane.xlu2 %2557 }
 0x778   : > { %v2892_v18 = vperm.slane %v2558_v55, %v6441_v0 }
 0x779   : > { %v2564_v54 = vpop.xlane.xlu1 %2563 }
 0x77a   : > { %v2893_v40 = vsel %vm2837_vm0, %v2892_v18, %v2891_v31  ;;  %v2896_v47 = vperm.slane %v2564_v54, %v6460_v26  ;;  %vm2967_vm0 = vcmask 982912  }
 0x77b   : > { %v2895_v62 = vsel %vm2841_vm1, %v2894_v5, %v2893_v40  ;;  %vm2971_vm1 = vcmask 1048512  }
 0x77c   : > { %v2897_v4 = vsel %vm2845_vm2, %v2896_v47, %v2895_v62 }
 0x77f   : > { %v2567_v37 = vpop.xlane.xlu2 %2566 }
 0x780   : > { %v2898_v50 = vperm.slane %v2567_v37, %v6474_v23 }
 0x781   : > { %v2570_v19 = vpop.xlane.xlu0 %2569  ;;  %v2573_v63 = vpop.xlane.xlu1 %2572 }
 0x782   : > { %v2899_v8 = vsel %vm2849_vm3, %v2898_v50, %v2897_v4  ;;  %v2900_v0 = vperm.slane %v2570_v19, %v6471_v57  ;;  %v2902_v15 = vperm.slane %v2573_v63, %v6479_v6 }
 0x784   : > { %v2901_v44 = vsel %vm2853_vm4, %v2900_v0, %v2899_v8 }
 0x785   : > { %v2903_v26 = vsel %vm2857_vm7, %v2902_v15, %v2901_v44 }
 0x786   : > { %v6575_v41 = vsel %vm2908_vm10, %v2903_v26, %v2907_v2 }
 0x787   : > { %v2607_v29 = vpop.permute.xlu2 %2606 }
 0x788   : > { %v2702_v58 = vsel %vm1232_vm5, %v2607_v29, 0.0 }
 0x78f   : > { %v2615_v7 = vpop.permute.xlu2 %2614 }
 0x790   : > { %v2714_v32 = vsel %vm1232_vm5, %v2615_v7, 0.0 }
 0x794   : > { %v2609_v1 = vpop.permute.xlu0 %2608 }
 0x795   : > { %v2705_v57 = vsel %vm1232_vm5, %v2609_v1, 0.0 }
 0x797   : > { %v2621_v23 = vpop.permute.xlu2 %2620 }
 0x798   : > { %v2723_v61 = vsel %vm1232_vm5, %v2621_v23, 0.0 }
 0x799   : > { %v2611_v33 = vpop.permute.xlu1 %2610  ;;  %2703 = vadd.xlane.f32.xlu1 %v2702_v58  ;;  %v6610_v58 = vadd.s32 4294967224, %v7697_v34 }
 0x79a   : > { %v2708_v6 = vsel %vm1232_vm5, %v2611_v33, 0.0  ;;  %v6613_v33 = vadd.s32 4294967216, %v7697_v34 }
 0x79c   : > { %2706 = vadd.xlane.f32.xlu0 %v2705_v57  ;;  %v2613_v22 = vpop.permute.xlu0 %2612 }
 0x79d   : > { %2709 = vadd.xlane.f32.xlu2 %v2708_v6  ;;  %v2711_v10 = vsel %vm1232_vm5, %v2613_v22, 0.0  ;;  %v7701_v6 = vld [vmem:[#allocation62_spill] sm:$0xff] }
 0x79f   : > { %v2627_v51 = vpop.permute.xlu2 %2626 }
 0x7a0   : > { %v2732_v49 = vsel %vm1232_vm5, %v2627_v51, 0.0 }
 0x7a1   : > { %v2617_v12 = vpop.permute.xlu1 %2616  ;;  %2712 = vadd.xlane.f32.xlu1 %v2711_v10 }
 0x7a2   : > { %v2717_v42 = vsel %vm1232_vm5, %v2617_v12, 0.0 }
 0x7a4   : > { %v2619_v17 = vpop.permute.xlu0 %2618  ;;  %2715 = vadd.xlane.f32.xlu0 %v2714_v32  ;;  %v6619_v32 = vadd.s32 4294967208, %v7697_v34 }
 0x7a5   : > { %2718 = vadd.xlane.f32.xlu2 %v2717_v42  ;;  %v2720_v11 = vsel %vm1232_vm5, %v2619_v17, 0.0 }
 0x7a7   : > { %v2633_v48 = vpop.permute.xlu2 %2632 }
 0x7a8   : > { %v2741_v27 = vsel %vm1232_vm5, %v2633_v48, 0.0 }
 0x7a9   : > { %v2623_v20 = vpop.permute.xlu1 %2622  ;;  %2721 = vadd.xlane.f32.xlu1 %v2720_v11  ;;  %v6624_v11 = vadd.s32 4294967200, %v7697_v34 }
 0x7aa   : > { %v2726_v9 = vsel %vm1232_vm5, %v2623_v20, 0.0 }
 0x7ac   : > { %v2625_v24 = vpop.permute.xlu0 %2624  ;;  %2724 = vadd.xlane.f32.xlu0 %v2723_v61 }
 0x7ad   : > { %2727 = vadd.xlane.f32.xlu2 %v2726_v9  ;;  %v2729_v46 = vsel %vm1232_vm5, %v2625_v24, 0.0 }
 0x7af   : > { %v2639_v14 = vpop.permute.xlu2 %2638 }
 0x7b0   : > { %v2750_v53 = vsel %vm1232_vm5, %v2639_v14, 0.0 }
 0x7b1   : > { %v2629_v28 = vpop.permute.xlu1 %2628  ;;  %2730 = vadd.xlane.f32.xlu1 %v2729_v46 }
 0x7b2   : > { %v2735_v3 = vsel %vm1232_vm5, %v2629_v28, 0.0 }
 0x7b4   : > { %v2631_v59 = vpop.permute.xlu0 %2630  ;;  %2733 = vadd.xlane.f32.xlu0 %v2732_v49 }
 0x7b5   : > { %2736 = vadd.xlane.f32.xlu2 %v2735_v3  ;;  %v2738_v45 = vsel %vm1232_vm5, %v2631_v59, 0.0 }
 0x7b7   : > { %v2645_v30 = vpop.permute.xlu2 %2644 }
 0x7b8   : > { %v2759_v56 = vsel %vm1232_vm5, %v2645_v30, 0.0 }
 0x7b9   : > { %v2635_v35 = vpop.permute.xlu1 %2634  ;;  %2739 = vadd.xlane.f32.xlu1 %v2738_v45 }
 0x7ba   : > { %v2744_v52 = vsel %vm1232_vm5, %v2635_v35, 0.0 }
 0x7bc   : > { %v2637_v13 = vpop.permute.xlu0 %2636  ;;  %2742 = vadd.xlane.f32.xlu0 %v2741_v27 }
 0x7bd   : > { %2745 = vadd.xlane.f32.xlu2 %v2744_v52  ;;  %v2747_v8 = vsel %vm1232_vm5, %v2637_v13, 0.0 }
 0x7bf   : > { %v2651_v21 = vpop.permute.xlu2 %2650 }
 0x7c0   : > { %v2768_v26 = vsel %vm1232_vm5, %v2651_v21, 0.0 }
 0x7c1   : > { %v2641_v38 = vpop.permute.xlu1 %2640  ;;  %2751 = vadd.xlane.f32.xlu1 %v2750_v53 }
 0x7c2   : > { %v2753_v25 = vsel %vm1232_vm5, %v2641_v38, 0.0 }
 0x7c4   : > { %v2643_v43 = vpop.permute.xlu0 %2642  ;;  %2754 = vadd.xlane.f32.xlu0 %v2753_v25 }
 0x7c5   : > { %v2756_v36 = vsel %vm1232_vm5, %v2643_v43, 0.0 }
 0x7c6   : > { %2757 = vadd.xlane.f32.xlu2 %v2756_v36 }
 0x7c7   : > { %v2657_v16 = vpop.permute.xlu2 %2656 }
 0x7c8   : > { %v2777_v2 = vsel %vm1232_vm5, %v2657_v16, 0.0 }
 0x7c9   : > { %v2647_v60 = vpop.permute.xlu1 %2646 }
 0x7ca   : > { %v2762_v18 = vsel %vm1232_vm5, %v2647_v60, 0.0 }
 0x7cc   : > { %v2649_v31 = vpop.permute.xlu0 %2648  ;;  %2778 = vadd.xlane.f32.xlu0 %v2777_v2 }
 0x7cd   : > { %v2765_v0 = vsel %vm1232_vm5, %v2649_v31, 0.0 }
 0x7ce   : > { %2760 = vadd.xlane.f32.xlu2 %v2759_v56 }
 0x7cf   : > { %v2663_v40 = vpop.permute.xlu2 %2662 }
 0x7d0   : > { %v2786_v62 = vsel %vm1232_vm5, %v2663_v40, 0.0 }
 0x7d1   : > { %v2653_v55 = vpop.permute.xlu1 %2652 }
 0x7d2   : > { %v2771_v29 = vsel %vm1232_vm5, %v2653_v55, 0.0 }
 0x7d4   : > { %v2655_v5 = vpop.permute.xlu0 %2654  ;;  %2763 = vadd.xlane.f32.xlu0 %v2762_v18 }
 0x7d5   : > { %v2774_v54 = vsel %vm1232_vm5, %v2655_v5, 0.0 }
 0x7d6   : > { %2775 = vadd.xlane.f32.xlu1 %v2774_v54 }
 0x7d7   : > { %v2669_v15 = vpop.permute.xlu2 %2668 }
 0x7d8   : > { %v2795_v44 = vsel %vm1232_vm5, %v2669_v15, 0.0 }
 0x7d9   : > { %v2659_v47 = vpop.permute.xlu1 %2658 }
 0x7da   : > { %v2780_v37 = vsel %vm1232_vm5, %v2659_v47, 0.0 }
 0x7dc   : > { %v2661_v4 = vpop.permute.xlu0 %2660  ;;  %2787 = vadd.xlane.f32.xlu0 %v2786_v62 }
 0x7dd   : > { %v2783_v50 = vsel %vm1232_vm5, %v2661_v4, 0.0 }
 0x7de   : > { %2781 = vadd.xlane.f32.xlu1 %v2780_v37  ;;  %2784 = vadd.xlane.f32.xlu2 %v2783_v50  ;;  %v2961_v37 = vadd.s32 4294967192, %v7697_v34 }
 0x7e1   : > { %v2665_v19 = vpop.permute.xlu1 %2664 }
 0x7e2   : > { %v2789_v63 = vsel %vm1232_vm5, %v2665_v19, 0.0 }
 0x7e4   : > { %2790 = vadd.xlane.f32.xlu0 %v2789_v63  ;;  %v2667_v7 = vpop.permute.xlu0 %2666 }
 0x7e5   : > { %v2792_v1 = vsel %vm1232_vm5, %v2667_v7, 0.0 }
 0x7e6   : > { %2766 = vadd.xlane.f32.xlu1 %v2765_v0  ;;  %2748 = vadd.xlane.f32.xlu2 %v2747_v8 }
 0x7ec   : > { %2796 = vadd.xlane.f32.xlu0 %v2795_v44 }
 0x7ee   : > { %2772 = vadd.xlane.f32.xlu2 %v2771_v29  ;;  %2769 = vadd.xlane.f32.xlu1 %v2768_v26  ;;  %v2965_v26 = vadd.s32 4294967184, %v7697_v34 }
 0x7f6   : > { %2793 = vadd.xlane.f32.xlu1 %v2792_v1 }
 0x80c   : > { %v2704_v23 = vpop.xlane.xlu1 %2703 }
 0x80d   : > { %v2944_v22 = vperm.slane %v2704_v23, %v7701_v6 }
 0x80f   : > { %v2707_v57 = vpop.xlane.xlu0 %2706 }
 0x810   : > { %v2946_v51 = vperm.slane %v2707_v57, %v6610_v58  ;;  %v2710_v10 = vpop.xlane.xlu2 %2709  ;;  %v2969_v57 = vadd.s32 4294967176, %v7697_v34 }
 0x811   : > { %v2950_v12 = vperm.slane %v2710_v10, %v6613_v33 }
 0x812   : > { %v2948_v42 = vsel %vm2947_vm11, %v2946_v51, %v2944_v22 }
 0x813   : > { %v2952_v17 = vsel %vm2951_vm12, %v2950_v12, %v2948_v42 }
 0x814   : > { %v2713_v48 = vpop.xlane.xlu1 %2712 }
 0x815   : > { %v2954_v20 = vperm.slane %v2713_v48, %v6619_v32 }
 0x817   : > { %v2956_v61 = vsel %vm2955_vm13, %v2954_v20, %v2952_v17  ;;  %v2716_v9 = vpop.xlane.xlu0 %2715 }
 0x818   : > { %v2958_v24 = vperm.slane %v2716_v9, %v6624_v11  ;;  %v6629_v14 = vpop.xlane.xlu2 %2718 }
 0x819   : > { %v2962_v34 = vperm.slane %v6629_v14, %v2961_v37 }
 0x81a   : > { %v6632_v46 = vsel %vm2959_vm14, %v2958_v24, %v2956_v61 }
 0x81c   : > { %v6636_v3 = vpop.xlane.xlu1 %2721 }
 0x81f   : > { %v6634_v28 = vpop.xlane.xlu0 %2724 }
 0x820   : > { %v2728_v49 = vpop.xlane.xlu2 %2727 }
 0x821   : > { %v2973_v5 = vperm.slane %v2728_v49, %v7701_v6 }
 0x824   : > { %v2731_v45 = vpop.xlane.xlu1 %2730 }
 0x825   : > { %v2974_v55 = vperm.slane %v2731_v45, %v6610_v58 }
 0x827   : > { %v2734_v59 = vpop.xlane.xlu0 %2733  ;;  %v2975_v40 = vsel %vm2947_vm11, %v2974_v55, %v2973_v5 }
 0x828   : > { %v2737_v30 = vpop.xlane.xlu2 %2736  ;;  %v2976_v18 = vperm.slane %v2734_v59, %v6613_v33 }
 0x829   : > { %v2978_v47 = vperm.slane %v2737_v30, %v6619_v32  ;;  %v2970_v30 = vperm.slane %v6634_v28, %v2969_v57 }
 0x82a   : > { %v2977_v50 = vsel %vm2951_vm12, %v2976_v18, %v2975_v40  ;;  %v7702_v40 = vld [vmem:[#allocation12_spill] sm:$0xff] (%p53_p1) }
 0x82c   : > { %v2740_v52 = vpop.xlane.xlu1 %2739 }
 0x82d   : > { %v2980_v8 = vperm.slane %v2740_v52, %v6624_v11 }
 0x82f   : > { %v2743_v35 = vpop.xlane.xlu0 %2742 }
 0x830   : > { %v6638_v27 = vpop.xlane.xlu2 %2745  ;;  %v2982_v29 = vperm.slane %v2743_v35, %v2961_v37 }
 0x834   : > { %v2752_v38 = vpop.xlane.xlu1 %2751 }
 0x835   : > { %v2988_v62 = vperm.slane %v2752_v38, %v7701_v6 }
 0x837   : > { %v2755_v13 = vpop.xlane.xlu0 %2754 }
 0x838   : > { %v2989_v54 = vperm.slane %v2755_v13, %v6610_v58 }
 0x839   : > { %v2758_v21 = vpop.xlane.xlu2 %2757 }
 0x83a   : > { %v2991_v19 = vperm.slane %v2758_v21, %v6613_v33  ;;  %v2990_v0 = vsel %vm2947_vm11, %v2989_v54, %v2988_v62  ;;  %v2964_v21 = vsel %vm2963_vm15, %v2962_v34, %v6632_v46  ;;  %v7703_v62 = vld [vmem:[#allocation24_spill] sm:$0xff] (%p53_p1) }
 0x83c   : > { %v2992_v51 = vsel %vm2951_vm12, %v2991_v19, %v2990_v0  ;;  %v7705_v0 = vld [vmem:[#allocation18_spill] sm:$0xff] (%p53_p1) }
 0x83f   : > { %v2779_v53 = vpop.xlane.xlu0 %2778 }
 0x840   : > { %v3004_v7 = vperm.slane %v2779_v53, %v6610_v58  ;;  %v2984_v58 = vperm.slane %v6638_v27, %v2965_v26 }
 0x841   : > { %v2761_v25 = vpop.xlane.xlu2 %2760 }
 0x842   : > { %v2993_v15 = vperm.slane %v2761_v25, %v6619_v32 }
 0x844   : > { %v2994_v48 = vsel %vm2955_vm13, %v2993_v15, %v2992_v51  ;;  %v3039_v15 = vcvt.s32.f32 (%p53_p1), %v7705_v0 }
 0x847   : > { %v2764_v36 = vpop.xlane.xlu0 %2763 }
 0x848   : > { %v2995_v1 = vperm.slane %v2764_v36, %v6624_v11 }
 0x849   : > { %v2776_v43 = vpop.xlane.xlu1 %2775 }
 0x84a   : > { %v3003_v63 = vperm.slane %v2776_v43, %v7701_v6  ;;  %v2979_v6 = vsel %vm2955_vm13, %v2978_v47, %v2977_v50  ;;  %v2996_v9 = vsel %vm2959_vm14, %v2995_v1, %v2994_v48  ;;  %v3036_v47 = vcvt.s32.f32 (%p53_p1), %v7702_v40 }
 0x84b   : > { %v2981_v17 = vsel %vm2959_vm14, %v2980_v8, %v2979_v6 }
 0x84c   : > { %v3005_v10 = vsel %vm2947_vm11, %v3004_v7, %v3003_v63  ;;  %v2983_v61 = vsel %vm2963_vm15, %v2982_v29, %v2981_v17  ;;  %v7707_v29 = vld [vmem:[#allocation17_spill] sm:$0xff] (%p53_p1) }
 0x84d   : > { %v2985_v14 = vsel %vm2967_vm0, %v2984_v58, %v2983_v61  ;;  %v3041_v7 = vcvt.s32.f32 (%p53_p1), %v7707_v29 }
 0x84f   : > { %v2788_v2 = vpop.xlane.xlu0 %2787  ;;  %v3049_v58 = vmul.f32 (%p53_p1), 2.0, %v3041_v7 }
 0x850   : > { %v3010_v52 = vperm.slane %v2788_v2, %v6624_v11 }
 0x851   : > { %v2782_v16 = vpop.xlane.xlu1 %2781  ;;  %v2785_v60 = vpop.xlane.xlu2 %2784 }
 0x852   : > { %v3006_v44 = vperm.slane %v2782_v16, %v6613_v33  ;;  %v3008_v33 = vperm.slane %v2785_v60, %v6619_v32  ;;  %v2966_v32 = vperm.slane %v6636_v3, %v2965_v26 }
 0x854   : > { %v3007_v20 = vsel %vm2951_vm12, %v3006_v44, %v3005_v10  ;;  %v2968_v28 = vsel %vm2967_vm0, %v2966_v32, %v2964_v21  ;;  %v7706_v44 = vld [vmem:[#allocation14_spill] sm:$0xff] (%p53_p1)  ;;  %v3047_v10 = vmul.f32 (%p53_p1), 2.0, %v3039_v15 }
 0x855   : > { %v3009_v45 = vsel %vm2955_vm13, %v3008_v33, %v3007_v20  ;;  %v2972_v36 = vsel %vm2971_vm1, %v2970_v30, %v2968_v28 }
 0x856   : > { %v3011_v38 = vsel %vm2959_vm14, %v3010_v52, %v3009_v45  ;;  %v3055_v34 = vadd.f32 (%p53_p1), 1.0, %v3047_v10 }
 0x857   : > { %v2791_v4 = vpop.xlane.xlu0 %2790 }
 0x858   : > { %v3012_v35 = vperm.slane %v2791_v4, %v2961_v37  ;;  %v3037_v4 = vcvt.s32.f32 (%p53_p1), %v7703_v62 }
 0x859   : > { %v2767_v31 = vpop.xlane.xlu1 %2766  ;;  %v2749_v56 = vpop.xlane.xlu2 %2748 }
 0x85a   : > { %v2997_v22 = vperm.slane %v2767_v31, %v2961_v37  ;;  %v2986_v24 = vperm.slane %v2749_v56, %v2969_v57  ;;  %v3013_v16 = vsel %vm2963_vm15, %v3012_v35, %v3011_v38  ;;  %v7704_v37 = vld [vmem:[#allocation15_spill] sm:$0xff] (%p53_p1)  ;;  %v3045_v6 = vmul.f32 (%p53_p1), 2.0, %v3037_v4 }
 0x85c   : > { %v2998_v49 = vsel %vm2963_vm15, %v2997_v22, %v2996_v9  ;;  %v2987_v3 = vsel %vm2971_vm1, %v2986_v24, %v2985_v14  ;;  %v3053_v17 = vadd.f32 (%p53_p1), 1.0, %v3045_v6  ;;  %v7708_v9 = vld [vmem:[#allocation16_spill] sm:$0xff] (%p53_p1) }
 0x85d   : > { %v3018_v60 = vsel %vm2904_vm8, %v2987_v3, %v2972_v36  ;;  %v3070_v45 = vmul.f32 (%p53_p1), %v3055_v34, %v7708_v9  ;;  %v7710_v3 = vld [vmem:[#allocation19_spill] sm:$0xff] (%p53_p1) }
 0x85e   :  { %v3068_v32 = vmul.f32 (%p53_p1), %v3053_v17, %v7708_v9 }
 0x85f   : > { %v2797_v13 = vpop.xlane.xlu0 %2796  ;;  %v4155_v38 = vadd.f32 (%p53_p1), -1.0, %v3070_v45 }
 0x860   : > { %v3016_v11 = vperm.slane %v2797_v13, %v2969_v57  ;;  %v4153_v13 = vadd.f32 (%p53_p1), -1.0, %v3068_v32 }
 0x861   : > { %v2770_v23 = vpop.xlane.xlu1 %2769  ;;  %v2773_v42 = vpop.xlane.xlu2 %2772 }
 0x862   : > { %v2999_v12 = vperm.slane %v2770_v23, %v2965_v26  ;;  %v3001_v59 = vperm.slane %v2773_v42, %v2969_v57  ;;  %v3044_v57 = vmul.f32 (%p53_p1), 2.0, %v3036_v47 }
 0x864   : > { %v3000_v27 = vsel %vm2967_vm0, %v2999_v12, %v2998_v49  ;;  %v3052_v42 = vadd.f32 (%p53_p1), 1.0, %v3044_v57  ;;  %v3083_v49 = vstv (%p53_p1), %s6697_s24 }
 0x865   : > { %v3002_v25 = vsel %vm2971_vm1, %v3001_v59, %v3000_v27  ;;  %v3057_v59 = vadd.f32 (%p53_p1), 1.0, %v3049_v58  ;;  %v7709_v27 = vld [vmem:[#allocation21_spill] sm:$0xff] (%p53_p1) }
 0x866   : > { %v3019_v2 = vsel %vm2906_vm9, %v3002_v25, %v3018_v60  ;;  %v3067_v24 = vmul.f32 (%p53_p1), %v3052_v42, %v7708_v9  ;;  %v3042_v14 = vcvt.s32.f32 (%p53_p1), %v7709_v27 }
 0x867   :  { %v3072_v21 = vmul.f32 (%p53_p1), %v3057_v59, %v7708_v9 }
 0x868   :  { %v4152_v52 = vadd.f32 (%p53_p1), -1.0, %v3067_v24 }
 0x869   : > { %v2794_v53 = vpop.xlane.xlu1 %2793 }
 0x86a   : > { %v3014_v43 = vperm.slane %v2794_v53, %v2965_v26  ;;  %v3040_v26 = vcvt.s32.f32 (%p53_p1), %v7706_v44  ;;  %v3043_v53 = vcvt.s32.f32 (%p53_p1), %v7710_v3  ;;  %v3084_v36 = vadd.f32 (%p53_p1), %v4152_v52, %v3083_v49 }
 0x86c   : > { %v3015_v46 = vsel %vm2967_vm0, %v3014_v43, %v3013_v16  ;;  %55 = sbr.rel (!%p53_p1) target bundleno = 26 (0x1a), region = 78  ;;  %v3048_v33 = vmul.f32 (%p53_p1), 2.0, %v3040_v26  ;;  %v3050_v43 = vmul.f32 (%p53_p1), 2.0, %v3042_v14  ;;  %v3085_v16 = vadd.f32 (%p53_p1), %v4153_v13, %v3083_v49 }
 0x86d   : > { %v3017_v31 = vsel %vm2971_vm1, %v3016_v11, %v3015_v46  ;;  %v4157_v11 = vadd.f32 (%p53_p1), -1.0, %v3072_v21  ;;  %v3051_v60 = vmul.f32 (%p53_p1), 2.0, %v3043_v53 }
 0x86e   : > { %v3020_v56 = vsel %vm2908_vm10, %v3017_v31, %v3019_v2  ;;  %v3056_v61 = vadd.f32 (%p53_p1), 1.0, %v3048_v33  ;;  %v3087_v2 = vadd.f32 (%p53_p1), %v4155_v38, %v3083_v49 }
 0x86f   : > { %v3022_v55 = vsel %vm1232_vm5, %v6575_v41, %v3020_v56  ;;  %v3038_v41 = vcvt.s32.f32 (%p53_p1), %v7704_v37  ;;  %v3058_v56 = vadd.f32 (%p53_p1), 1.0, %v3050_v43 }
 0x870   : > { %3024 = vst [vmem:[%s3023_s23] sm:$0xf] %v3022_v55  ;;  %v3071_v35 = vmul.f32 (%p53_p1), %v3056_v61, %v7708_v9  ;;  %v3092_v55 = vadd.f32 (%p53_p1), 1.0, %v3084_v36  ;;  %v3095_v4 = vadd.f32 (%p53_p1), 1.0, %v3087_v2 }
 0x871   :  { %v3046_v51 = vmul.f32 2.0, %v3038_v41  ;;  %s3751_s25 = scalar_select %p3717_p2, 1, 0 }
 0x872   :  { %v4156_v25 = vadd.f32 -1.0, %v3071_v35  ;;  %v3103_v7 = vmul.f32 64.0, %v3095_v4 }
 0x873   :  { %v3054_v20 = vadd.f32 1.0, %v3046_v51 }
 0x874   :  { %v3088_v31 = vadd.f32 %v4156_v25, %v3083_v49  ;;  %v4163_v33 = vadd.f32 -1.0, %v3103_v7 }
 0x875   :  { %v3069_v30 = vmul.f32 %v3054_v20, %v7708_v9 }
 0x876   :  { %v3096_v41 = vadd.f32 1.0, %v3088_v31  ;;  %v3119_v34 = vmul.f32 0.5, %v4163_v33 }
 0x877   :  { %v3544_v18 = vld [vmem:[#allocation2 + $0x30] sm:$0xff]  ;;  %v3545_v5 = vld [vmem:[#allocation2 + $0x38] sm:$0xff]  ;;  %v3542_v54 = vld [vmem:[#allocation2 + $0x20] sm:$0xff]  ;;  %v4154_v28 = vadd.f32 -1.0, %v3069_v30 }
 0x878   :  { %v3549_v50 = vpack.c.bf16 %v3545_v5, %v3544_v18  ;;  %v3543_v19 = vld [vmem:[#allocation2 + $0x28] sm:$0xff]  ;;  %v3540_v63 = vld [vmem:[#allocation2 + $0x10] sm:$0xff]  ;;  %v3541_v8 = vld [vmem:[#allocation2 + $0x18] sm:$0xff]  ;;  %v3093_v18 = vadd.f32 1.0, %v3085_v16  ;;  %v3089_v5 = vadd.f32 %v4157_v11, %v3083_v49  ;;  %v3127_v30 = vfloor.f32 %v3119_v34 }
 0x879   :  { %v3538_v1 = vld [vmem:[#allocation2] sm:$0xff]  ;;  %v3539_v23 = vld [vmem:[#allocation2 + $0x8] sm:$0xff]  ;;  %v3548_v22 = vpack.c.bf16 %v3543_v19, %v3542_v54  ;;  %v3547_v12 = vpack.c.bf16 %v3541_v8, %v3540_v63  ;;  %v3086_v46 = vadd.f32 %v4154_v28, %v3083_v49  ;;  %v3059_v54 = vadd.f32 1.0, %v3051_v60 }
 0x87a   :  { %3571 = vmatpush.bf16.msra.mxu0 %v3549_v50  ;;  %4302 = vmatpush.bf16.msra.mxu3 %v3549_v50  ;;  %v3546_v48 = vpack.c.bf16 %v3539_v23, %v3538_v1  ;;  %v3073_v50 = vmul.f32 %v3058_v56, %v7708_v9  ;;  %v3100_v19 = vmul.f32 64.0, %v3092_v55  ;;  %v3101_v63 = vmul.f32 64.0, %v3093_v18  ;;  %v7711_v16 = vld [vmem:[#allocation13_spill] sm:$0xff] }
 0x87b   :  { %v3094_v47 = vadd.f32 1.0, %v3086_v46  ;;  %v3097_v8 = vadd.f32 1.0, %v3089_v5  ;;  %v3074_v15 = vmul.f32 %v3059_v54, %v7708_v9  ;;  %v3104_v1 = vmul.f32 64.0, %v3096_v41 }
 0x87c   :  { %v4158_v23 = vadd.f32 -1.0, %v3073_v50  ;;  %v4160_v57 = vadd.f32 -1.0, %v3100_v19  ;;  %v4161_v6 = vadd.f32 -1.0, %v3101_v63  ;;  %v3135_v28 = vsub.f32 %v3119_v34, %v3127_v30 }
 0x87d   :  { %v3102_v26 = vmul.f32 64.0, %v3094_v47  ;;  %v4159_v51 = vadd.f32 -1.0, %v3074_v15  ;;  %v4325_v25 = vcvt.f32.s32 %v3127_v30  ;;  %v4648_v11 = vmov 0.0  }
 0x87e   :  { %3572 = vmatpush.bf16.msra.mxu0 %v3548_v22  ;;  %4303 = vmatpush.bf16.msra.mxu3 %v3548_v22  ;;  %v3105_v22 = vmul.f32 64.0, %v3097_v8  ;;  %v3090_v42 = vadd.f32 %v4158_v23, %v3083_v49  ;;  %v3116_v17 = vmul.f32 0.5, %v4160_v57  ;;  %v3117_v58 = vmul.f32 0.5, %v4161_v6 }
 0x87f   :  { %v4162_v10 = vadd.f32 -1.0, %v3102_v26  ;;  %vm3161_vm9 = vcmp.eq.s32.totalorder %v7711_v16, %v4325_v25  ;;  %v3143_v4 = vsub.f32 1.0, %v3135_v28  ;;  %v3193_v15 = vadd.s32 1, %v4325_v25 }
 0x880   :  { %v3124_v61 = vfloor.f32 %v3116_v17  ;;  %v3125_v24 = vfloor.f32 %v3117_v58  ;;  %v4165_v32 = vadd.f32 -1.0, %v3105_v22  ;;  %v3098_v35 = vadd.f32 1.0, %v3090_v42 }
 0x881   :  { %v3118_v20 = vmul.f32 0.5, %v4162_v10  ;;  %v4171_v63 = vsel %vm3161_vm9, 1.0, %v4648_v11  ;;  %vm3201_vm11 = vcmp.eq.s32.totalorder %v7711_v16, %v3193_v15 }
 0x882   :  { %3573 = vmatpush.bf16.msra.mxu0 %v3547_v12  ;;  %4304 = vmatpush.bf16.msra.mxu3 %v3547_v12  ;;  %v4164_v12 = vadd.f32 -1.0, %v3104_v1  ;;  %v3132_v14 = vsub.f32 %v3116_v17, %v3124_v61  ;;  %v3133_v52 = vsub.f32 %v3117_v58, %v3125_v24  ;;  %v4319_v13 = vcvt.f32.s32 %v3124_v61 }
 0x883   :  { %v3126_v59 = vfloor.f32 %v3118_v20  ;;  %v4321_v21 = vcvt.f32.s32 %v3125_v24  ;;  %v3121_v55 = vmul.f32 0.5, %v4165_v32  ;;  %v3106_v6 = vmul.f32 64.0, %v3098_v35 }
 0x884   :  { %v3120_v45 = vmul.f32 0.5, %v4164_v12  ;;  %v3140_v43 = vsub.f32 1.0, %v3132_v14  ;;  %v3141_v36 = vsub.f32 1.0, %v3133_v52  ;;  %vm3158_vm2 = vcmp.eq.s32.totalorder %v7711_v16, %v4319_v13 }
 0x885   :  { %v3134_v53 = vsub.f32 %v3118_v20, %v3126_v59  ;;  %v4323_v38 = vcvt.f32.s32 %v3126_v59  ;;  %vm3159_vm3 = vcmp.eq.s32.totalorder %v7711_v16, %v4321_v21  ;;  %v3190_v46 = vadd.s32 1, %v4319_v13 }
 0x886   :  { %3574 = vmatpush.bf16.msra.mxu0 %v3546_v48  ;;  %4305 = vmatpush.bf16.msra.mxu3 %v3546_v48  ;;  %v3091_v48 = vadd.f32 %v4159_v51, %v3083_v49  ;;  %v4168_v49 = vsel %vm3158_vm2, 1.0, %v4648_v11  ;;  %v4169_v60 = vsel %vm3159_vm3, 1.0, %v4648_v11  ;;  %v3191_v2 = vadd.s32 1, %v4321_v21 }
 0x887   :  { %v3182_v31 = vmul.f32 %v4168_v49, %v3140_v43  ;;  %v3183_v56 = vmul.f32 %v4169_v60, %v3141_v36  ;;  %v3128_v18 = vfloor.f32 %v3120_v45  ;;  %vm3198_vm4 = vcmp.eq.s32.totalorder %v7711_v16, %v3190_v46 }
 0x888   :  { %vm3199_vm7 = vcmp.eq.s32.totalorder %v7711_v16, %v3191_v2  ;;  %vm3160_vm8 = vcmp.eq.s32.totalorder %v7711_v16, %v4323_v38  ;;  %v4176_v5 = vsel %vm3198_vm4, 1.0, %v4648_v11  ;;  %v3142_v47 = vsub.f32 1.0, %v3134_v53 }
 0x889   :  { %v4177_v54 = vsel %vm3199_vm7, 1.0, %v4648_v11  ;;  %v3222_v41 = vmul.f32 %v4176_v5, %v3132_v14  ;;  %v4170_v19 = vsel %vm3160_vm8, 1.0, %v4648_v11  ;;  %v3192_v8 = vadd.s32 1, %v4323_v38 }
 0x88a   :  { %v3223_v50 = vmul.f32 %v4177_v54, %v3133_v52  ;;  %v3129_v26 = vfloor.f32 %v3121_v55  ;;  %v3099_v7 = vadd.f32 1.0, %v3091_v48  ;;  %v4327_v57 = vcvt.f32.s32 %v3128_v18 }
 0x88b   :  { %v3230_v1 = vadd.f32 %v3222_v41, %v3182_v31  ;;  %v3184_v22 = vmul.f32 %v4170_v19, %v3142_v47  ;;  %v3185_v51 = vmul.f32 %v4171_v63, %v3143_v4  ;;  %vm3200_vm10 = vcmp.eq.s32.totalorder %v7711_v16, %v3192_v8 }
 0x88c   :  { %v3231_v23 = vadd.f32 %v3223_v50, %v3183_v56  ;;  %v4178_v33 = vsel %vm3200_vm10, 1.0, %v4648_v11  ;;  %v4179_v12 = vsel %vm3201_vm11, 1.0, %v4648_v11  ;;  %v4329_v42 = vcvt.f32.s32 %v3129_v26 }
 0x88d   :  { %v3224_v17 = vmul.f32 %v4178_v33, %v3134_v53  ;;  %v3225_v58 = vmul.f32 %v4179_v12, %v3135_v28  ;;  %v3107_v20 = vmul.f32 64.0, %v3099_v7  ;;  %v3136_v34 = vsub.f32 %v3120_v45, %v3128_v18 }
 0x88e   :  { %v3550_v10 = vpack.c.bf16 %v3231_v23, %v3230_v1  ;;  %v3137_v61 = vsub.f32 %v3121_v55, %v3129_v26  ;;  %v3194_v24 = vadd.s32 1, %v4327_v57  ;;  %v3195_v32 = vadd.s32 1, %v4329_v42 }
 0x88f   :  { %v3232_v48 = vadd.f32 %v3224_v17, %v3184_v22  ;;  %v3233_v59 = vadd.f32 %v3225_v58, %v3185_v51  ;;  %vm3162_vm12 = vcmp.eq.s32.totalorder %v7711_v16, %v4327_v57  ;;  %vm3163_vm13 = vcmp.eq.s32.totalorder %v7711_v16, %v4329_v42 }
 0x890   :  { %4234 = vmatmul.msk.bf16.vlgmr.msra.gmra.mxu0 %vm1232_vm5, %v3550_v10  ;;  %v4166_v30 = vadd.f32 -1.0, %v3106_v6  ;;  %vm3202_vm14 = vcmp.eq.s32.totalorder %v7711_v16, %v3194_v24  ;;  %vm3203_vm15 = vcmp.eq.s32.totalorder %v7711_v16, %v3195_v32  ;;  %v4167_v14 = vadd.f32 -1.0, %v3107_v20 }
 0x891   :  { %v3551_v35 = vpack.c.bf16 %v3233_v59, %v3232_v48  ;;  %v3144_v52 = vsub.f32 1.0, %v3136_v34  ;;  %v3145_v13 = vsub.f32 1.0, %v3137_v61  ;;  %v4172_v45 = vsel %vm3162_vm12, 1.0, %v4648_v11 }
 0x892   :  { %v3122_v21 = vmul.f32 0.5, %v4166_v30  ;;  %v4173_v53 = vsel %vm3163_vm13, 1.0, %v4648_v11  ;;  %v3123_v28 = vmul.f32 0.5, %v4167_v14  ;;  %v3241_v38 = vcvt.s32.f32 %v5951_v39 }
 0x893   :  { %4235 = vmatmul.msk.bf16.vlgmr.msra.gmra.mxu3 %vm1232_vm5, %v3551_v35  ;;  %v4180_v25 = vsel %vm3202_vm14, 1.0, %v4648_v11  ;;  %v4181_v43 = vsel %vm3203_vm15, 1.0, %v4648_v11  ;;  %v3186_v46 = vmul.f32 %v4172_v45, %v3144_v52  ;;  %v3187_v2 = vmul.f32 %v4173_v53, %v3145_v13 }
 0x894   :  { %v3130_v36 = vfloor.f32 %v3122_v21  ;;  %v3131_v49 = vfloor.f32 %v3123_v28  ;;  %v3242_v60 = vmul.f32 2.0, %v3241_v38  ;;  %v3226_v56 = vmul.f32 %v4180_v25, %v3136_v34 }
 0x895   :  { %v3227_v55 = vmul.f32 %v4181_v43, %v3137_v61  ;;  %v3246_v39 = vstv %s6737_s1  ;;  %v3262_v58 = vadd.s32 112, %v7702_v40  ;;  %v3263_v20 = vadd.s32 120, %v7702_v40 }
 0x896   :  { %v4331_v31 = vcvt.f32.s32 %v3130_v36  ;;  %v4333_v18 = vcvt.f32.s32 %v3131_v49  ;;  %v3243_v5 = vadd.f32 1.0, %v3242_v60  ;;  %v3234_v41 = vadd.f32 %v3226_v56, %v3186_v46 }
 0x897   :  { %v3235_v50 = vadd.f32 %v3227_v55, %v3187_v2  ;;  %v3138_v19 = vsub.f32 %v3122_v21, %v3130_v36  ;;  %v3139_v63 = vsub.f32 %v3123_v28, %v3131_v49  ;;  %v3260_v34 = vadd.s32 96, %v7702_v40 }
 0x898   :  { %v3196_v54 = vadd.s32 1, %v4331_v31  ;;  %v3197_v47 = vadd.s32 1, %v4333_v18  ;;  %v3244_v4 = vmul.f32 %v3243_v5, %v7708_v9  ;;  %vm3164_vm0 = vcmp.eq.s32.totalorder %v7711_v16, %v4331_v31 }
 0x899   :  { %vm3165_vm1 = vcmp.eq.s32.totalorder %v7711_v16, %v4333_v18  ;;  %v3552_v26 = vpack.c.bf16 %v3235_v50, %v3234_v41  ;;  %v3146_v7 = vsub.f32 1.0, %v3138_v19  ;;  %v3147_v1 = vsub.f32 1.0, %v3139_v63 }
 0x89a   :  { %v4185_v8 = vadd.f32 -1.0, %v3244_v4  ;;  %vm3204_vm2 = vcmp.eq.s32.totalorder %v7711_v16, %v3196_v54  ;;  %vm3205_vm3 = vcmp.eq.s32.totalorder %v7711_v16, %v3197_v47  ;;  %v4174_v9 = vsel %vm3164_vm0, 1.0, %v4648_v11 }
 0x89b   :  { %v4175_v23 = vsel %vm3165_vm1, 1.0, %v4648_v11  ;;  %v4182_v57 = vsel %vm3204_vm2, 1.0, %v4648_v11  ;;  %v4183_v6 = vsel %vm3205_vm3, 1.0, %v4648_v11  ;;  %v3188_v10 = vmul.f32 %v4174_v9, %v3146_v7 }
 0x89c   :  { %v3247_v15 = vadd.f32 %v4185_v8, %v3246_v39  ;;  %v3189_v33 = vmul.f32 %v4175_v23, %v3147_v1  ;;  %v3228_v12 = vmul.f32 %v4182_v57, %v3138_v19  ;;  %v3229_v42 = vmul.f32 %v4183_v6, %v3139_v63 }
 0x89d   :  { %v3261_v61 = vadd.s32 104, %v7702_v40  ;;  %v3258_v32 = vadd.s32 80, %v7702_v40  ;;  %v3259_v30 = vadd.s32 88, %v7702_v40  ;;  %v3257_v35 = vadd.s32 72, %v7702_v40 }
 0x89e   :  { %v3248_v22 = vadd.f32 1.0, %v3247_v15  ;;  %v3236_v48 = vadd.f32 %v3228_v12, %v3188_v10  ;;  %v3237_v59 = vadd.f32 %v3229_v42, %v3189_v33  ;;  %v4200_v52 = vadd.s32 4294967232, %v3262_v58 }
 0x89f   :  { %v4201_v13 = vadd.s32 4294967232, %v3263_v20  ;;  %v4198_v21 = vadd.s32 4294967232, %v3260_v34  ;;  %v4199_v45 = vadd.s32 4294967232, %v3261_v61  ;;  %v4196_v25 = vadd.s32 4294967232, %v3258_v32 }
 0x8a0   :  { %v3249_v51 = vmul.f32 64.0, %v3248_v22  ;;  %v3553_v38 = vpack.c.bf16 %v3237_v59, %v3236_v48  ;;  %v4197_v43 = vadd.s32 4294967232, %v3259_v30  ;;  %v6767_v36 = vadd.s32 4294967232, %v3257_v35 }
 0x8a1   :  { %vm4649_vm8 = vmmov 1  }
 0x8a2   :  { %v4186_v17 = vadd.f32 -1.0, %v3249_v51  ;;  %vm3353_vm9 = vmxor %vm4649_vm8, %vm1370_vm6 }
 0x8a3   :  { %4236 = vmatmul.msk.bf16.gmra.mxu3 %vm1232_vm5, %v3552_v26  ;;  %vm3369_vm14 = vmxor %vm3353_vm9, %vm4649_vm8 }
 0x8a4   :  { %v3251_v24 = vmul.f32 0.5, %v4186_v17  ;;  %vm6804_vm3 = vmpackc.low %vm3369_vm14, %vm3369_vm14 }
 0x8a6   :  { %v3252_v14 = vfloor.f32 %v3251_v24 }
 0x8a8   :  { %v6763_v53 = vsub.f32 %v3251_v24, %v3252_v14  ;;  %v6765_v28 = vcvt.f32.s32 %v3252_v14 }
 0x8aa   :  { %v6770_v49 = vsub.f32 1.0, %v6763_v53  ;;  %vm3391_vm4 = vcmp.eq.s32.totalorder %v4200_v52, %v6765_v28  ;;  %vm3392_vm7 = vcmp.eq.s32.totalorder %v4201_v13, %v6765_v28  ;;  %v6775_v60 = vadd.s32 1, %v6765_v28 }
 0x8ab   :  { %v4216_v46 = vsel %vm3391_vm4, 1.0, %v4648_v11  ;;  %v4217_v2 = vsel %vm3392_vm7, 1.0, %v4648_v11  ;;  %vm3389_vm10 = vcmp.eq.s32.totalorder %v4198_v21, %v6765_v28  ;;  %vm3390_vm11 = vcmp.eq.s32.totalorder %v4199_v45, %v6765_v28 }
 0x8ac   :  { %v3439_v31 = vmul.f32 %v4216_v46, %v6770_v49  ;;  %v3440_v56 = vmul.f32 %v4217_v2, %v6770_v49  ;;  %vm3456_vm12 = vcmp.eq.s32.totalorder %v4200_v52, %v6775_v60  ;;  %vm3457_vm13 = vcmp.eq.s32.totalorder %v4201_v13, %v6775_v60 }
 0x8ad   :  { %v4232_v55 = vsel %vm3456_vm12, 1.0, %v4648_v11  ;;  %v4233_v18 = vsel %vm3457_vm13, 1.0, %v4648_v11  ;;  %v4214_v5 = vsel %vm3389_vm10, 1.0, %v4648_v11  ;;  %v4215_v54 = vsel %vm3390_vm11, 1.0, %v4648_v11 }
 0x8ae   :  { %v3504_v47 = vmul.f32 %v4232_v55, %v6763_v53  ;;  %v3505_v4 = vmul.f32 %v4233_v18, %v6763_v53  ;;  %v3437_v39 = vmul.f32 %v4214_v5, %v6770_v49  ;;  %v3438_v41 = vmul.f32 %v4215_v54, %v6770_v49 }
 0x8af   :  { %vm3454_vm15 = vcmp.eq.s32.totalorder %v4198_v21, %v6775_v60  ;;  %vm3455_vm0 = vcmp.eq.s32.totalorder %v4199_v45, %v6775_v60  ;;  %vm3387_vm1 = vcmp.eq.s32.totalorder %v4196_v25, %v6765_v28  ;;  %vm3388_vm2 = vcmp.eq.s32.totalorder %v4197_v43, %v6765_v28 }
 0x8b0   :  { %v3520_v50 = vadd.f32 %v3504_v47, %v3439_v31  ;;  %v3521_v19 = vadd.f32 %v3505_v4, %v3440_v56  ;;  %v4230_v63 = vsel %vm3454_vm15, 1.0, %v4648_v11  ;;  %v4231_v8 = vsel %vm3455_vm0, 1.0, %v4648_v11 }
 0x8b1   :  { %v3502_v26 = vmul.f32 %v4230_v63, %v6763_v53  ;;  %v3503_v7 = vmul.f32 %v4231_v8, %v6763_v53  ;;  %v4212_v1 = vsel %vm3387_vm1, 1.0, %v4648_v11  ;;  %v4213_v9 = vsel %vm3388_vm2, 1.0, %v4648_v11  ;;  %vm3361_vm1 = vmxor %vm1370_vm6, %vm4649_vm8 }
 0x8b2   :  { %v4239_v23 = vpack.c.bf16 %v3521_v19, %v3520_v50  ;;  %v3435_v57 = vmul.f32 %v4212_v1, %v6770_v49  ;;  %v3436_v6 = vmul.f32 %v4213_v9, %v6770_v49  ;;  %vm3452_vm4 = vcmp.eq.s32.totalorder %v4196_v25, %v6775_v60  ;;  %vm6871_vm2 = vmpackc.low %vm3361_vm1, %vm3361_vm1 }
 0x8b3   :  { %4237 = vmatmul.msk.bf16.gmra.mxu3 %vm1232_vm5, %v3553_v38  ;;  %v3518_v22 = vadd.f32 %v3502_v26, %v3437_v39  ;;  %v3519_v51 = vadd.f32 %v3503_v7, %v3438_v41  ;;  %vm3453_vm7 = vcmp.eq.s32.totalorder %v4197_v43, %v6775_v60  ;;  %v4228_v10 = vsel %vm3452_vm4, 1.0, %v4648_v11 }
 0x8b4   :  { %4240 = vmatpush.bf16.msk.msra.mxu1 %vm6804_vm3, %v4239_v23  ;;  %v4229_v33 = vsel %vm3453_vm7, 1.0, %v4648_v11  ;;  %v3500_v12 = vmul.f32 %v4228_v10, %v6763_v53  ;;  %vm3377_vm9 = vcmp.eq.s32.totalorder %v7702_v40, %v6765_v28  ;;  %vm3386_vm10 = vcmp.eq.s32.totalorder %v6767_v36, %v6765_v28  ;;  %4306 = vmatpush.bf16.msk.msra.mxu2 %vm6804_vm3, %v4239_v23 }
 0x8b5   :  { %v4242_v42 = vpack.c.bf16 %v3519_v51, %v3518_v22  ;;  %v3501_v17 = vmul.f32 %v4229_v33, %v6763_v53  ;;  %v4202_v58 = vsel %vm3377_vm9, 1.0, %v4648_v11  ;;  %v4211_v20 = vsel %vm3386_vm10, 1.0, %v4648_v11 }
 0x8b6   :  { %v3516_v34 = vadd.f32 %v3500_v12, %v3435_v57  ;;  %v3425_v61 = vmul.f32 %v4202_v58, %v6770_v49  ;;  %v3434_v24 = vmul.f32 %v4211_v20, %v6770_v49  ;;  %vm3442_vm11 = vcmp.eq.s32.totalorder %v7702_v40, %v6775_v60 }
 0x8b7   :  { %v3517_v32 = vadd.f32 %v3501_v17, %v3436_v6  ;;  %vm3451_vm12 = vcmp.eq.s32.totalorder %v6767_v36, %v6775_v60  ;;  %v4218_v48 = vsel %vm3442_vm11, 1.0, %v4648_v11  ;;  %vm3383_vm13 = vcmp.eq.s32.totalorder %v7709_v27, %v6765_v28 }
 0x8b8   :  { %4243 = vmatpush.bf16.msk.msra.mxu1 %vm6804_vm3, %v4242_v42  ;;  %v4227_v59 = vsel %vm3451_vm12, 1.0, %v4648_v11  ;;  %v3490_v30 = vmul.f32 %v4218_v48, %v6763_v53  ;;  %vm3384_vm14 = vcmp.eq.s32.totalorder %v7710_v3, %v6765_v28  ;;  %v4208_v40 = vsel %vm3383_vm13, 1.0, %v4648_v11  ;;  %4307 = vmatpush.bf16.msk.msra.mxu2 %vm6804_vm3, %v4242_v42 }
 0x8b9   :  { %v4245_v35 = vpack.c.bf16 %v3517_v32, %v3516_v34  ;;  %v3499_v14 = vmul.f32 %v4227_v59, %v6763_v53  ;;  %v4209_v52 = vsel %vm3384_vm14, 1.0, %v4648_v11  ;;  %v3431_v13 = vmul.f32 %v4208_v40, %v6770_v49  ;;  %v3661_v40 = vld [vmem:[%s7349_s3] sm:$0xff] }
 0x8ba   :  { %v3506_v21 = vadd.f32 %v3490_v30, %v3425_v61  ;;  %v3432_v45 = vmul.f32 %v4209_v52, %v6770_v49  ;;  %vm3448_vm15 = vcmp.eq.s32.totalorder %v7709_v27, %v6775_v60  ;;  %vm3449_vm0 = vcmp.eq.s32.totalorder %v7710_v3, %v6775_v60  ;;  %v3637_v61 = vld [vmem:[%s7348_s2] sm:$0xff] }
 0x8bb   :  { %v3515_v38 = vadd.f32 %v3499_v14, %v3434_v24  ;;  %v4224_v25 = vsel %vm3448_vm15, 1.0, %v4648_v11  ;;  %v4225_v43 = vsel %vm3449_vm0, 1.0, %v4648_v11  ;;  %vm3381_vm6 = vcmp.eq.s32.totalorder %v7706_v44, %v6765_v28  ;;  %v3762_v14 = vld [vmem:[%s7350_s4] sm:$0xff] }
 0x8bc   :  { %4246 = vmatpush.bf16.msk.msra.mxu1 %vm6804_vm3, %v4245_v35  ;;  %v3496_v36 = vmul.f32 %v4224_v25, %v6763_v53  ;;  %v3497_v46 = vmul.f32 %v4225_v43, %v6763_v53  ;;  %4308 = vmatpush.bf16.msk.msra.mxu2 %vm6804_vm3, %v4245_v35  ;;  %vm3382_vm8 = vcmp.eq.s32.totalorder %v7707_v29, %v6765_v28  ;;  %v4206_v16 = vsel %vm3381_vm6, 1.0, %v4648_v11 }
 0x8bd   :  { %v4248_v2 = vpack.c.bf16 %v3515_v38, %v3506_v21  ;;  %vm3446_vm4 = vcmp.eq.s32.totalorder %v7706_v44, %v6775_v60  ;;  %v4207_v55 = vsel %vm3382_vm8, 1.0, %v4648_v11  ;;  %v3429_v54 = vmul.f32 %v4206_v16, %v6770_v49 }
 0x8be   :  { %v3512_v27 = vadd.f32 %v3496_v36, %v3431_v13  ;;  %v3513_v3 = vadd.f32 %v3497_v46, %v3432_v45  ;;  %v4222_v18 = vsel %vm3446_vm4, 1.0, %v4648_v11  ;;  %v3430_v47 = vmul.f32 %v4207_v55, %v6770_v49 }
 0x8bf   :  { %v3494_v4 = vmul.f32 %v4222_v18, %v6763_v53  ;;  %vm3379_vm7 = vcmp.eq.s32.totalorder %v7704_v37, %v6765_v28  ;;  %vm3380_vm9 = vcmp.eq.s32.totalorder %v7705_v0, %v6765_v28  ;;  %vm3444_vm10 = vcmp.eq.s32.totalorder %v7704_v37, %v6775_v60 }
 0x8c0   :  { %4249 = vmatpush.bf16.msk.msra.mxu1 %vm6804_vm3, %v4248_v2  ;;  %v4251_v31 = vpack.c.bf16 %v3513_v3, %v3512_v27  ;;  %4309 = vmatpush.bf16.msk.msra.mxu2 %vm6804_vm3, %v4248_v2  ;;  %vm3447_vm3 = vcmp.eq.s32.totalorder %v7707_v29, %v6775_v60  ;;  %vm3445_vm11 = vcmp.eq.s32.totalorder %v7705_v0, %v6775_v60  ;;  %v4204_v41 = vsel %vm3379_vm7, 1.0, %v4648_v11  ;;  %v3639_v2 = vld [vmem:[%s7348_s2 + $0x10] sm:$0xff] }
 0x8c1   :  { %v4223_v5 = vsel %vm3447_vm3, 1.0, %v4648_v11  ;;  %v3510_v44 = vadd.f32 %v3494_v4, %v3429_v54  ;;  %v4205_v50 = vsel %vm3380_vm9, 1.0, %v4648_v11  ;;  %v3427_v19 = vmul.f32 %v4204_v41, %v6770_v49 }
 0x8c2   :  { %v3495_v39 = vmul.f32 %v4223_v5, %v6763_v53  ;;  %v3428_v63 = vmul.f32 %v4205_v50, %v6770_v49  ;;  %v4220_v8 = vsel %vm3444_vm10, 1.0, %v4648_v11  ;;  %v4221_v15 = vsel %vm3445_vm11, 1.0, %v4648_v11  ;;  %v3640_v5 = vld [vmem:[%s7348_s2 + $0x18] sm:$0xff] }
 0x8c3   :  { %v3492_v37 = vmul.f32 %v4220_v8, %v6763_v53  ;;  %v3493_v7 = vmul.f32 %v4221_v15, %v6763_v53  ;;  %vm3378_vm12 = vcmp.eq.s32.totalorder %v7703_v62, %v6765_v28  ;;  %vm3443_vm13 = vcmp.eq.s32.totalorder %v7703_v62, %v6775_v60 }
 0x8c4   :  { %4252 = vmatpush.bf16.msk.msra.mxu1 %vm6871_vm2, %v4251_v31  ;;  %4310 = vmatpush.bf16.msk.msra.mxu2 %vm6871_vm2, %v4251_v31  ;;  %v3511_v29 = vadd.f32 %v3495_v39, %v3430_v47  ;;  %v4203_v9 = vsel %vm3378_vm12, 1.0, %v4648_v11  ;;  %v4219_v23 = vsel %vm3443_vm13, 1.0, %v4648_v11  ;;  %v3752_v24 = vstv %s3751_s25 }
 0x8c5   :  { %v3508_v0 = vadd.f32 %v3492_v37, %v3427_v19  ;;  %v3509_v1 = vadd.f32 %v3493_v7, %v3428_v63  ;;  %v3426_v6 = vmul.f32 %v4203_v9, %v6770_v49  ;;  %v3491_v22 = vmul.f32 %v4219_v23, %v6763_v53  ;;  %v3641_v19 = vld [vmem:[%s7348_s2 + $0x20] sm:$0xff] }
 0x8c6   :  { %v4254_v26 = vpack.c.bf16 %v3511_v29, %v3510_v44  ;;  %v6936_v48 = vstv %s4700_s29  ;;  %vm6940_vm15 = vcmp.eq.s32.totalorder %v3752_v24, 1 }
 0x8c7   :  { %v4257_v57 = vpack.c.bf16 %v3509_v1, %v3508_v0  ;;  %v3507_v51 = vadd.f32 %v3491_v22, %v3426_v6  ;;  %v3642_v1 = vld [vmem:[%s7348_s2 + $0x28] sm:$0xff] }
 0x8c8   :  { %4255 = vmatpush.bf16.msk.msra.mxu1 %vm6871_vm2, %v4254_v26  ;;  %4311 = vmatpush.bf16.msk.msra.mxu2 %vm6871_vm2, %v4254_v26 }
 0x8c9   :  { %v4260_v62 = vpack.c.bf16 %v3507_v51, %v3506_v21  ;;  %v3638_v21 = vld [vmem:[%s7348_s2 + $0x8] sm:$0xff] }
 0x8cc   :  { %4258 = vmatpush.bf16.msk.msra.mxu1 %vm6871_vm2, %v4257_v57  ;;  %4312 = vmatpush.bf16.msk.msra.mxu2 %vm6871_vm2, %v4257_v57 }
 0x8d0   :  { %4261 = vmatpush.bf16.msk.msra.mxu1 %vm6871_vm2, %v4260_v62  ;;  %4313 = vmatpush.bf16.msk.msra.mxu2 %vm6871_vm2, %v4260_v62  ;;  %v3643_v62 = vld [vmem:[%s7348_s2 + $0x30] sm:$0xff] }
 0x90d   :  { %v3576_v28 = vpop.f32.mrf.mxu0 }
 0x915   :  { %v3578_v60 = vpop.f32.mrf.mxu0 }
 0x916   :  { %v3596_v49 = vpack.c.bf16 %v3578_v60, %v3576_v28  ;;  %v3581_v10 = vpop.f32.mrf.mxu3 }
 0x918   :  { %3616 = vmatmul.bf16.vlgmr.msra.gmra.mxu1 %v3596_v49 }
 0x91e   :  { %v3583_v53 = vpop.f32.mrf.mxu3 }
 0x91f   :  { %v3597_v33 = vpack.c.bf16 %v3583_v53, %v3581_v10 }
 0x926   :  { %v3586_v12 = vpop.f32.mrf.mxu3 }
 0x928   :  { %3621 = vmatmul.bf16.gmra.mxu1 %v3597_v33 }
 0x92e   :  { %v3588_v42 = vpop.f32.mrf.mxu3 }
 0x92f   :  { %v3598_v17 = vpack.c.bf16 %v3588_v42, %v3586_v12  ;;  %v3644_v42 = vld [vmem:[%s7348_s2 + $0x38] sm:$0xff] }
 0x931   :  { %3626 = vmatmul.bf16.vlgmr.msra.gmra.mxu2 %v3598_v17 }
 0x936   :  { %v3591_v58 = vpop.f32.mrf.mxu3 }
 0x93e   :  { %v3593_v20 = vpop.f32.mrf.mxu3 }
 0x93f   :  { %v3599_v34 = vpack.c.bf16 %v3593_v20, %v3591_v58 }
 0x941   :  { %3631 = vmatmul.bf16.gmra.mxu2 %v3599_v34 }
 0x995   :  { %v3617_v32 = vpop.f32.mrf.mxu1 }
 0x996   :  { %v3645_v59 = vmax.f32 %v3637_v61, %v3617_v32  ;;  %vm3718_vm14 = vcmp.gt.f32.partialorder %v3617_v32, 0.5  ;;  %3677 = vrot.lane.b32.xlu0 %v3617_v32, %s4650_s30 }
 0x997   :  { %v4262_v30 = vsel %vm3718_vm14, 1.0, %v4648_v11 }
 0x998   :  { %3653 = vst.msk [vmem:[#allocation6] sm:$0xff] %vm1232_vm5, %v3645_v59  ;;  %v3743_v35 = vmul.f32 %v4262_v30, %v6936_v48 }
 0x99a   :  { %v3754_v52 = vsel %vm6940_vm15, %v3617_v32, %v3743_v35 }
 0x99b   :  { %3803 = vrot.lane.b32.xlu2 %v3754_v52, %s4650_s30  ;;  %v3770_v13 = vadd.f32 %v3762_v14, %v3754_v52  ;;  %v3662_v52 = vld [vmem:[%s7349_s3 + $0x8] sm:$0xff] }
 0x99d   :  { %3778 = vst.msk [vmem:[%s7353_s7] sm:$0xff] %vm1232_vm5, %v3770_v13  ;;  %v3619_v45 = vpop.f32.mrf.mxu1  ;;  %v3665_v13 = vld [vmem:[%s7349_s3 + $0x20] sm:$0xff] }
 0x99e   :  { %v3646_v38 = vmax.f32 %v3638_v21, %v3619_v45  ;;  %vm3719_vm0 = vcmp.gt.f32.partialorder %v3619_v45, 0.5  ;;  %3679 = vrot.lane.b32.xlu0 %v3619_v45, %s4650_s30 }
 0x99f   :  { %v4263_v25 = vsel %vm3719_vm0, 1.0, %v4648_v11 }
 0x9a0   :  { %3654 = vst.msk [vmem:[#allocation6 + $0x8] sm:$0xff] %vm1232_vm5, %v3646_v38  ;;  %v3744_v43 = vmul.f32 %v4263_v25, %v6936_v48 }
 0x9a2   :  { %v3755_v46 = vsel %vm6940_vm15, %v3619_v45, %v3744_v43 }
 0x9a4   :  { %v3763_v36 = vld [vmem:[%s7350_s4 + $0x8] sm:$0xff] }
 0x9a5   :  { %v3771_v27 = vadd.f32 %v3763_v36, %v3755_v46  ;;  %v3622_v3 = vpop.f32.mrf.mxu1  ;;  %v3663_v36 = vld [vmem:[%s7349_s3 + $0x10] sm:$0xff] }
 0x9a6   :  { %v3647_v31 = vmax.f32 %v3639_v2, %v3622_v3  ;;  %vm3720_vm1 = vcmp.gt.f32.partialorder %v3622_v3, 0.5  ;;  %3805 = vrot.lane.b32.xlu0 %v3755_v46, %s4650_s30  ;;  %3681 = vrot.lane.b32.xlu1 %v3622_v3, %s4650_s30 }
 0x9a7   :  { %3779 = vst.msk [vmem:[%s7353_s7 + $0x8] sm:$0xff] %vm1232_vm5, %v3771_v27  ;;  %v4264_v56 = vsel %vm3720_vm1, 1.0, %v4648_v11 }
 0x9a8   :  { %3655 = vst.msk [vmem:[#allocation6 + $0x10] sm:$0xff] %vm1232_vm5, %v3647_v31  ;;  %v3745_v16 = vmul.f32 %v4264_v56, %v6936_v48 }
 0x9aa   :  { %v3756_v18 = vsel %vm6940_vm15, %v3622_v3, %v3745_v16 }
 0x9ad   :  { %v3624_v47 = vpop.f32.mrf.mxu1 }
 0x9ae   :  { %v3764_v55 = vld [vmem:[%s7350_s4 + $0x10] sm:$0xff]  ;;  %v3648_v4 = vmax.f32 %v3640_v5, %v3624_v47  ;;  %vm3721_vm2 = vcmp.gt.f32.partialorder %v3624_v47, 0.5  ;;  %3807 = vrot.lane.b32.xlu1 %v3756_v18, %s4650_s30 }
 0x9af   :  { %v3772_v54 = vadd.f32 %v3764_v55, %v3756_v18  ;;  %v4265_v39 = vsel %vm3721_vm2, 1.0, %v4648_v11  ;;  %v3666_v18 = vld [vmem:[%s7349_s3 + $0x28] sm:$0xff] }
 0x9b0   :  { %3656 = vst.msk [vmem:[#allocation6 + $0x18] sm:$0xff] %vm1232_vm5, %v3648_v4  ;;  %v3746_v44 = vmul.f32 %v4265_v39, %v6936_v48  ;;  %v3664_v39 = vld [vmem:[%s7349_s3 + $0x18] sm:$0xff] }
 0x9b1   :  { %3780 = vst.msk [vmem:[%s7353_s7 + $0x10] sm:$0xff] %vm1232_vm5, %v3772_v54 }
 0x9b2   :  { %v3757_v41 = vsel %vm6940_vm15, %v3624_v47, %v3746_v44 }
 0x9b4   :  { %v3627_v63 = vpop.f32.mrf.mxu2 }
 0x9b5   :  { %v3649_v8 = vmax.f32 %v3641_v19, %v3627_v63  ;;  %vm3722_vm6 = vcmp.gt.f32.partialorder %v3627_v63, 0.5  ;;  %3685 = vrot.lane.b32.xlu2 %v3627_v63, %s4650_s30 }
 0x9b6   :  { %3683 = vrot.lane.b32.xlu1 %v3624_v47, %s4650_s30  ;;  %v4266_v15 = vsel %vm3722_vm6, 1.0, %v4648_v11 }
 0x9b7   :  { %3657 = vst.msk [vmem:[#allocation6 + $0x20] sm:$0xff] %vm1232_vm5, %v3649_v8  ;;  %v3747_v26 = vmul.f32 %v4266_v15, %v6936_v48 }
 0x9b8   :  { %v3765_v29 = vld [vmem:[%s7350_s4 + $0x18] sm:$0xff] }
 0x9b9   :  { %v3773_v50 = vadd.f32 %v3765_v29, %v3757_v41  ;;  %v3758_v7 = vsel %vm6940_vm15, %v3627_v63, %v3747_v26  ;;  %v3667_v26 = vld [vmem:[%s7349_s3 + $0x30] sm:$0xff] }
 0x9ba   :  { %3811 = vrot.lane.b32.xlu0 %v3758_v7, %s4650_s30 }
 0x9bb   :  { %3781 = vst.msk [vmem:[%s7353_s7 + $0x18] sm:$0xff] %vm1232_vm5, %v3773_v50 }
 0x9bc   :  { %v3629_v9 = vpop.f32.mrf.mxu2 }
 0x9bd   :  { %v3650_v23 = vmax.f32 %v3642_v1, %v3629_v9  ;;  %vm3723_vm8 = vcmp.gt.f32.partialorder %v3629_v9, 0.5  ;;  %3809 = vrot.lane.b32.xlu2 %v3757_v41, %s4650_s30 }
 0x9be   :  { %v4267_v57 = vsel %vm3723_vm8, 1.0, %v4648_v11 }
 0x9bf   :  { %3658 = vst.msk [vmem:[#allocation6 + $0x28] sm:$0xff] %vm1232_vm5, %v3650_v23  ;;  %v3748_v6 = vmul.f32 %v4267_v57, %v6936_v48 }
 0x9c1   :  { %v3759_v51 = vsel %vm6940_vm15, %v3629_v9, %v3748_v6 }
 0x9c2   :  { %v3766_v37 = vld [vmem:[%s7350_s4 + $0x20] sm:$0xff] }
 0x9c3   :  { %v3774_v0 = vadd.f32 %v3766_v37, %v3758_v7 }
 0x9c4   :  { %v3632_v60 = vpop.f32.mrf.mxu2 }
 0x9c5   :  { %3782 = vst.msk [vmem:[%s7353_s7 + $0x20] sm:$0xff] %vm1232_vm5, %v3774_v0  ;;  %v3651_v49 = vmax.f32 %v3643_v62, %v3632_v60  ;;  %vm3724_vm4 = vcmp.gt.f32.partialorder %v3632_v60, 0.5  ;;  %3689 = vrot.lane.b32.xlu0 %v3632_v60, %s4650_s30  ;;  %3687 = vrot.lane.b32.xlu2 %v3629_v9, %s4650_s30  ;;  %v3668_v0 = vld [vmem:[%s7349_s3 + $0x38] sm:$0xff] }
 0x9c6   :  { %v4268_v10 = vsel %vm3724_vm4, 1.0, %v4648_v11 }
 0x9c7   :  { %3659 = vst.msk [vmem:[#allocation6 + $0x30] sm:$0xff] %vm1232_vm5, %v3651_v49  ;;  %v3749_v53 = vmul.f32 %v4268_v10, %v6936_v48 }
 0x9c9   :  { %v3760_v12 = vsel %vm6940_vm15, %v3632_v60, %v3749_v53 }
 0x9cc   :  { %v3767_v22 = vld [vmem:[%s7350_s4 + $0x28] sm:$0xff]  ;;  %v3634_v58 = vpop.f32.mrf.mxu2 }
 0x9cd   :  { %v3775_v28 = vadd.f32 %v3767_v22, %v3759_v51  ;;  %v3652_v20 = vmax.f32 %v3644_v42, %v3634_v58  ;;  %vm3725_vm3 = vcmp.gt.f32.partialorder %v3634_v58, 0.5  ;;  %3691 = vrot.lane.b32.xlu1 %v3634_v58, %s4650_s30  ;;  %3815 = vrot.lane.b32.xlu2 %v3760_v12, %s4650_s30 }
 0x9ce   :  { %v4269_v34 = vsel %vm3725_vm3, 1.0, %v4648_v11 }
 0x9cf   :  { %3783 = vst.msk [vmem:[%s7353_s7 + $0x28] sm:$0xff] %vm1232_vm5, %v3775_v28  ;;  %v3750_v61 = vmul.f32 %v4269_v34, %v6936_v48 }
 0x9d0   :  { %3660 = vst.msk [vmem:[#allocation6 + $0x38] sm:$0xff] %vm1232_vm5, %v3652_v20 }
 0x9d1   :  { %v3761_v32 = vsel %vm6940_vm15, %v3634_v58, %v3750_v61 }
 0x9d2   :  { %3817 = vrot.lane.b32.xlu0 %v3761_v32, %s4650_s30 }
 0x9d5   :  { %3813 = vrot.lane.b32.xlu1 %v3759_v51, %s4650_s30 }
 0x9d6   :  { %v3768_v33 = vld [vmem:[%s7350_s4 + $0x30] sm:$0xff] }
 0x9d7   :  { %v3776_v17 = vadd.f32 %v3768_v33, %v3760_v12 }
 0x9d9   :  { %3784 = vst.msk [vmem:[%s7353_s7 + $0x30] sm:$0xff] %vm1232_vm5, %v3776_v17 }
 0x9e0   :  { %v3769_v24 = vld [vmem:[%s7350_s4 + $0x38] sm:$0xff] }
 0x9e1   :  { %v3777_v59 = vadd.f32 %v3769_v24, %v3761_v32 }
 0x9e3   :  { %3785 = vst.msk [vmem:[%s7353_s7 + $0x38] sm:$0xff] %vm1232_vm5, %v3777_v59 }
 0x9ea   :  { %v4270_v11 = vld [vmem:[%s7350_s4 + $0x40] sm:$0xff] }
 0x9f5   :  { %v3804_v48 = vpop.permute.xlu2 %3803 }
 0x9f6   :  { %v3827_v30 = vadd.f32 %v4270_v11, %v3804_v48 }
 0x9f8   :  { %4278 = vst.msk [vmem:[%s7353_s7 + $0x40] sm:$0xff] %vm1232_vm5, %v3827_v30 }
 0x9ff   :  { %v4271_v43 = vld [vmem:[%s7350_s4 + $0x48] sm:$0xff]  ;;  %v4273_v46 = vld [vmem:[%s7350_s4 + $0x58] sm:$0xff] }
 0xa08   :  { %v3678_v35 = vpop.permute.xlu0 %3677 }
 0xa09   :  { %v3701_v14 = vmax.f32 %v3661_v40, %v3678_v35 }
 0xa0b   :  { %3709 = vst.msk [vmem:[#allocation7] sm:$0xff] %vm1232_vm5, %v3701_v14 }
 0xa0f   :  { %v3686_v45 = vpop.permute.xlu2 %3685 }
 0xa10   :  { %v3680_v21 = vpop.permute.xlu0 %3679  ;;  %v3705_v25 = vmax.f32 %v3665_v13, %v3686_v45 }
 0xa11   :  { %v3702_v38 = vmax.f32 %v3662_v52, %v3680_v21 }
 0xa12   :  { %3713 = vst.msk [vmem:[#allocation7 + $0x20] sm:$0xff] %vm1232_vm5, %v3705_v25 }
 0xa13   :  { %3710 = vst.msk [vmem:[#allocation7 + $0x8] sm:$0xff] %vm1232_vm5, %v3702_v38 }
 0xa17   :  { %v3810_v3 = vpop.permute.xlu2 %3809 }
 0xa18   :  { %v3806_v2 = vpop.permute.xlu0 %3805  ;;  %v3682_v27 = vpop.permute.xlu1 %3681  ;;  %v3830_v16 = vadd.f32 %v4273_v46, %v3810_v3 }
 0xa19   :  { %v3828_v31 = vadd.f32 %v4271_v43, %v3806_v2  ;;  %v3703_v56 = vmax.f32 %v3663_v36, %v3682_v27 }
 0xa1a   :  { %4281 = vst.msk [vmem:[%s7353_s7 + $0x58] sm:$0xff] %vm1232_vm5, %v3830_v16 }
 0xa1b   :  { %4279 = vst.msk [vmem:[%s7353_s7 + $0x48] sm:$0xff] %vm1232_vm5, %v3828_v31 }
 0xa1c   :  { %3711 = vst.msk [vmem:[#allocation7 + $0x10] sm:$0xff] %vm1232_vm5, %v3703_v56 }
 0xa1f   :  { %v3688_v54 = vpop.permute.xlu2 %3687 }
 0xa20   :  { %v3808_v5 = vpop.permute.xlu1 %3807  ;;  %v3706_v4 = vmax.f32 %v3666_v18, %v3688_v54 }
 0xa22   :  { %v4272_v55 = vld [vmem:[%s7350_s4 + $0x50] sm:$0xff]  ;;  %3714 = vst.msk [vmem:[#allocation7 + $0x28] sm:$0xff] %vm1232_vm5, %v3706_v4 }
 0xa23   :  { %v3829_v47 = vadd.f32 %v4272_v55, %v3808_v5 }
 0xa25   :  { %4280 = vst.msk [vmem:[%s7353_s7 + $0x50] sm:$0xff] %vm1232_vm5, %v3829_v47 }
 0xa27   :  { %v3816_v41 = vpop.permute.xlu2 %3815 }
 0xa28   :  { %v3684_v29 = vpop.permute.xlu1 %3683 }
 0xa29   :  { %v3704_v50 = vmax.f32 %v3664_v39, %v3684_v29 }
 0xa2b   :  { %3712 = vst.msk [vmem:[#allocation7 + $0x18] sm:$0xff] %vm1232_vm5, %v3704_v50 }
 0xa2c   :  { %v4276_v44 = vld [vmem:[%s7350_s4 + $0x70] sm:$0xff]  ;;  %v3812_v8 = vpop.permute.xlu0 %3811 }
 0xa2d   :  { %v3833_v19 = vadd.f32 %v4276_v44, %v3816_v41 }
 0xa2f   :  { %4284 = vst.msk [vmem:[%s7353_s7 + $0x70] sm:$0xff] %vm1232_vm5, %v3833_v19 }
 0xa36   :  { %v4274_v63 = vld [vmem:[%s7350_s4 + $0x60] sm:$0xff] }
 0xa37   :  { %v3831_v15 = vadd.f32 %v4274_v63, %v3812_v8  ;;  %v3690_v37 = vpop.permute.xlu0 %3689 }
 0xa38   :  { %v3707_v7 = vmax.f32 %v3667_v26, %v3690_v37 }
 0xa39   :  { %4282 = vst.msk [vmem:[%s7353_s7 + $0x60] sm:$0xff] %vm1232_vm5, %v3831_v15 }
 0xa3a   :  { %3715 = vst.msk [vmem:[#allocation7 + $0x30] sm:$0xff] %vm1232_vm5, %v3707_v7 }
 0xa3f   :  { %v3692_v1 = vpop.permute.xlu1 %3691 }
 0xa40   :  { %v3708_v9 = vmax.f32 %v3668_v0, %v3692_v1  ;;  %v4277_v23 = vld [vmem:[%s7350_s4 + $0x78] sm:$0xff]  ;;  %v4275_v22 = vld [vmem:[%s7350_s4 + $0x68] sm:$0xff] }
 0xa42   :  { %3716 = vst.msk [vmem:[#allocation7 + $0x38] sm:$0xff] %vm1232_vm5, %v3708_v9 }
 0xa44   :  { %v3818_v57 = vpop.permute.xlu0 %3817 }
 0xa45   :  { %v3834_v6 = vadd.f32 %v4277_v23, %v3818_v57 }
 0xa47   :  { %4285 = vst.msk [vmem:[%s7353_s7 + $0x78] sm:$0xff] %vm1232_vm5, %v3834_v6  ;;  %v3814_v51 = vpop.permute.xlu1 %3813 }
 0xa48   :  { %v3832_v62 = vadd.f32 %v4275_v22, %v3814_v51 }
 0xa4a   :  { %4283 = vst.msk [vmem:[%s7353_s7 + $0x68] sm:$0xff] %vm1232_vm5, %v3832_v62 }
 0xa4b PF:  { %p3844_p3 = scmp.eq.f32.partialorder %s4698_s28, 0.0 }
 0xa4c   :  { %v3848_v28 = vld [vmem:[%s7348_s2] sm:$0xff] (%p3844_p3)  ;;  %vm3864_vm7 = vcmask (%p3844_p3), 523264   ;;  %v3849_v60 = vld [vmem:[%s7348_s2 + $0x8] sm:$0xff] (%p3844_p3)  ;;  %v3850_v49 = vld [vmem:[%s7348_s2 + $0x10] sm:$0xff] (%p3844_p3) }
 0xa4d   :  { %3847 = sbr.rel (!%p3844_p3) target bundleno = 2762 (0xaca), region = 40  ;;  %v3856_v10 = vmax.f32 (%p3844_p3), %v3848_v28, 0.0  ;;  %v3857_v53 = vmax.f32 (%p3844_p3), %v3849_v60, 0.0  ;;  %v3858_v33 = vmax.f32 (%p3844_p3), %v3850_v49, 0.0  ;;  %v3851_v12 = vld [vmem:[%s7348_s2 + $0x18] sm:$0xff] (%p3844_p3)  ;;  %v3852_v42 = vld [vmem:[%s7348_s2 + $0x20] sm:$0xff] (%p3844_p3) }
 0xa4e   :  { %v3853_v17 = vld [vmem:[%s7348_s2 + $0x28] sm:$0xff] (%p3844_p3)  ;;  %v3859_v58 = vmax.f32 (%p3844_p3), %v3851_v12, 0.0  ;;  %v3854_v20 = vld [vmem:[%s7348_s2 + $0x30] sm:$0xff] (%p3844_p3)  ;;  %v3860_v34 = vmax.f32 (%p3844_p3), %v3852_v42, 0.0  ;;  %v3855_v61 = vld [vmem:[%s7348_s2 + $0x38] sm:$0xff] (%p3844_p3) }
 0xa4f   :  { %3865 = vst.msk [vmem:[#allocation6] sm:$0xff] (%p3844_p3), %vm3864_vm7, %v3856_v10  ;;  %v3861_v24 = vmax.f32 (%p3844_p3), %v3853_v17, 0.0  ;;  %v3873_v32 = vld [vmem:[%s7349_s3] sm:$0xff] (%p3844_p3)  ;;  %v3862_v59 = vmax.f32 (%p3844_p3), %v3854_v20, 0.0  ;;  %v3874_v11 = vld [vmem:[%s7349_s3 + $0x8] sm:$0xff] (%p3844_p3)  ;;  %v3863_v48 = vmax.f32 (%p3844_p3), %v3855_v61, 0.0 }
 0xa50   :  { %3866 = vst.msk [vmem:[#allocation6 + $0x8] sm:$0xff] (%p3844_p3), %vm3864_vm7, %v3857_v53  ;;  %v3875_v30 = vld [vmem:[%s7349_s3 + $0x10] sm:$0xff] (%p3844_p3)  ;;  %v3881_v40 = vmax.f32 (%p3844_p3), %v3873_v32, 0.0  ;;  %v3876_v35 = vld [vmem:[%s7349_s3 + $0x18] sm:$0xff] (%p3844_p3)  ;;  %v3882_v14 = vmax.f32 (%p3844_p3), %v3874_v11, 0.0  ;;  %v3877_v52 = vld [vmem:[%s7349_s3 + $0x20] sm:$0xff] (%p3844_p3) }
 0xa51   :  { %3867 = vst.msk [vmem:[#allocation6 + $0x10] sm:$0xff] (%p3844_p3), %vm3864_vm7, %v3858_v33  ;;  %v3883_v13 = vmax.f32 (%p3844_p3), %v3875_v30, 0.0  ;;  %v3878_v21 = vld [vmem:[%s7349_s3 + $0x28] sm:$0xff] (%p3844_p3)  ;;  %v3884_v45 = vmax.f32 (%p3844_p3), %v3876_v35, 0.0  ;;  %v3879_v38 = vld [vmem:[%s7349_s3 + $0x30] sm:$0xff] (%p3844_p3)  ;;  %v3885_v25 = vmax.f32 (%p3844_p3), %v3877_v52, 0.0 }
 0xa52   :  { %3868 = vst.msk [vmem:[#allocation6 + $0x18] sm:$0xff] %vm3864_vm7, %v3859_v58  ;;  %v3880_v43 = vld [vmem:[%s7349_s3 + $0x38] sm:$0xff]  ;;  %v3886_v36 = vmax.f32 %v3878_v21, 0.0  ;;  %v3887_v46 = vmax.f32 %v3879_v38, 0.0  ;;  %v3897_v27 = vld [vmem:[%s7350_s4] sm:$0xff]  ;;  %v3898_v3 = vld [vmem:[%s7350_s4 + $0x8] sm:$0xff] }
 0xa53   :  { %3869 = vst.msk [vmem:[#allocation6 + $0x20] sm:$0xff] %vm3864_vm7, %v3860_v34  ;;  %v3888_v2 = vmax.f32 %v3880_v43, 0.0  ;;  %v3899_v31 = vld [vmem:[%s7350_s4 + $0x10] sm:$0xff] }
 0xa54   :  { %3870 = vst.msk [vmem:[#allocation6 + $0x28] sm:$0xff] %vm3864_vm7, %v3861_v24 }
 0xa55   :  { %3871 = vst.msk [vmem:[#allocation6 + $0x30] sm:$0xff] %vm3864_vm7, %v3862_v59 }
 0xa56   :  { %3872 = vst.msk [vmem:[#allocation6 + $0x38] sm:$0xff] %vm3864_vm7, %v3863_v48 }
 0xa57   :  { %3889 = vst.msk [vmem:[#allocation7] sm:$0xff] %vm3864_vm7, %v3881_v40 }
 0xa58   :  { %3890 = vst.msk [vmem:[#allocation7 + $0x8] sm:$0xff] %vm3864_vm7, %v3882_v14 }
 0xa59   :  { %3891 = vst.msk [vmem:[#allocation7 + $0x10] sm:$0xff] %vm3864_vm7, %v3883_v13 }
 0xa5a   :  { %3892 = vst.msk [vmem:[#allocation7 + $0x18] sm:$0xff] %vm3864_vm7, %v3884_v45 }
 0xa5b   :  { %3893 = vst.msk [vmem:[#allocation7 + $0x20] sm:$0xff] %vm3864_vm7, %v3885_v25 }
 0xa5c   :  { %3894 = vst.msk [vmem:[#allocation7 + $0x28] sm:$0xff] %vm3864_vm7, %v3886_v36 }
 0xa5d   :  { %3895 = vst.msk [vmem:[#allocation7 + $0x30] sm:$0xff] %vm3864_vm7, %v3887_v46 }
 0xa5e   :  { %3896 = vst.msk [vmem:[#allocation7 + $0x38] sm:$0xff] %vm3864_vm7, %v3888_v2 }
 0xa5f   :  { %3913 = vst.msk [vmem:[%s7353_s7] sm:$0xff] %vm3864_vm7, %v3897_v27 }
 0xa66   :  { %v3900_v56 = vld [vmem:[%s7350_s4 + $0x18] sm:$0xff] }
 0xa67   :  { %3914 = vst.msk [vmem:[%s7353_s7 + $0x8] sm:$0xff] %vm3864_vm7, %v3898_v3 }
 0xa6e   :  { %v3901_v16 = vld [vmem:[%s7350_s4 + $0x20] sm:$0xff] }
 0xa6f   :  { %3915 = vst.msk [vmem:[%s7353_s7 + $0x10] sm:$0xff] %vm3864_vm7, %v3899_v31 }
 0xa76   :  { %v3902_v55 = vld [vmem:[%s7350_s4 + $0x28] sm:$0xff] }
 0xa77   :  { %3916 = vst.msk [vmem:[%s7353_s7 + $0x18] sm:$0xff] %vm3864_vm7, %v3900_v56 }
 0xa7e   :  { %v3903_v18 = vld [vmem:[%s7350_s4 + $0x30] sm:$0xff] }
 0xa7f   :  { %3917 = vst.msk [vmem:[%s7353_s7 + $0x20] sm:$0xff] %vm3864_vm7, %v3901_v16 }
 0xa86   :  { %v3904_v5 = vld [vmem:[%s7350_s4 + $0x38] sm:$0xff] }
 0xa87   :  { %3918 = vst.msk [vmem:[%s7353_s7 + $0x28] sm:$0xff] %vm3864_vm7, %v3902_v55 }
 0xa8e   :  { %v3905_v54 = vld [vmem:[%s7350_s4 + $0x40] sm:$0xff] }
 0xa8f   :  { %3919 = vst.msk [vmem:[%s7353_s7 + $0x30] sm:$0xff] %vm3864_vm7, %v3903_v18 }
 0xa96   :  { %v3906_v47 = vld [vmem:[%s7350_s4 + $0x48] sm:$0xff] }
 0xa97   :  { %3920 = vst.msk [vmem:[%s7353_s7 + $0x38] sm:$0xff] %vm3864_vm7, %v3904_v5 }
 0xa9e   :  { %v3907_v4 = vld [vmem:[%s7350_s4 + $0x50] sm:$0xff] }
 0xa9f   :  { %3921 = vst.msk [vmem:[%s7353_s7 + $0x40] sm:$0xff] %vm3864_vm7, %v3905_v54 }
 0xaa6   :  { %v3908_v39 = vld [vmem:[%s7350_s4 + $0x58] sm:$0xff] }
 0xaa7   :  { %3922 = vst.msk [vmem:[%s7353_s7 + $0x48] sm:$0xff] %vm3864_vm7, %v3906_v47 }
 0xaae   :  { %v3909_v44 = vld [vmem:[%s7350_s4 + $0x60] sm:$0xff] }
 0xaaf   :  { %3923 = vst.msk [vmem:[%s7353_s7 + $0x50] sm:$0xff] %vm3864_vm7, %v3907_v4 }
 0xab6   :  { %v3910_v29 = vld [vmem:[%s7350_s4 + $0x68] sm:$0xff] }
 0xab7   :  { %3924 = vst.msk [vmem:[%s7353_s7 + $0x58] sm:$0xff] %vm3864_vm7, %v3908_v39 }
 0xabe   :  { %v3911_v41 = vld [vmem:[%s7350_s4 + $0x70] sm:$0xff] }
 0xabf   :  { %3925 = vst.msk [vmem:[%s7353_s7 + $0x60] sm:$0xff] %vm3864_vm7, %v3909_v44 }
 0xac6   :  { %v3912_v50 = vld [vmem:[%s7350_s4 + $0x78] sm:$0xff] }
 0xac7   :  { %3926 = vst.msk [vmem:[%s7353_s7 + $0x68] sm:$0xff] %vm3864_vm7, %v3910_v29 }
 0xac8   :  { %3927 = vst.msk [vmem:[%s7353_s7 + $0x70] sm:$0xff] %vm3864_vm7, %v3911_v41 }
 0xac9   :  { %3928 = vst.msk [vmem:[%s7353_s7 + $0x78] sm:$0xff] %vm3864_vm7, %v3912_v50 }
 0xaca PF:  { %s3935_s4 = sshll.u32 %s7351_s5, 4  ;;  %s4651_s21 = smov [#allocation6]   ;;  %s3936_s4 = int_to_ptr.hbm [resolvable:$true] %s3935_s4 }
 0xacb   :  { %s3933_s22 = sshll.u32 %s4651_s21, 4  ;;  %s4652_s23 = smov 128   ;;  %s3934_s22 = int_to_ptr.vmem [resolvable:$true] %s3933_s22 }
 0xacc   :  { %s4653_s24 = smov 8   ;;  %s4654_s1 = smov [#allocation7]  }
 0xacd   :  { %3941 = dma.vmem_to_hbm [thread:$0]  %s3934_s22, 1024, %s3936_s4, [#allocation4], %s4652_s23, %s4652_s23, %s4653_s24  }
 0xace   :  { %s3946_s2 = sshll.u32 %s4654_s1, 4  ;;  %s3948_s27 = sshll.u32 %s7352_s6, 4  ;;  %s3947_s2 = int_to_ptr.vmem [resolvable:$true] %s3946_s2  ;;  %s3949_s27 = int_to_ptr.hbm [resolvable:$true] %s3948_s27 }
 0xacf   :  { %3954 = dma.vmem_to_hbm [thread:$0]  %s3947_s2, 1024, %s3949_s27, [#allocation8], %s4652_s23, %s4652_s23, %s4653_s24  }
 0xad0   :  { %4636 = dma.done.wait [#allocation4], 1024  }
 0xad1   :  { %4637 = vsyncadd [#allocation4], 4294966272 }
 0xad2   :  { %4638 = dma.done.wait [#allocation8], 1024  }
 0xad3   :  { %4639 = vsyncadd [#allocation8], 4294966272 }
 0xad4   :  { %3967 = vsyncpa [#allocation4], 1 }
 0xad5   :  { %3968 = vsyncpa [#allocation8], 1 }
 0xad6   :  { %3969 = vsyncpa [#allocation5], 1 }

</bundles_post_ra>
